<compile_context>
chip_gen: v7x
topology: tpu7x:2x2x1
jax: 0.10.0
libtpu: 0.0.40
codegen_flags: <defaults>
</compile_context>

<pallas_src>
import numpy as np
import jax
import jax.numpy as jnp
from jax import lax
from jax.experimental import pallas as pl
from jax.experimental.pallas import tpu as pltpu

TOTAL_LENGTH = 32  # hard-coded in the PyTorch module (pad_packed_sequence total_length=32)


def _lstm_kernel(lens_ref, x_ref, w_ref, b_ref, out_ref, ht_ref, ct_ref):
    """Single invocation; the whole recurrence runs as an unrolled fori_loop.

    lens_ref : (Bp, 1)  int32      sequence lengths (0 for pad rows)
    x_ref    : (T, Bp, D)          time-major input, fully VMEM-resident
    w_ref    : (D+H, 4H)           fused [W_ih^T ; W_hh^T], gate order i|f|o|g
    b_ref    : (1, 4H)             b_ih + b_hh, gate order i|f|o|g
    out_ref  : (T, Bp, H)          per-timestep output (zero past each length)
    ht_ref   : (Bp, H)             final hidden state
    ct_ref   : (Bp, H)             final cell state
    """
    T, Bp, _ = x_ref.shape
    H = ht_ref.shape[-1]

    w = w_ref[...]          # (D+H, 4H)  -- loaded once, stays in vregs/VMEM
    b = b_ref[...]          # (1, 4H)
    lens = lens_ref[...]    # (Bp, 1) int32

    h0 = jnp.zeros((Bp, H), jnp.float32)
    c0 = jnp.zeros((Bp, H), jnp.float32)

    def body(t, carry):
        h, c = carry
        x_t = x_ref[t]                                        # (Bp, D)
        xh = jnp.concatenate([x_t, h], axis=-1)               # (Bp, D+H)
        gates = jnp.dot(xh, w, preferred_element_type=jnp.float32) + b  # (Bp, 4H)

        # gate order i|f|o|g: one contiguous sigmoid slab + one tanh slab.
        sig = jax.nn.sigmoid(gates[:, : 3 * H])
        g_g = jnp.tanh(gates[:, 3 * H:])
        i_g = sig[:, :H]
        f_g = sig[:, H: 2 * H]
        o_g = sig[:, 2 * H: 3 * H]

        c_new = f_g * c + i_g * g_g
        h_new = o_g * jnp.tanh(c_new)

        valid = t < lens                                      # (Bp, 1) bool
        h_upd = jnp.where(valid, h_new, h)
        c_upd = jnp.where(valid, c_new, c)
        out_ref[t] = jnp.where(valid, h_upd, 0.0).astype(out_ref.dtype)
        return (h_upd, c_upd)

    hT, cT = lax.fori_loop(0, T, body, (h0, c0), unroll=True)
    ht_ref[...] = hT.astype(ht_ref.dtype)
    ct_ref[...] = cT.astype(ct_ref.dtype)


def dynamic_lstm_forward(x, x_len, w_ih, w_hh, b_ih, b_hh):
    """x: (B, T, D) float32 (batch_first), x_len: (B,) int32.

    w_ih: (4H, D), w_hh: (4H, H), b_ih/b_hh: (4H,)  -- PyTorch nn.LSTM layout,
    gate order i|f|g|o.

    Returns (out, (ht, ct)): out (B, 32, H), ht (1, B, H), ct (1, B, H).
    """
    B, T, D = x.shape
    H = w_hh.shape[1]
    assert T <= TOTAL_LENGTH

    # Pad batch to a full sublane tile (multiple of 8); pad rows use len = 0.
    Bp = ((B + 7) // 8) * 8

    # Reorder gate blocks i|f|g|o -> i|f|o|g so sigmoids are one 3H slab.
    def reorder(a):
        gi, gf, gg, go = jnp.split(a, 4, axis=0)
        return jnp.concatenate([gi, gf, go, gg], axis=0)

    w_ih_r = reorder(w_ih.astype(jnp.float32))                      # (4H, D)
    w_hh_r = reorder(w_hh.astype(jnp.float32))                      # (4H, H)
    bias = reorder((b_ih + b_hh).astype(jnp.float32)).reshape(1, 4 * H)

    # Fused weight: (D+H, 4H) so the per-step recurrence is one matmul.
    w_fused = jnp.concatenate([w_ih_r.T, w_hh_r.T], axis=0)         # (D+H, 4H)

    # Time-major, pad time to TOTAL_LENGTH and batch to Bp.
    x_tm = jnp.transpose(x, (1, 0, 2)).astype(jnp.float32)          # (T, B, D)
    x_tm = jnp.pad(x_tm, ((0, TOTAL_LENGTH - T), (0, Bp - B), (0, 0)))
    lens = jnp.pad(x_len.astype(jnp.int32), (0, Bp - B)).reshape(Bp, 1)

    cost = pl.CostEstimate(
        flops=2 * TOTAL_LENGTH * Bp * (D + H) * 4 * H,
        transcendentals=TOTAL_LENGTH * Bp * 5 * H,
        bytes_accessed=4 * (x_tm.size + w_fused.size + bias.size + lens.size
                            + TOTAL_LENGTH * Bp * H + 2 * Bp * H),
    )

    grid_spec = pltpu.PrefetchScalarGridSpec(
        num_scalar_prefetch=0,
        grid=(1,),  # single invocation; recurrence lives inside the kernel
        in_specs=[
            pl.BlockSpec((Bp, 1), lambda i: (0, 0)),                 # lens
            pl.BlockSpec((TOTAL_LENGTH, Bp, D), lambda i: (0, 0, 0)),  # x (resident)
            pl.BlockSpec((D + H, 4 * H), lambda i: (0, 0)),          # fused W
            pl.BlockSpec((1, 4 * H), lambda i: (0, 0)),              # bias
        ],
        out_specs=[
            pl.BlockSpec((TOTAL_LENGTH, Bp, H), lambda i: (0, 0, 0)),  # out (resident)
            pl.BlockSpec((Bp, H), lambda i: (0, 0)),                 # ht
            pl.BlockSpec((Bp, H), lambda i: (0, 0)),                 # ct
        ],
    )

    out_tm, ht, ct = pl.pallas_call(
        _lstm_kernel,
        out_shape=(
            jax.ShapeDtypeStruct((TOTAL_LENGTH, Bp, H), jnp.float32),
            jax.ShapeDtypeStruct((Bp, H), jnp.float32),
            jax.ShapeDtypeStruct((Bp, H), jnp.float32),
        ),
        grid_spec=grid_spec,
        compiler_params=pltpu.CompilerParams(
            dimension_semantics=("arbitrary",),
        ),
        cost_estimate=cost,
    )(lens, x_tm, w_fused, bias)

    out = jnp.transpose(out_tm[:, :B, :], (1, 0, 2))   # (B, 32, H), batch_first
    ht = ht[:B][None, :, :]                            # (num_layers*dirs=1, B, H)
    ct = ct[:B][None, :, :]
    return out, (ht, ct)


def _reference_lstm(x, x_len, w_ih, w_hh, b_ih, b_hh):
    """Pure-JAX reference with the same masked-LSTM semantics (PyTorch gate order)."""
    B, T, D = x.shape
    H = w_hh.shape[1]
    wih_t = w_ih.T
    whh_t = w_hh.T
    bias = b_ih + b_hh

    def step(carry, inp):
        h, c = carry
        x_t, t = inp
        gates = x_t @ wih_t + h @ whh_t + bias
        i = jax.nn.sigmoid(gates[:, :H])
        f = jax.nn.sigmoid(gates[:, H:2 * H])
        g = jnp.tanh(gates[:, 2 * H:3 * H])
        o = jax.nn.sigmoid(gates[:, 3 * H:])
        c_new = f * c + i * g
        h_new = o * jnp.tanh(c_new)
        m = (t < x_len)[:, None].astype(x.dtype)
        h2 = m * h_new + (1 - m) * h
        c2 = m * c_new + (1 - m) * c
        return (h2, c2), m * h2

    h0 = jnp.zeros((B, H), x.dtype)
    c0 = jnp.zeros((B, H), x.dtype)
    (hT, cT), outs = lax.scan(step, (h0, c0),
                              (jnp.transpose(x, (1, 0, 2)), jnp.arange(T)))
    outs = jnp.transpose(outs, (1, 0, 2))                       # (B, T, H)
    outs = jnp.pad(outs, ((0, 0), (0, TOTAL_LENGTH - T), (0, 0)))
    return outs, (hT[None], cT[None])


if __name__ == "__main__":
    key = jax.random.PRNGKey(0)
    B, T, D, H = 4, 8, 16, 32       # batch, seq, input_size, hidden_size

    k_x, k_wih, k_whh, k_bih, k_bhh = jax.random.split(key, 5)
    x = jax.random.normal(k_x, (B, T, D), dtype=jnp.float32)
    x_len = jnp.array([8, 5, 3, 6], dtype=jnp.int32)

    # Deterministic parameter init, matching nn.LSTM's U(-1/sqrt(H), 1/sqrt(H)).
    bound = 1.0 / np.sqrt(H)
    w_ih = jax.random.uniform(k_wih, (4 * H, D), jnp.float32, -bound, bound)
    w_hh = jax.random.uniform(k_whh, (4 * H, H), jnp.float32, -bound, bound)
    b_ih = jax.random.uniform(k_bih, (4 * H,), jnp.float32, -bound, bound)
    b_hh = jax.random.uniform(k_bhh, (4 * H,), jnp.float32, -bound, bound)

    out, (ht, ct) = dynamic_lstm_forward(x, x_len, w_ih, w_hh, b_ih, b_hh)
    jax.block_until_ready((out, ht, ct))

    out_ref, (ht_ref, ct_ref) = _reference_lstm(x, x_len, w_ih, w_hh, b_ih, b_hh)
    np.testing.assert_allclose(np.asarray(out), np.asarray(out_ref), atol=1e-5, rtol=1e-5)
    np.testing.assert_allclose(np.asarray(ht), np.asarray(ht_ref), atol=1e-5, rtol=1e-5)
    np.testing.assert_allclose(np.asarray(ct), np.asarray(ct_ref), atol=1e-5, rtol=1e-5)

    assert out.shape == (B, TOTAL_LENGTH, H)
    assert ht.shape == (1, B, H) and ct.shape == (1, B, H)
    print("KERNEL_OK")
</pallas_src>

<mosaic_0001>
module attributes {stable_mosaic.version = 11 : i64} {
  func.func @_lstm_kernel(%arg0: i32, %arg1: memref<8x1xi32, #tpu.memory_space<vmem>>, %arg2: memref<32x8x16xf32, #tpu.memory_space<vmem>>, %arg3: memref<48x128xf32, #tpu.memory_space<vmem>>, %arg4: memref<1x128xf32, #tpu.memory_space<vmem>>, %arg5: memref<32x8x32xf32, #tpu.memory_space<vmem>>, %arg6: memref<8x32xf32, #tpu.memory_space<vmem>>, %arg7: memref<8x32xf32, #tpu.memory_space<vmem>>) attributes {dimension_semantics = [#tpu.dimension_semantics<arbitrary>], iteration_bounds = array<i64: 1>, scalar_prefetch = 0 : i64, scratch_operands = 0 : i64, tpu.core_type = #tpu.core_type<tc>, window_params = [{pipeline_mode = #tpu.pipeline_mode<synchronous>, transform_indices = @transform_0, window_bounds = array<i64: 8, 1>}, {pipeline_mode = #tpu.pipeline_mode<synchronous>, transform_indices = @transform_1, window_bounds = array<i64: 32, 8, 16>}, {pipeline_mode = #tpu.pipeline_mode<synchronous>, transform_indices = @transform_2, window_bounds = array<i64: 48, 128>}, {pipeline_mode = #tpu.pipeline_mode<synchronous>, transform_indices = @transform_3, window_bounds = array<i64: 1, 128>}, {pipeline_mode = #tpu.pipeline_mode<synchronous>, transform_indices = @transform_4, window_bounds = array<i64: 32, 8, 32>}, {pipeline_mode = #tpu.pipeline_mode<synchronous>, transform_indices = @transform_5, window_bounds = array<i64: 8, 32>}, {pipeline_mode = #tpu.pipeline_mode<synchronous>, transform_indices = @transform_6, window_bounds = array<i64: 8, 32>}]} {
    %c0 = arith.constant 0 : index
    %c0_0 = arith.constant 0 : index
    %0 = vector.load %arg3[%c0, %c0_0] : memref<48x128xf32, #tpu.memory_space<vmem>>, vector<48x128xf32>
    %c0_1 = arith.constant 0 : index
    %c0_2 = arith.constant 0 : index
    %1 = vector.load %arg4[%c0_1, %c0_2] : memref<1x128xf32, #tpu.memory_space<vmem>>, vector<1x128xf32>
    %c0_3 = arith.constant 0 : index
    %c0_4 = arith.constant 0 : index
    %2 = vector.load %arg1[%c0_3, %c0_4] : memref<8x1xi32, #tpu.memory_space<vmem>>, vector<8x1xi32>
    %cst = arith.constant 0.000000e+00 : f32
    %3 = vector.broadcast %cst : f32 to vector<8x32xf32>
    %cst_5 = arith.constant 0.000000e+00 : f32
    %4 = vector.broadcast %cst_5 : f32 to vector<8x32xf32>
    %c0_i32 = arith.constant 0 : i32
    %5 = arith.index_cast %c0_i32 : i32 to index
    %c0_6 = arith.constant 0 : index
    %c0_7 = arith.constant 0 : index
    %6 = vector.load %arg2[%5, %c0_6, %c0_7] : memref<32x8x16xf32, #tpu.memory_space<vmem>>, vector<1x8x16xf32>
    %7 = vector.shape_cast %6 : vector<1x8x16xf32> to vector<8x16xf32>
    %8 = tpu.concatenate %7, %3 in 1 : vector<8x16xf32>, vector<8x32xf32> -> vector<8x48xf32>
    %cst_8 = arith.constant dense<0.000000e+00> : vector<8x128xf32>
    %9 = tpu.matmul %8, %0, %cst_8 {dimension_numbers = #tpu.dot_dimension_numbers<[1], [0], [0], [1], [0, 0, 1, 1], [], []>} : vector<8x48xf32>, vector<48x128xf32>, vector<8x128xf32> -> vector<8x128xf32>
    %10 = vector.broadcast %1 : vector<1x128xf32> to vector<8x128xf32>
    %11 = arith.addf %9, %10 : vector<8x128xf32>
    %12 = vector.extract_strided_slice %11 {offsets = [0, 0], sizes = [8, 96], strides = [1, 1]} : vector<8x128xf32> to vector<8x96xf32>
    %13 = arith.negf %12 : vector<8x96xf32>
    %14 = math.exp %13 : vector<8x96xf32>
    %cst_9 = arith.constant 1.000000e+00 : f32
    %15 = vector.broadcast %cst_9 : f32 to vector<8x96xf32>
    %16 = arith.addf %15, %14 : vector<8x96xf32>
    %17 = arith.divf %15, %16 : vector<8x96xf32>
    %18 = vector.extract_strided_slice %11 {offsets = [0, 96], sizes = [8, 32], strides = [1, 1]} : vector<8x128xf32> to vector<8x32xf32>
    %19 = math.tanh %18 : vector<8x32xf32>
    %20 = vector.extract_strided_slice %17 {offsets = [0, 0], sizes = [8, 32], strides = [1, 1]} : vector<8x96xf32> to vector<8x32xf32>
    %21 = vector.extract_strided_slice %17 {offsets = [0, 32], sizes = [8, 32], strides = [1, 1]} : vector<8x96xf32> to vector<8x32xf32>
    %22 = vector.extract_strided_slice %17 {offsets = [0, 64], sizes = [8, 32], strides = [1, 1]} : vector<8x96xf32> to vector<8x32xf32>
    %23 = arith.mulf %21, %4 : vector<8x32xf32>
    %24 = arith.mulf %20, %19 : vector<8x32xf32>
    %25 = arith.addf %23, %24 : vector<8x32xf32>
    %26 = math.tanh %25 : vector<8x32xf32>
    %27 = arith.mulf %22, %26 : vector<8x32xf32>
    %28 = vector.broadcast %c0_i32 : i32 to vector<8x1xi32>
    %29 = arith.cmpi slt, %28, %2 : vector<8x1xi32>
    %30 = vector.shape_cast %29 : vector<8x1xi1> to vector<8x1xi1>
    %31 = vector.broadcast %30 : vector<8x1xi1> to vector<8x32xi1>
    %32 = arith.select %31, %27, %3 : vector<8x32xi1>, vector<8x32xf32>
    %33 = vector.shape_cast %29 : vector<8x1xi1> to vector<8x1xi1>
    %34 = vector.broadcast %33 : vector<8x1xi1> to vector<8x32xi1>
    %35 = arith.select %34, %25, %4 : vector<8x32xi1>, vector<8x32xf32>
    %cst_10 = arith.constant 0.000000e+00 : f32
    %36 = vector.shape_cast %29 : vector<8x1xi1> to vector<8x1xi1>
    %37 = vector.broadcast %36 : vector<8x1xi1> to vector<8x32xi1>
    %38 = vector.broadcast %cst_10 : f32 to vector<8x32xf32>
    %39 = arith.select %37, %32, %38 : vector<8x32xi1>, vector<8x32xf32>
    %40 = arith.index_cast %c0_i32 : i32 to index
    %c0_11 = arith.constant 0 : index
    %c0_12 = arith.constant 0 : index
    %41 = vector.load %arg5[%40, %c0_11, %c0_12] : memref<32x8x32xf32, #tpu.memory_space<vmem>>, vector<1x8x32xf32>
    %42 = vector.shape_cast %41 : vector<1x8x32xf32> to vector<8x32xf32>
    %43 = vector.shape_cast %39 : vector<8x32xf32> to vector<1x8x32xf32>
    tpu.vector_store %arg5[%40, %c0_11, %c0_12], %43 {strides = array<i32>} : memref<32x8x32xf32, #tpu.memory_space<vmem>>, vector<1x8x32xf32>,
    %c1_i32 = arith.constant 1 : i32
    %44 = arith.index_cast %c1_i32 : i32 to index
    %c0_13 = arith.constant 0 : index
    %c0_14 = arith.constant 0 : index
    %45 = vector.load %arg2[%44, %c0_13, %c0_14] : memref<32x8x16xf32, #tpu.memory_space<vmem>>, vector<1x8x16xf32>
    %46 = vector.shape_cast %45 : vector<1x8x16xf32> to vector<8x16xf32>
    %47 = tpu.concatenate %46, %32 in 1 : vector<8x16xf32>, vector<8x32xf32> -> vector<8x48xf32>
    %cst_15 = arith.constant dense<0.000000e+00> : vector<8x128xf32>
    %48 = tpu.matmul %47, %0, %cst_15 {dimension_numbers = #tpu.dot_dimension_numbers<[1], [0], [0], [1], [0, 0, 1, 1], [], []>} : vector<8x48xf32>, vector<48x128xf32>, vector<8x128xf32> -> vector<8x128xf32>
    %49 = vector.broadcast %1 : vector<1x128xf32> to vector<8x128xf32>
    %50 = arith.addf %48, %49 : vector<8x128xf32>
    %51 = vector.extract_strided_slice %50 {offsets = [0, 0], sizes = [8, 96], strides = [1, 1]} : vector<8x128xf32> to vector<8x96xf32>
    %52 = arith.negf %51 : vector<8x96xf32>
    %53 = math.exp %52 : vector<8x96xf32>
    %cst_16 = arith.constant 1.000000e+00 : f32
    %54 = vector.broadcast %cst_16 : f32 to vector<8x96xf32>
    %55 = arith.addf %54, %53 : vector<8x96xf32>
    %56 = arith.divf %54, %55 : vector<8x96xf32>
    %57 = vector.extract_strided_slice %50 {offsets = [0, 96], sizes = [8, 32], strides = [1, 1]} : vector<8x128xf32> to vector<8x32xf32>
    %58 = math.tanh %57 : vector<8x32xf32>
    %59 = vector.extract_strided_slice %56 {offsets = [0, 0], sizes = [8, 32], strides = [1, 1]} : vector<8x96xf32> to vector<8x32xf32>
    %60 = vector.extract_strided_slice %56 {offsets = [0, 32], sizes = [8, 32], strides = [1, 1]} : vector<8x96xf32> to vector<8x32xf32>
    %61 = vector.extract_strided_slice %56 {offsets = [0, 64], sizes = [8, 32], strides = [1, 1]} : vector<8x96xf32> to vector<8x32xf32>
    %62 = arith.mulf %60, %35 : vector<8x32xf32>
    %63 = arith.mulf %59, %58 : vector<8x32xf32>
    %64 = arith.addf %62, %63 : vector<8x32xf32>
    %65 = math.tanh %64 : vector<8x32xf32>
    %66 = arith.mulf %61, %65 : vector<8x32xf32>
    %67 = vector.broadcast %c1_i32 : i32 to vector<8x1xi32>
    %68 = arith.cmpi slt, %67, %2 : vector<8x1xi32>
    %69 = vector.shape_cast %68 : vector<8x1xi1> to vector<8x1xi1>
    %70 = vector.broadcast %69 : vector<8x1xi1> to vector<8x32xi1>
    %71 = arith.select %70, %66, %32 : vector<8x32xi1>, vector<8x32xf32>
    %72 = vector.shape_cast %68 : vector<8x1xi1> to vector<8x1xi1>
    %73 = vector.broadcast %72 : vector<8x1xi1> to vector<8x32xi1>
    %74 = arith.select %73, %64, %35 : vector<8x32xi1>, vector<8x32xf32>
    %cst_17 = arith.constant 0.000000e+00 : f32
    %75 = vector.shape_cast %68 : vector<8x1xi1> to vector<8x1xi1>
    %76 = vector.broadcast %75 : vector<8x1xi1> to vector<8x32xi1>
    %77 = vector.broadcast %cst_17 : f32 to vector<8x32xf32>
    %78 = arith.select %76, %71, %77 : vector<8x32xi1>, vector<8x32xf32>
    %79 = arith.index_cast %c1_i32 : i32 to index
    %c0_18 = arith.constant 0 : index
    %c0_19 = arith.constant 0 : index
    %80 = vector.load %arg5[%79, %c0_18, %c0_19] : memref<32x8x32xf32, #tpu.memory_space<vmem>>, vector<1x8x32xf32>
    %81 = vector.shape_cast %80 : vector<1x8x32xf32> to vector<8x32xf32>
    %82 = vector.shape_cast %78 : vector<8x32xf32> to vector<1x8x32xf32>
    tpu.vector_store %arg5[%79, %c0_18, %c0_19], %82 {strides = array<i32>} : memref<32x8x32xf32, #tpu.memory_space<vmem>>, vector<1x8x32xf32>,
    %c2_i32 = arith.constant 2 : i32
    %83 = arith.index_cast %c2_i32 : i32 to index
    %c0_20 = arith.constant 0 : index
    %c0_21 = arith.constant 0 : index
    %84 = vector.load %arg2[%83, %c0_20, %c0_21] : memref<32x8x16xf32, #tpu.memory_space<vmem>>, vector<1x8x16xf32>
    %85 = vector.shape_cast %84 : vector<1x8x16xf32> to vector<8x16xf32>
    %86 = tpu.concatenate %85, %71 in 1 : vector<8x16xf32>, vector<8x32xf32> -> vector<8x48xf32>
    %cst_22 = arith.constant dense<0.000000e+00> : vector<8x128xf32>
    %87 = tpu.matmul %86, %0, %cst_22 {dimension_numbers = #tpu.dot_dimension_numbers<[1], [0], [0], [1], [0, 0, 1, 1], [], []>} : vector<8x48xf32>, vector<48x128xf32>, vector<8x128xf32> -> vector<8x128xf32>
    %88 = vector.broadcast %1 : vector<1x128xf32> to vector<8x128xf32>
    %89 = arith.addf %87, %88 : vector<8x128xf32>
    %90 = vector.extract_strided_slice %89 {offsets = [0, 0], sizes = [8, 96], strides = [1, 1]} : vector<8x128xf32> to vector<8x96xf32>
    %91 = arith.negf %90 : vector<8x96xf32>
    %92 = math.exp %91 : vector<8x96xf32>
    %cst_23 = arith.constant 1.000000e+00 : f32
    %93 = vector.broadcast %cst_23 : f32 to vector<8x96xf32>
    %94 = arith.addf %93, %92 : vector<8x96xf32>
    %95 = arith.divf %93, %94 : vector<8x96xf32>
    %96 = vector.extract_strided_slice %89 {offsets = [0, 96], sizes = [8, 32], strides = [1, 1]} : vector<8x128xf32> to vector<8x32xf32>
    %97 = math.tanh %96 : vector<8x32xf32>
    %98 = vector.extract_strided_slice %95 {offsets = [0, 0], sizes = [8, 32], strides = [1, 1]} : vector<8x96xf32> to vector<8x32xf32>
    %99 = vector.extract_strided_slice %95 {offsets = [0, 32], sizes = [8, 32], strides = [1, 1]} : vector<8x96xf32> to vector<8x32xf32>
    %100 = vector.extract_strided_slice %95 {offsets = [0, 64], sizes = [8, 32], strides = [1, 1]} : vector<8x96xf32> to vector<8x32xf32>
    %101 = arith.mulf %99, %74 : vector<8x32xf32>
    %102 = arith.mulf %98, %97 : vector<8x32xf32>
    %103 = arith.addf %101, %102 : vector<8x32xf32>
    %104 = math.tanh %103 : vector<8x32xf32>
    %105 = arith.mulf %100, %104 : vector<8x32xf32>
    %106 = vector.broadcast %c2_i32 : i32 to vector<8x1xi32>
    %107 = arith.cmpi slt, %106, %2 : vector<8x1xi32>
    %108 = vector.shape_cast %107 : vector<8x1xi1> to vector<8x1xi1>
    %109 = vector.broadcast %108 : vector<8x1xi1> to vector<8x32xi1>
    %110 = arith.select %109, %105, %71 : vector<8x32xi1>, vector<8x32xf32>
    %111 = vector.shape_cast %107 : vector<8x1xi1> to vector<8x1xi1>
    %112 = vector.broadcast %111 : vector<8x1xi1> to vector<8x32xi1>
    %113 = arith.select %112, %103, %74 : vector<8x32xi1>, vector<8x32xf32>
    %cst_24 = arith.constant 0.000000e+00 : f32
    %114 = vector.shape_cast %107 : vector<8x1xi1> to vector<8x1xi1>
    %115 = vector.broadcast %114 : vector<8x1xi1> to vector<8x32xi1>
    %116 = vector.broadcast %cst_24 : f32 to vector<8x32xf32>
    %117 = arith.select %115, %110, %116 : vector<8x32xi1>, vector<8x32xf32>
    %118 = arith.index_cast %c2_i32 : i32 to index
    %c0_25 = arith.constant 0 : index
    %c0_26 = arith.constant 0 : index
    %119 = vector.load %arg5[%118, %c0_25, %c0_26] : memref<32x8x32xf32, #tpu.memory_space<vmem>>, vector<1x8x32xf32>
    %120 = vector.shape_cast %119 : vector<1x8x32xf32> to vector<8x32xf32>
    %121 = vector.shape_cast %117 : vector<8x32xf32> to vector<1x8x32xf32>
    tpu.vector_store %arg5[%118, %c0_25, %c0_26], %121 {strides = array<i32>} : memref<32x8x32xf32, #tpu.memory_space<vmem>>, vector<1x8x32xf32>,
    %c3_i32 = arith.constant 3 : i32
    %122 = arith.index_cast %c3_i32 : i32 to index
    %c0_27 = arith.constant 0 : index
    %c0_28 = arith.constant 0 : index
    %123 = vector.load %arg2[%122, %c0_27, %c0_28] : memref<32x8x16xf32, #tpu.memory_space<vmem>>, vector<1x8x16xf32>
    %124 = vector.shape_cast %123 : vector<1x8x16xf32> to vector<8x16xf32>
    %125 = tpu.concatenate %124, %110 in 1 : vector<8x16xf32>, vector<8x32xf32> -> vector<8x48xf32>
    %cst_29 = arith.constant dense<0.000000e+00> : vector<8x128xf32>
    %126 = tpu.matmul %125, %0, %cst_29 {dimension_numbers = #tpu.dot_dimension_numbers<[1], [0], [0], [1], [0, 0, 1, 1], [], []>} : vector<8x48xf32>, vector<48x128xf32>, vector<8x128xf32> -> vector<8x128xf32>
    %127 = vector.broadcast %1 : vector<1x128xf32> to vector<8x128xf32>
    %128 = arith.addf %126, %127 : vector<8x128xf32>
    %129 = vector.extract_strided_slice %128 {offsets = [0, 0], sizes = [8, 96], strides = [1, 1]} : vector<8x128xf32> to vector<8x96xf32>
    %130 = arith.negf %129 : vector<8x96xf32>
    %131 = math.exp %130 : vector<8x96xf32>
    %cst_30 = arith.constant 1.000000e+00 : f32
    %132 = vector.broadcast %cst_30 : f32 to vector<8x96xf32>
    %133 = arith.addf %132, %131 : vector<8x96xf32>
    %134 = arith.divf %132, %133 : vector<8x96xf32>
    %135 = vector.extract_strided_slice %128 {offsets = [0, 96], sizes = [8, 32], strides = [1, 1]} : vector<8x128xf32> to vector<8x32xf32>
    %136 = math.tanh %135 : vector<8x32xf32>
    %137 = vector.extract_strided_slice %134 {offsets = [0, 0], sizes = [8, 32], strides = [1, 1]} : vector<8x96xf32> to vector<8x32xf32>
    %138 = vector.extract_strided_slice %134 {offsets = [0, 32], sizes = [8, 32], strides = [1, 1]} : vector<8x96xf32> to vector<8x32xf32>
    %139 = vector.extract_strided_slice %134 {offsets = [0, 64], sizes = [8, 32], strides = [1, 1]} : vector<8x96xf32> to vector<8x32xf32>
    %140 = arith.mulf %138, %113 : vector<8x32xf32>
    %141 = arith.mulf %137, %136 : vector<8x32xf32>
    %142 = arith.addf %140, %141 : vector<8x32xf32>
    %143 = math.tanh %142 : vector<8x32xf32>
    %144 = arith.mulf %139, %143 : vector<8x32xf32>
    %145 = vector.broadcast %c3_i32 : i32 to vector<8x1xi32>
    %146 = arith.cmpi slt, %145, %2 : vector<8x1xi32>
    %147 = vector.shape_cast %146 : vector<8x1xi1> to vector<8x1xi1>
    %148 = vector.broadcast %147 : vector<8x1xi1> to vector<8x32xi1>
    %149 = arith.select %148, %144, %110 : vector<8x32xi1>, vector<8x32xf32>
    %150 = vector.shape_cast %146 : vector<8x1xi1> to vector<8x1xi1>
    %151 = vector.broadcast %150 : vector<8x1xi1> to vector<8x32xi1>
    %152 = arith.select %151, %142, %113 : vector<8x32xi1>, vector<8x32xf32>
    %cst_31 = arith.constant 0.000000e+00 : f32
    %153 = vector.shape_cast %146 : vector<8x1xi1> to vector<8x1xi1>
    %154 = vector.broadcast %153 : vector<8x1xi1> to vector<8x32xi1>
    %155 = vector.broadcast %cst_31 : f32 to vector<8x32xf32>
    %156 = arith.select %154, %149, %155 : vector<8x32xi1>, vector<8x32xf32>
    %157 = arith.index_cast %c3_i32 : i32 to index
    %c0_32 = arith.constant 0 : index
    %c0_33 = arith.constant 0 : index
    %158 = vector.load %arg5[%157, %c0_32, %c0_33] : memref<32x8x32xf32, #tpu.memory_space<vmem>>, vector<1x8x32xf32>
    %159 = vector.shape_cast %158 : vector<1x8x32xf32> to vector<8x32xf32>
    %160 = vector.shape_cast %156 : vector<8x32xf32> to vector<1x8x32xf32>
    tpu.vector_store %arg5[%157, %c0_32, %c0_33], %160 {strides = array<i32>} : memref<32x8x32xf32, #tpu.memory_space<vmem>>, vector<1x8x32xf32>,
    %c4_i32 = arith.constant 4 : i32
    %161 = arith.index_cast %c4_i32 : i32 to index
    %c0_34 = arith.constant 0 : index
    %c0_35 = arith.constant 0 : index
    %162 = vector.load %arg2[%161, %c0_34, %c0_35] : memref<32x8x16xf32, #tpu.memory_space<vmem>>, vector<1x8x16xf32>
    %163 = vector.shape_cast %162 : vector<1x8x16xf32> to vector<8x16xf32>
    %164 = tpu.concatenate %163, %149 in 1 : vector<8x16xf32>, vector<8x32xf32> -> vector<8x48xf32>
    %cst_36 = arith.constant dense<0.000000e+00> : vector<8x128xf32>
    %165 = tpu.matmul %164, %0, %cst_36 {dimension_numbers = #tpu.dot_dimension_numbers<[1], [0], [0], [1], [0, 0, 1, 1], [], []>} : vector<8x48xf32>, vector<48x128xf32>, vector<8x128xf32> -> vector<8x128xf32>
    %166 = vector.broadcast %1 : vector<1x128xf32> to vector<8x128xf32>
    %167 = arith.addf %165, %166 : vector<8x128xf32>
    %168 = vector.extract_strided_slice %167 {offsets = [0, 0], sizes = [8, 96], strides = [1, 1]} : vector<8x128xf32> to vector<8x96xf32>
    %169 = arith.negf %168 : vector<8x96xf32>
    %170 = math.exp %169 : vector<8x96xf32>
    %cst_37 = arith.constant 1.000000e+00 : f32
    %171 = vector.broadcast %cst_37 : f32 to vector<8x96xf32>
    %172 = arith.addf %171, %170 : vector<8x96xf32>
    %173 = arith.divf %171, %172 : vector<8x96xf32>
    %174 = vector.extract_strided_slice %167 {offsets = [0, 96], sizes = [8, 32], strides = [1, 1]} : vector<8x128xf32> to vector<8x32xf32>
    %175 = math.tanh %174 : vector<8x32xf32>
    %176 = vector.extract_strided_slice %173 {offsets = [0, 0], sizes = [8, 32], strides = [1, 1]} : vector<8x96xf32> to vector<8x32xf32>
    %177 = vector.extract_strided_slice %173 {offsets = [0, 32], sizes = [8, 32], strides = [1, 1]} : vector<8x96xf32> to vector<8x32xf32>
    %178 = vector.extract_strided_slice %173 {offsets = [0, 64], sizes = [8, 32], strides = [1, 1]} : vector<8x96xf32> to vector<8x32xf32>
    %179 = arith.mulf %177, %152 : vector<8x32xf32>
    %180 = arith.mulf %176, %175 : vector<8x32xf32>
    %181 = arith.addf %179, %180 : vector<8x32xf32>
    %182 = math.tanh %181 : vector<8x32xf32>
    %183 = arith.mulf %178, %182 : vector<8x32xf32>
    %184 = vector.broadcast %c4_i32 : i32 to vector<8x1xi32>
    %185 = arith.cmpi slt, %184, %2 : vector<8x1xi32>
    %186 = vector.shape_cast %185 : vector<8x1xi1> to vector<8x1xi1>
    %187 = vector.broadcast %186 : vector<8x1xi1> to vector<8x32xi1>
    %188 = arith.select %187, %183, %149 : vector<8x32xi1>, vector<8x32xf32>
    %189 = vector.shape_cast %185 : vector<8x1xi1> to vector<8x1xi1>
    %190 = vector.broadcast %189 : vector<8x1xi1> to vector<8x32xi1>
    %191 = arith.select %190, %181, %152 : vector<8x32xi1>, vector<8x32xf32>
    %cst_38 = arith.constant 0.000000e+00 : f32
    %192 = vector.shape_cast %185 : vector<8x1xi1> to vector<8x1xi1>
    %193 = vector.broadcast %192 : vector<8x1xi1> to vector<8x32xi1>
    %194 = vector.broadcast %cst_38 : f32 to vector<8x32xf32>
    %195 = arith.select %193, %188, %194 : vector<8x32xi1>, vector<8x32xf32>
    %196 = arith.index_cast %c4_i32 : i32 to index
    %c0_39 = arith.constant 0 : index
    %c0_40 = arith.constant 0 : index
    %197 = vector.load %arg5[%196, %c0_39, %c0_40] : memref<32x8x32xf32, #tpu.memory_space<vmem>>, vector<1x8x32xf32>
    %198 = vector.shape_cast %197 : vector<1x8x32xf32> to vector<8x32xf32>
    %199 = vector.shape_cast %195 : vector<8x32xf32> to vector<1x8x32xf32>
    tpu.vector_store %arg5[%196, %c0_39, %c0_40], %199 {strides = array<i32>} : memref<32x8x32xf32, #tpu.memory_space<vmem>>, vector<1x8x32xf32>,
    %c5_i32 = arith.constant 5 : i32
    %200 = arith.index_cast %c5_i32 : i32 to index
    %c0_41 = arith.constant 0 : index
    %c0_42 = arith.constant 0 : index
    %201 = vector.load %arg2[%200, %c0_41, %c0_42] : memref<32x8x16xf32, #tpu.memory_space<vmem>>, vector<1x8x16xf32>
    %202 = vector.shape_cast %201 : vector<1x8x16xf32> to vector<8x16xf32>
    %203 = tpu.concatenate %202, %188 in 1 : vector<8x16xf32>, vector<8x32xf32> -> vector<8x48xf32>
    %cst_43 = arith.constant dense<0.000000e+00> : vector<8x128xf32>
    %204 = tpu.matmul %203, %0, %cst_43 {dimension_numbers = #tpu.dot_dimension_numbers<[1], [0], [0], [1], [0, 0, 1, 1], [], []>} : vector<8x48xf32>, vector<48x128xf32>, vector<8x128xf32> -> vector<8x128xf32>
    %205 = vector.broadcast %1 : vector<1x128xf32> to vector<8x128xf32>
    %206 = arith.addf %204, %205 : vector<8x128xf32>
    %207 = vector.extract_strided_slice %206 {offsets = [0, 0], sizes = [8, 96], strides = [1, 1]} : vector<8x128xf32> to vector<8x96xf32>
    %208 = arith.negf %207 : vector<8x96xf32>
    %209 = math.exp %208 : vector<8x96xf32>
    %cst_44 = arith.constant 1.000000e+00 : f32
    %210 = vector.broadcast %cst_44 : f32 to vector<8x96xf32>
    %211 = arith.addf %210, %209 : vector<8x96xf32>
    %212 = arith.divf %210, %211 : vector<8x96xf32>
    %213 = vector.extract_strided_slice %206 {offsets = [0, 96], sizes = [8, 32], strides = [1, 1]} : vector<8x128xf32> to vector<8x32xf32>
    %214 = math.tanh %213 : vector<8x32xf32>
    %215 = vector.extract_strided_slice %212 {offsets = [0, 0], sizes = [8, 32], strides = [1, 1]} : vector<8x96xf32> to vector<8x32xf32>
    %216 = vector.extract_strided_slice %212 {offsets = [0, 32], sizes = [8, 32], strides = [1, 1]} : vector<8x96xf32> to vector<8x32xf32>
    %217 = vector.extract_strided_slice %212 {offsets = [0, 64], sizes = [8, 32], strides = [1, 1]} : vector<8x96xf32> to vector<8x32xf32>
    %218 = arith.mulf %216, %191 : vector<8x32xf32>
    %219 = arith.mulf %215, %214 : vector<8x32xf32>
    %220 = arith.addf %218, %219 : vector<8x32xf32>
    %221 = math.tanh %220 : vector<8x32xf32>
    %222 = arith.mulf %217, %221 : vector<8x32xf32>
    %223 = vector.broadcast %c5_i32 : i32 to vector<8x1xi32>
    %224 = arith.cmpi slt, %223, %2 : vector<8x1xi32>
    %225 = vector.shape_cast %224 : vector<8x1xi1> to vector<8x1xi1>
    %226 = vector.broadcast %225 : vector<8x1xi1> to vector<8x32xi1>
    %227 = arith.select %226, %222, %188 : vector<8x32xi1>, vector<8x32xf32>
    %228 = vector.shape_cast %224 : vector<8x1xi1> to vector<8x1xi1>
    %229 = vector.broadcast %228 : vector<8x1xi1> to vector<8x32xi1>
    %230 = arith.select %229, %220, %191 : vector<8x32xi1>, vector<8x32xf32>
    %cst_45 = arith.constant 0.000000e+00 : f32
    %231 = vector.shape_cast %224 : vector<8x1xi1> to vector<8x1xi1>
    %232 = vector.broadcast %231 : vector<8x1xi1> to vector<8x32xi1>
    %233 = vector.broadcast %cst_45 : f32 to vector<8x32xf32>
    %234 = arith.select %232, %227, %233 : vector<8x32xi1>, vector<8x32xf32>
    %235 = arith.index_cast %c5_i32 : i32 to index
    %c0_46 = arith.constant 0 : index
    %c0_47 = arith.constant 0 : index
    %236 = vector.load %arg5[%235, %c0_46, %c0_47] : memref<32x8x32xf32, #tpu.memory_space<vmem>>, vector<1x8x32xf32>
    %237 = vector.shape_cast %236 : vector<1x8x32xf32> to vector<8x32xf32>
    %238 = vector.shape_cast %234 : vector<8x32xf32> to vector<1x8x32xf32>
    tpu.vector_store %arg5[%235, %c0_46, %c0_47], %238 {strides = array<i32>} : memref<32x8x32xf32, #tpu.memory_space<vmem>>, vector<1x8x32xf32>,
    %c6_i32 = arith.constant 6 : i32
    %239 = arith.index_cast %c6_i32 : i32 to index
    %c0_48 = arith.constant 0 : index
    %c0_49 = arith.constant 0 : index
    %240 = vector.load %arg2[%239, %c0_48, %c0_49] : memref<32x8x16xf32, #tpu.memory_space<vmem>>, vector<1x8x16xf32>
    %241 = vector.shape_cast %240 : vector<1x8x16xf32> to vector<8x16xf32>
    %242 = tpu.concatenate %241, %227 in 1 : vector<8x16xf32>, vector<8x32xf32> -> vector<8x48xf32>
    %cst_50 = arith.constant dense<0.000000e+00> : vector<8x128xf32>
    %243 = tpu.matmul %242, %0, %cst_50 {dimension_numbers = #tpu.dot_dimension_numbers<[1], [0], [0], [1], [0, 0, 1, 1], [], []>} : vector<8x48xf32>, vector<48x128xf32>, vector<8x128xf32> -> vector<8x128xf32>
    %244 = vector.broadcast %1 : vector<1x128xf32> to vector<8x128xf32>
    %245 = arith.addf %243, %244 : vector<8x128xf32>
    %246 = vector.extract_strided_slice %245 {offsets = [0, 0], sizes = [8, 96], strides = [1, 1]} : vector<8x128xf32> to vector<8x96xf32>
    %247 = arith.negf %246 : vector<8x96xf32>
    %248 = math.exp %247 : vector<8x96xf32>
    %cst_51 = arith.constant 1.000000e+00 : f32
    %249 = vector.broadcast %cst_51 : f32 to vector<8x96xf32>
    %250 = arith.addf %249, %248 : vector<8x96xf32>
    %251 = arith.divf %249, %250 : vector<8x96xf32>
    %252 = vector.extract_strided_slice %245 {offsets = [0, 96], sizes = [8, 32], strides = [1, 1]} : vector<8x128xf32> to vector<8x32xf32>
    %253 = math.tanh %252 : vector<8x32xf32>
    %254 = vector.extract_strided_slice %251 {offsets = [0, 0], sizes = [8, 32], strides = [1, 1]} : vector<8x96xf32> to vector<8x32xf32>
    %255 = vector.extract_strided_slice %251 {offsets = [0, 32], sizes = [8, 32], strides = [1, 1]} : vector<8x96xf32> to vector<8x32xf32>
    %256 = vector.extract_strided_slice %251 {offsets = [0, 64], sizes = [8, 32], strides = [1, 1]} : vector<8x96xf32> to vector<8x32xf32>
    %257 = arith.mulf %255, %230 : vector<8x32xf32>
    %258 = arith.mulf %254, %253 : vector<8x32xf32>
    %259 = arith.addf %257, %258 : vector<8x32xf32>
    %260 = math.tanh %259 : vector<8x32xf32>
    %261 = arith.mulf %256, %260 : vector<8x32xf32>
    %262 = vector.broadcast %c6_i32 : i32 to vector<8x1xi32>
    %263 = arith.cmpi slt, %262, %2 : vector<8x1xi32>
    %264 = vector.shape_cast %263 : vector<8x1xi1> to vector<8x1xi1>
    %265 = vector.broadcast %264 : vector<8x1xi1> to vector<8x32xi1>
    %266 = arith.select %265, %261, %227 : vector<8x32xi1>, vector<8x32xf32>
    %267 = vector.shape_cast %263 : vector<8x1xi1> to vector<8x1xi1>
    %268 = vector.broadcast %267 : vector<8x1xi1> to vector<8x32xi1>
    %269 = arith.select %268, %259, %230 : vector<8x32xi1>, vector<8x32xf32>
    %cst_52 = arith.constant 0.000000e+00 : f32
    %270 = vector.shape_cast %263 : vector<8x1xi1> to vector<8x1xi1>
    %271 = vector.broadcast %270 : vector<8x1xi1> to vector<8x32xi1>
    %272 = vector.broadcast %cst_52 : f32 to vector<8x32xf32>
    %273 = arith.select %271, %266, %272 : vector<8x32xi1>, vector<8x32xf32>
    %274 = arith.index_cast %c6_i32 : i32 to index
    %c0_53 = arith.constant 0 : index
    %c0_54 = arith.constant 0 : index
    %275 = vector.load %arg5[%274, %c0_53, %c0_54] : memref<32x8x32xf32, #tpu.memory_space<vmem>>, vector<1x8x32xf32>
    %276 = vector.shape_cast %275 : vector<1x8x32xf32> to vector<8x32xf32>
    %277 = vector.shape_cast %273 : vector<8x32xf32> to vector<1x8x32xf32>
    tpu.vector_store %arg5[%274, %c0_53, %c0_54], %277 {strides = array<i32>} : memref<32x8x32xf32, #tpu.memory_space<vmem>>, vector<1x8x32xf32>,
    %c7_i32 = arith.constant 7 : i32
    %278 = arith.index_cast %c7_i32 : i32 to index
    %c0_55 = arith.constant 0 : index
    %c0_56 = arith.constant 0 : index
    %279 = vector.load %arg2[%278, %c0_55, %c0_56] : memref<32x8x16xf32, #tpu.memory_space<vmem>>, vector<1x8x16xf32>
    %280 = vector.shape_cast %279 : vector<1x8x16xf32> to vector<8x16xf32>
    %281 = tpu.concatenate %280, %266 in 1 : vector<8x16xf32>, vector<8x32xf32> -> vector<8x48xf32>
    %cst_57 = arith.constant dense<0.000000e+00> : vector<8x128xf32>
    %282 = tpu.matmul %281, %0, %cst_57 {dimension_numbers = #tpu.dot_dimension_numbers<[1], [0], [0], [1], [0, 0, 1, 1], [], []>} : vector<8x48xf32>, vector<48x128xf32>, vector<8x128xf32> -> vector<8x128xf32>
    %283 = vector.broadcast %1 : vector<1x128xf32> to vector<8x128xf32>
    %284 = arith.addf %282, %283 : vector<8x128xf32>
    %285 = vector.extract_strided_slice %284 {offsets = [0, 0], sizes = [8, 96], strides = [1, 1]} : vector<8x128xf32> to vector<8x96xf32>
    %286 = arith.negf %285 : vector<8x96xf32>
    %287 = math.exp %286 : vector<8x96xf32>
    %cst_58 = arith.constant 1.000000e+00 : f32
    %288 = vector.broadcast %cst_58 : f32 to vector<8x96xf32>
    %289 = arith.addf %288, %287 : vector<8x96xf32>
    %290 = arith.divf %288, %289 : vector<8x96xf32>
    %291 = vector.extract_strided_slice %284 {offsets = [0, 96], sizes = [8, 32], strides = [1, 1]} : vector<8x128xf32> to vector<8x32xf32>
    %292 = math.tanh %291 : vector<8x32xf32>
    %293 = vector.extract_strided_slice %290 {offsets = [0, 0], sizes = [8, 32], strides = [1, 1]} : vector<8x96xf32> to vector<8x32xf32>
    %294 = vector.extract_strided_slice %290 {offsets = [0, 32], sizes = [8, 32], strides = [1, 1]} : vector<8x96xf32> to vector<8x32xf32>
    %295 = vector.extract_strided_slice %290 {offsets = [0, 64], sizes = [8, 32], strides = [1, 1]} : vector<8x96xf32> to vector<8x32xf32>
    %296 = arith.mulf %294, %269 : vector<8x32xf32>
    %297 = arith.mulf %293, %292 : vector<8x32xf32>
    %298 = arith.addf %296, %297 : vector<8x32xf32>
    %299 = math.tanh %298 : vector<8x32xf32>
    %300 = arith.mulf %295, %299 : vector<8x32xf32>
    %301 = vector.broadcast %c7_i32 : i32 to vector<8x1xi32>
    %302 = arith.cmpi slt, %301, %2 : vector<8x1xi32>
    %303 = vector.shape_cast %302 : vector<8x1xi1> to vector<8x1xi1>
    %304 = vector.broadcast %303 : vector<8x1xi1> to vector<8x32xi1>
    %305 = arith.select %304, %300, %266 : vector<8x32xi1>, vector<8x32xf32>
    %306 = vector.shape_cast %302 : vector<8x1xi1> to vector<8x1xi1>
    %307 = vector.broadcast %306 : vector<8x1xi1> to vector<8x32xi1>
    %308 = arith.select %307, %298, %269 : vector<8x32xi1>, vector<8x32xf32>
    %cst_59 = arith.constant 0.000000e+00 : f32
    %309 = vector.shape_cast %302 : vector<8x1xi1> to vector<8x1xi1>
    %310 = vector.broadcast %309 : vector<8x1xi1> to vector<8x32xi1>
    %311 = vector.broadcast %cst_59 : f32 to vector<8x32xf32>
    %312 = arith.select %310, %305, %311 : vector<8x32xi1>, vector<8x32xf32>
    %313 = arith.index_cast %c7_i32 : i32 to index
    %c0_60 = arith.constant 0 : index
    %c0_61 = arith.constant 0 : index
    %314 = vector.load %arg5[%313, %c0_60, %c0_61] : memref<32x8x32xf32, #tpu.memory_space<vmem>>, vector<1x8x32xf32>
    %315 = vector.shape_cast %314 : vector<1x8x32xf32> to vector<8x32xf32>
    %316 = vector.shape_cast %312 : vector<8x32xf32> to vector<1x8x32xf32>
    tpu.vector_store %arg5[%313, %c0_60, %c0_61], %316 {strides = array<i32>} : memref<32x8x32xf32, #tpu.memory_space<vmem>>, vector<1x8x32xf32>,
    %c8_i32 = arith.constant 8 : i32
    %317 = arith.index_cast %c8_i32 : i32 to index
    %c0_62 = arith.constant 0 : index
    %c0_63 = arith.constant 0 : index
    %318 = vector.load %arg2[%317, %c0_62, %c0_63] : memref<32x8x16xf32, #tpu.memory_space<vmem>>, vector<1x8x16xf32>
    %319 = vector.shape_cast %318 : vector<1x8x16xf32> to vector<8x16xf32>
    %320 = tpu.concatenate %319, %305 in 1 : vector<8x16xf32>, vector<8x32xf32> -> vector<8x48xf32>
    %cst_64 = arith.constant dense<0.000000e+00> : vector<8x128xf32>
    %321 = tpu.matmul %320, %0, %cst_64 {dimension_numbers = #tpu.dot_dimension_numbers<[1], [0], [0], [1], [0, 0, 1, 1], [], []>} : vector<8x48xf32>, vector<48x128xf32>, vector<8x128xf32> -> vector<8x128xf32>
    %322 = vector.broadcast %1 : vector<1x128xf32> to vector<8x128xf32>
    %323 = arith.addf %321, %322 : vector<8x128xf32>
    %324 = vector.extract_strided_slice %323 {offsets = [0, 0], sizes = [8, 96], strides = [1, 1]} : vector<8x128xf32> to vector<8x96xf32>
    %325 = arith.negf %324 : vector<8x96xf32>
    %326 = math.exp %325 : vector<8x96xf32>
    %cst_65 = arith.constant 1.000000e+00 : f32
    %327 = vector.broadcast %cst_65 : f32 to vector<8x96xf32>
    %328 = arith.addf %327, %326 : vector<8x96xf32>
    %329 = arith.divf %327, %328 : vector<8x96xf32>
    %330 = vector.extract_strided_slice %323 {offsets = [0, 96], sizes = [8, 32], strides = [1, 1]} : vector<8x128xf32> to vector<8x32xf32>
    %331 = math.tanh %330 : vector<8x32xf32>
    %332 = vector.extract_strided_slice %329 {offsets = [0, 0], sizes = [8, 32], strides = [1, 1]} : vector<8x96xf32> to vector<8x32xf32>
    %333 = vector.extract_strided_slice %329 {offsets = [0, 32], sizes = [8, 32], strides = [1, 1]} : vector<8x96xf32> to vector<8x32xf32>
    %334 = vector.extract_strided_slice %329 {offsets = [0, 64], sizes = [8, 32], strides = [1, 1]} : vector<8x96xf32> to vector<8x32xf32>
    %335 = arith.mulf %333, %308 : vector<8x32xf32>
    %336 = arith.mulf %332, %331 : vector<8x32xf32>
    %337 = arith.addf %335, %336 : vector<8x32xf32>
    %338 = math.tanh %337 : vector<8x32xf32>
    %339 = arith.mulf %334, %338 : vector<8x32xf32>
    %340 = vector.broadcast %c8_i32 : i32 to vector<8x1xi32>
    %341 = arith.cmpi slt, %340, %2 : vector<8x1xi32>
    %342 = vector.shape_cast %341 : vector<8x1xi1> to vector<8x1xi1>
    %343 = vector.broadcast %342 : vector<8x1xi1> to vector<8x32xi1>
    %344 = arith.select %343, %339, %305 : vector<8x32xi1>, vector<8x32xf32>
    %345 = vector.shape_cast %341 : vector<8x1xi1> to vector<8x1xi1>
    %346 = vector.broadcast %345 : vector<8x1xi1> to vector<8x32xi1>
    %347 = arith.select %346, %337, %308 : vector<8x32xi1>, vector<8x32xf32>
    %cst_66 = arith.constant 0.000000e+00 : f32
    %348 = vector.shape_cast %341 : vector<8x1xi1> to vector<8x1xi1>
    %349 = vector.broadcast %348 : vector<8x1xi1> to vector<8x32xi1>
    %350 = vector.broadcast %cst_66 : f32 to vector<8x32xf32>
    %351 = arith.select %349, %344, %350 : vector<8x32xi1>, vector<8x32xf32>
    %352 = arith.index_cast %c8_i32 : i32 to index
    %c0_67 = arith.constant 0 : index
    %c0_68 = arith.constant 0 : index
    %353 = vector.load %arg5[%352, %c0_67, %c0_68] : memref<32x8x32xf32, #tpu.memory_space<vmem>>, vector<1x8x32xf32>
    %354 = vector.shape_cast %353 : vector<1x8x32xf32> to vector<8x32xf32>
    %355 = vector.shape_cast %351 : vector<8x32xf32> to vector<1x8x32xf32>
    tpu.vector_store %arg5[%352, %c0_67, %c0_68], %355 {strides = array<i32>} : memref<32x8x32xf32, #tpu.memory_space<vmem>>, vector<1x8x32xf32>,
    %c9_i32 = arith.constant 9 : i32
    %356 = arith.index_cast %c9_i32 : i32 to index
    %c0_69 = arith.constant 0 : index
    %c0_70 = arith.constant 0 : index
    %357 = vector.load %arg2[%356, %c0_69, %c0_70] : memref<32x8x16xf32, #tpu.memory_space<vmem>>, vector<1x8x16xf32>
    %358 = vector.shape_cast %357 : vector<1x8x16xf32> to vector<8x16xf32>
    %359 = tpu.concatenate %358, %344 in 1 : vector<8x16xf32>, vector<8x32xf32> -> vector<8x48xf32>
    %cst_71 = arith.constant dense<0.000000e+00> : vector<8x128xf32>
    %360 = tpu.matmul %359, %0, %cst_71 {dimension_numbers = #tpu.dot_dimension_numbers<[1], [0], [0], [1], [0, 0, 1, 1], [], []>} : vector<8x48xf32>, vector<48x128xf32>, vector<8x128xf32> -> vector<8x128xf32>
    %361 = vector.broadcast %1 : vector<1x128xf32> to vector<8x128xf32>
    %362 = arith.addf %360, %361 : vector<8x128xf32>
    %363 = vector.extract_strided_slice %362 {offsets = [0, 0], sizes = [8, 96], strides = [1, 1]} : vector<8x128xf32> to vector<8x96xf32>
    %364 = arith.negf %363 : vector<8x96xf32>
    %365 = math.exp %364 : vector<8x96xf32>
    %cst_72 = arith.constant 1.000000e+00 : f32
    %366 = vector.broadcast %cst_72 : f32 to vector<8x96xf32>
    %367 = arith.addf %366, %365 : vector<8x96xf32>
    %368 = arith.divf %366, %367 : vector<8x96xf32>
    %369 = vector.extract_strided_slice %362 {offsets = [0, 96], sizes = [8, 32], strides = [1, 1]} : vector<8x128xf32> to vector<8x32xf32>
    %370 = math.tanh %369 : vector<8x32xf32>
    %371 = vector.extract_strided_slice %368 {offsets = [0, 0], sizes = [8, 32], strides = [1, 1]} : vector<8x96xf32> to vector<8x32xf32>
    %372 = vector.extract_strided_slice %368 {offsets = [0, 32], sizes = [8, 32], strides = [1, 1]} : vector<8x96xf32> to vector<8x32xf32>
    %373 = vector.extract_strided_slice %368 {offsets = [0, 64], sizes = [8, 32], strides = [1, 1]} : vector<8x96xf32> to vector<8x32xf32>
    %374 = arith.mulf %372, %347 : vector<8x32xf32>
    %375 = arith.mulf %371, %370 : vector<8x32xf32>
    %376 = arith.addf %374, %375 : vector<8x32xf32>
    %377 = math.tanh %376 : vector<8x32xf32>
    %378 = arith.mulf %373, %377 : vector<8x32xf32>
    %379 = vector.broadcast %c9_i32 : i32 to vector<8x1xi32>
    %380 = arith.cmpi slt, %379, %2 : vector<8x1xi32>
    %381 = vector.shape_cast %380 : vector<8x1xi1> to vector<8x1xi1>
    %382 = vector.broadcast %381 : vector<8x1xi1> to vector<8x32xi1>
    %383 = arith.select %382, %378, %344 : vector<8x32xi1>, vector<8x32xf32>
    %384 = vector.shape_cast %380 : vector<8x1xi1> to vector<8x1xi1>
    %385 = vector.broadcast %384 : vector<8x1xi1> to vector<8x32xi1>
    %386 = arith.select %385, %376, %347 : vector<8x32xi1>, vector<8x32xf32>
    %cst_73 = arith.constant 0.000000e+00 : f32
    %387 = vector.shape_cast %380 : vector<8x1xi1> to vector<8x1xi1>
    %388 = vector.broadcast %387 : vector<8x1xi1> to vector<8x32xi1>
    %389 = vector.broadcast %cst_73 : f32 to vector<8x32xf32>
    %390 = arith.select %388, %383, %389 : vector<8x32xi1>, vector<8x32xf32>
    %391 = arith.index_cast %c9_i32 : i32 to index
    %c0_74 = arith.constant 0 : index
    %c0_75 = arith.constant 0 : index
    %392 = vector.load %arg5[%391, %c0_74, %c0_75] : memref<32x8x32xf32, #tpu.memory_space<vmem>>, vector<1x8x32xf32>
    %393 = vector.shape_cast %392 : vector<1x8x32xf32> to vector<8x32xf32>
    %394 = vector.shape_cast %390 : vector<8x32xf32> to vector<1x8x32xf32>
    tpu.vector_store %arg5[%391, %c0_74, %c0_75], %394 {strides = array<i32>} : memref<32x8x32xf32, #tpu.memory_space<vmem>>, vector<1x8x32xf32>,
    %c10_i32 = arith.constant 10 : i32
    %395 = arith.index_cast %c10_i32 : i32 to index
    %c0_76 = arith.constant 0 : index
    %c0_77 = arith.constant 0 : index
    %396 = vector.load %arg2[%395, %c0_76, %c0_77] : memref<32x8x16xf32, #tpu.memory_space<vmem>>, vector<1x8x16xf32>
    %397 = vector.shape_cast %396 : vector<1x8x16xf32> to vector<8x16xf32>
    %398 = tpu.concatenate %397, %383 in 1 : vector<8x16xf32>, vector<8x32xf32> -> vector<8x48xf32>
    %cst_78 = arith.constant dense<0.000000e+00> : vector<8x128xf32>
    %399 = tpu.matmul %398, %0, %cst_78 {dimension_numbers = #tpu.dot_dimension_numbers<[1], [0], [0], [1], [0, 0, 1, 1], [], []>} : vector<8x48xf32>, vector<48x128xf32>, vector<8x128xf32> -> vector<8x128xf32>
    %400 = vector.broadcast %1 : vector<1x128xf32> to vector<8x128xf32>
    %401 = arith.addf %399, %400 : vector<8x128xf32>
    %402 = vector.extract_strided_slice %401 {offsets = [0, 0], sizes = [8, 96], strides = [1, 1]} : vector<8x128xf32> to vector<8x96xf32>
    %403 = arith.negf %402 : vector<8x96xf32>
    %404 = math.exp %403 : vector<8x96xf32>
    %cst_79 = arith.constant 1.000000e+00 : f32
    %405 = vector.broadcast %cst_79 : f32 to vector<8x96xf32>
    %406 = arith.addf %405, %404 : vector<8x96xf32>
    %407 = arith.divf %405, %406 : vector<8x96xf32>
    %408 = vector.extract_strided_slice %401 {offsets = [0, 96], sizes = [8, 32], strides = [1, 1]} : vector<8x128xf32> to vector<8x32xf32>
    %409 = math.tanh %408 : vector<8x32xf32>
    %410 = vector.extract_strided_slice %407 {offsets = [0, 0], sizes = [8, 32], strides = [1, 1]} : vector<8x96xf32> to vector<8x32xf32>
    %411 = vector.extract_strided_slice %407 {offsets = [0, 32], sizes = [8, 32], strides = [1, 1]} : vector<8x96xf32> to vector<8x32xf32>
    %412 = vector.extract_strided_slice %407 {offsets = [0, 64], sizes = [8, 32], strides = [1, 1]} : vector<8x96xf32> to vector<8x32xf32>
    %413 = arith.mulf %411, %386 : vector<8x32xf32>
    %414 = arith.mulf %410, %409 : vector<8x32xf32>
    %415 = arith.addf %413, %414 : vector<8x32xf32>
    %416 = math.tanh %415 : vector<8x32xf32>
    %417 = arith.mulf %412, %416 : vector<8x32xf32>
    %418 = vector.broadcast %c10_i32 : i32 to vector<8x1xi32>
    %419 = arith.cmpi slt, %418, %2 : vector<8x1xi32>
    %420 = vector.shape_cast %419 : vector<8x1xi1> to vector<8x1xi1>
    %421 = vector.broadcast %420 : vector<8x1xi1> to vector<8x32xi1>
    %422 = arith.select %421, %417, %383 : vector<8x32xi1>, vector<8x32xf32>
    %423 = vector.shape_cast %419 : vector<8x1xi1> to vector<8x1xi1>
    %424 = vector.broadcast %423 : vector<8x1xi1> to vector<8x32xi1>
    %425 = arith.select %424, %415, %386 : vector<8x32xi1>, vector<8x32xf32>
    %cst_80 = arith.constant 0.000000e+00 : f32
    %426 = vector.shape_cast %419 : vector<8x1xi1> to vector<8x1xi1>
    %427 = vector.broadcast %426 : vector<8x1xi1> to vector<8x32xi1>
    %428 = vector.broadcast %cst_80 : f32 to vector<8x32xf32>
    %429 = arith.select %427, %422, %428 : vector<8x32xi1>, vector<8x32xf32>
    %430 = arith.index_cast %c10_i32 : i32 to index
    %c0_81 = arith.constant 0 : index
    %c0_82 = arith.constant 0 : index
    %431 = vector.load %arg5[%430, %c0_81, %c0_82] : memref<32x8x32xf32, #tpu.memory_space<vmem>>, vector<1x8x32xf32>
    %432 = vector.shape_cast %431 : vector<1x8x32xf32> to vector<8x32xf32>
    %433 = vector.shape_cast %429 : vector<8x32xf32> to vector<1x8x32xf32>
    tpu.vector_store %arg5[%430, %c0_81, %c0_82], %433 {strides = array<i32>} : memref<32x8x32xf32, #tpu.memory_space<vmem>>, vector<1x8x32xf32>,
    %c11_i32 = arith.constant 11 : i32
    %434 = arith.index_cast %c11_i32 : i32 to index
    %c0_83 = arith.constant 0 : index
    %c0_84 = arith.constant 0 : index
    %435 = vector.load %arg2[%434, %c0_83, %c0_84] : memref<32x8x16xf32, #tpu.memory_space<vmem>>, vector<1x8x16xf32>
    %436 = vector.shape_cast %435 : vector<1x8x16xf32> to vector<8x16xf32>
    %437 = tpu.concatenate %436, %422 in 1 : vector<8x16xf32>, vector<8x32xf32> -> vector<8x48xf32>
    %cst_85 = arith.constant dense<0.000000e+00> : vector<8x128xf32>
    %438 = tpu.matmul %437, %0, %cst_85 {dimension_numbers = #tpu.dot_dimension_numbers<[1], [0], [0], [1], [0, 0, 1, 1], [], []>} : vector<8x48xf32>, vector<48x128xf32>, vector<8x128xf32> -> vector<8x128xf32>
    %439 = vector.broadcast %1 : vector<1x128xf32> to vector<8x128xf32>
    %440 = arith.addf %438, %439 : vector<8x128xf32>
    %441 = vector.extract_strided_slice %440 {offsets = [0, 0], sizes = [8, 96], strides = [1, 1]} : vector<8x128xf32> to vector<8x96xf32>
    %442 = arith.negf %441 : vector<8x96xf32>
    %443 = math.exp %442 : vector<8x96xf32>
    %cst_86 = arith.constant 1.000000e+00 : f32
    %444 = vector.broadcast %cst_86 : f32 to vector<8x96xf32>
    %445 = arith.addf %444, %443 : vector<8x96xf32>
    %446 = arith.divf %444, %445 : vector<8x96xf32>
    %447 = vector.extract_strided_slice %440 {offsets = [0, 96], sizes = [8, 32], strides = [1, 1]} : vector<8x128xf32> to vector<8x32xf32>
    %448 = math.tanh %447 : vector<8x32xf32>
    %449 = vector.extract_strided_slice %446 {offsets = [0, 0], sizes = [8, 32], strides = [1, 1]} : vector<8x96xf32> to vector<8x32xf32>
    %450 = vector.extract_strided_slice %446 {offsets = [0, 32], sizes = [8, 32], strides = [1, 1]} : vector<8x96xf32> to vector<8x32xf32>
    %451 = vector.extract_strided_slice %446 {offsets = [0, 64], sizes = [8, 32], strides = [1, 1]} : vector<8x96xf32> to vector<8x32xf32>
    %452 = arith.mulf %450, %425 : vector<8x32xf32>
    %453 = arith.mulf %449, %448 : vector<8x32xf32>
    %454 = arith.addf %452, %453 : vector<8x32xf32>
    %455 = math.tanh %454 : vector<8x32xf32>
    %456 = arith.mulf %451, %455 : vector<8x32xf32>
    %457 = vector.broadcast %c11_i32 : i32 to vector<8x1xi32>
    %458 = arith.cmpi slt, %457, %2 : vector<8x1xi32>
    %459 = vector.shape_cast %458 : vector<8x1xi1> to vector<8x1xi1>
    %460 = vector.broadcast %459 : vector<8x1xi1> to vector<8x32xi1>
    %461 = arith.select %460, %456, %422 : vector<8x32xi1>, vector<8x32xf32>
    %462 = vector.shape_cast %458 : vector<8x1xi1> to vector<8x1xi1>
    %463 = vector.broadcast %462 : vector<8x1xi1> to vector<8x32xi1>
    %464 = arith.select %463, %454, %425 : vector<8x32xi1>, vector<8x32xf32>
    %cst_87 = arith.constant 0.000000e+00 : f32
    %465 = vector.shape_cast %458 : vector<8x1xi1> to vector<8x1xi1>
    %466 = vector.broadcast %465 : vector<8x1xi1> to vector<8x32xi1>
    %467 = vector.broadcast %cst_87 : f32 to vector<8x32xf32>
    %468 = arith.select %466, %461, %467 : vector<8x32xi1>, vector<8x32xf32>
    %469 = arith.index_cast %c11_i32 : i32 to index
    %c0_88 = arith.constant 0 : index
    %c0_89 = arith.constant 0 : index
    %470 = vector.load %arg5[%469, %c0_88, %c0_89] : memref<32x8x32xf32, #tpu.memory_space<vmem>>, vector<1x8x32xf32>
    %471 = vector.shape_cast %470 : vector<1x8x32xf32> to vector<8x32xf32>
    %472 = vector.shape_cast %468 : vector<8x32xf32> to vector<1x8x32xf32>
    tpu.vector_store %arg5[%469, %c0_88, %c0_89], %472 {strides = array<i32>} : memref<32x8x32xf32, #tpu.memory_space<vmem>>, vector<1x8x32xf32>,
    %c12_i32 = arith.constant 12 : i32
    %473 = arith.index_cast %c12_i32 : i32 to index
    %c0_90 = arith.constant 0 : index
    %c0_91 = arith.constant 0 : index
    %474 = vector.load %arg2[%473, %c0_90, %c0_91] : memref<32x8x16xf32, #tpu.memory_space<vmem>>, vector<1x8x16xf32>
    %475 = vector.shape_cast %474 : vector<1x8x16xf32> to vector<8x16xf32>
    %476 = tpu.concatenate %475, %461 in 1 : vector<8x16xf32>, vector<8x32xf32> -> vector<8x48xf32>
    %cst_92 = arith.constant dense<0.000000e+00> : vector<8x128xf32>
    %477 = tpu.matmul %476, %0, %cst_92 {dimension_numbers = #tpu.dot_dimension_numbers<[1], [0], [0], [1], [0, 0, 1, 1], [], []>} : vector<8x48xf32>, vector<48x128xf32>, vector<8x128xf32> -> vector<8x128xf32>
    %478 = vector.broadcast %1 : vector<1x128xf32> to vector<8x128xf32>
    %479 = arith.addf %477, %478 : vector<8x128xf32>
    %480 = vector.extract_strided_slice %479 {offsets = [0, 0], sizes = [8, 96], strides = [1, 1]} : vector<8x128xf32> to vector<8x96xf32>
    %481 = arith.negf %480 : vector<8x96xf32>
    %482 = math.exp %481 : vector<8x96xf32>
    %cst_93 = arith.constant 1.000000e+00 : f32
    %483 = vector.broadcast %cst_93 : f32 to vector<8x96xf32>
    %484 = arith.addf %483, %482 : vector<8x96xf32>
    %485 = arith.divf %483, %484 : vector<8x96xf32>
    %486 = vector.extract_strided_slice %479 {offsets = [0, 96], sizes = [8, 32], strides = [1, 1]} : vector<8x128xf32> to vector<8x32xf32>
    %487 = math.tanh %486 : vector<8x32xf32>
    %488 = vector.extract_strided_slice %485 {offsets = [0, 0], sizes = [8, 32], strides = [1, 1]} : vector<8x96xf32> to vector<8x32xf32>
    %489 = vector.extract_strided_slice %485 {offsets = [0, 32], sizes = [8, 32], strides = [1, 1]} : vector<8x96xf32> to vector<8x32xf32>
    %490 = vector.extract_strided_slice %485 {offsets = [0, 64], sizes = [8, 32], strides = [1, 1]} : vector<8x96xf32> to vector<8x32xf32>
    %491 = arith.mulf %489, %464 : vector<8x32xf32>
    %492 = arith.mulf %488, %487 : vector<8x32xf32>
    %493 = arith.addf %491, %492 : vector<8x32xf32>
    %494 = math.tanh %493 : vector<8x32xf32>
    %495 = arith.mulf %490, %494 : vector<8x32xf32>
    %496 = vector.broadcast %c12_i32 : i32 to vector<8x1xi32>
    %497 = arith.cmpi slt, %496, %2 : vector<8x1xi32>
    %498 = vector.shape_cast %497 : vector<8x1xi1> to vector<8x1xi1>
    %499 = vector.broadcast %498 : vector<8x1xi1> to vector<8x32xi1>
    %500 = arith.select %499, %495, %461 : vector<8x32xi1>, vector<8x32xf32>
    %501 = vector.shape_cast %497 : vector<8x1xi1> to vector<8x1xi1>
    %502 = vector.broadcast %501 : vector<8x1xi1> to vector<8x32xi1>
    %503 = arith.select %502, %493, %464 : vector<8x32xi1>, vector<8x32xf32>
    %cst_94 = arith.constant 0.000000e+00 : f32
    %504 = vector.shape_cast %497 : vector<8x1xi1> to vector<8x1xi1>
    %505 = vector.broadcast %504 : vector<8x1xi1> to vector<8x32xi1>
    %506 = vector.broadcast %cst_94 : f32 to vector<8x32xf32>
    %507 = arith.select %505, %500, %506 : vector<8x32xi1>, vector<8x32xf32>
    %508 = arith.index_cast %c12_i32 : i32 to index
    %c0_95 = arith.constant 0 : index
    %c0_96 = arith.constant 0 : index
    %509 = vector.load %arg5[%508, %c0_95, %c0_96] : memref<32x8x32xf32, #tpu.memory_space<vmem>>, vector<1x8x32xf32>
    %510 = vector.shape_cast %509 : vector<1x8x32xf32> to vector<8x32xf32>
    %511 = vector.shape_cast %507 : vector<8x32xf32> to vector<1x8x32xf32>
    tpu.vector_store %arg5[%508, %c0_95, %c0_96], %511 {strides = array<i32>} : memref<32x8x32xf32, #tpu.memory_space<vmem>>, vector<1x8x32xf32>,
    %c13_i32 = arith.constant 13 : i32
    %512 = arith.index_cast %c13_i32 : i32 to index
    %c0_97 = arith.constant 0 : index
    %c0_98 = arith.constant 0 : index
    %513 = vector.load %arg2[%512, %c0_97, %c0_98] : memref<32x8x16xf32, #tpu.memory_space<vmem>>, vector<1x8x16xf32>
    %514 = vector.shape_cast %513 : vector<1x8x16xf32> to vector<8x16xf32>
    %515 = tpu.concatenate %514, %500 in 1 : vector<8x16xf32>, vector<8x32xf32> -> vector<8x48xf32>
    %cst_99 = arith.constant dense<0.000000e+00> : vector<8x128xf32>
    %516 = tpu.matmul %515, %0, %cst_99 {dimension_numbers = #tpu.dot_dimension_numbers<[1], [0], [0], [1], [0, 0, 1, 1], [], []>} : vector<8x48xf32>, vector<48x128xf32>, vector<8x128xf32> -> vector<8x128xf32>
    %517 = vector.broadcast %1 : vector<1x128xf32> to vector<8x128xf32>
    %518 = arith.addf %516, %517 : vector<8x128xf32>
    %519 = vector.extract_strided_slice %518 {offsets = [0, 0], sizes = [8, 96], strides = [1, 1]} : vector<8x128xf32> to vector<8x96xf32>
    %520 = arith.negf %519 : vector<8x96xf32>
    %521 = math.exp %520 : vector<8x96xf32>
    %cst_100 = arith.constant 1.000000e+00 : f32
    %522 = vector.broadcast %cst_100 : f32 to vector<8x96xf32>
    %523 = arith.addf %522, %521 : vector<8x96xf32>
    %524 = arith.divf %522, %523 : vector<8x96xf32>
    %525 = vector.extract_strided_slice %518 {offsets = [0, 96], sizes = [8, 32], strides = [1, 1]} : vector<8x128xf32> to vector<8x32xf32>
    %526 = math.tanh %525 : vector<8x32xf32>
    %527 = vector.extract_strided_slice %524 {offsets = [0, 0], sizes = [8, 32], strides = [1, 1]} : vector<8x96xf32> to vector<8x32xf32>
    %528 = vector.extract_strided_slice %524 {offsets = [0, 32], sizes = [8, 32], strides = [1, 1]} : vector<8x96xf32> to vector<8x32xf32>
    %529 = vector.extract_strided_slice %524 {offsets = [0, 64], sizes = [8, 32], strides = [1, 1]} : vector<8x96xf32> to vector<8x32xf32>
    %530 = arith.mulf %528, %503 : vector<8x32xf32>
    %531 = arith.mulf %527, %526 : vector<8x32xf32>
    %532 = arith.addf %530, %531 : vector<8x32xf32>
    %533 = math.tanh %532 : vector<8x32xf32>
    %534 = arith.mulf %529, %533 : vector<8x32xf32>
    %535 = vector.broadcast %c13_i32 : i32 to vector<8x1xi32>
    %536 = arith.cmpi slt, %535, %2 : vector<8x1xi32>
    %537 = vector.shape_cast %536 : vector<8x1xi1> to vector<8x1xi1>
    %538 = vector.broadcast %537 : vector<8x1xi1> to vector<8x32xi1>
    %539 = arith.select %538, %534, %500 : vector<8x32xi1>, vector<8x32xf32>
    %540 = vector.shape_cast %536 : vector<8x1xi1> to vector<8x1xi1>
    %541 = vector.broadcast %540 : vector<8x1xi1> to vector<8x32xi1>
    %542 = arith.select %541, %532, %503 : vector<8x32xi1>, vector<8x32xf32>
    %cst_101 = arith.constant 0.000000e+00 : f32
    %543 = vector.shape_cast %536 : vector<8x1xi1> to vector<8x1xi1>
    %544 = vector.broadcast %543 : vector<8x1xi1> to vector<8x32xi1>
    %545 = vector.broadcast %cst_101 : f32 to vector<8x32xf32>
    %546 = arith.select %544, %539, %545 : vector<8x32xi1>, vector<8x32xf32>
    %547 = arith.index_cast %c13_i32 : i32 to index
    %c0_102 = arith.constant 0 : index
    %c0_103 = arith.constant 0 : index
    %548 = vector.load %arg5[%547, %c0_102, %c0_103] : memref<32x8x32xf32, #tpu.memory_space<vmem>>, vector<1x8x32xf32>
    %549 = vector.shape_cast %548 : vector<1x8x32xf32> to vector<8x32xf32>
    %550 = vector.shape_cast %546 : vector<8x32xf32> to vector<1x8x32xf32>
    tpu.vector_store %arg5[%547, %c0_102, %c0_103], %550 {strides = array<i32>} : memref<32x8x32xf32, #tpu.memory_space<vmem>>, vector<1x8x32xf32>,
    %c14_i32 = arith.constant 14 : i32
    %551 = arith.index_cast %c14_i32 : i32 to index
    %c0_104 = arith.constant 0 : index
    %c0_105 = arith.constant 0 : index
    %552 = vector.load %arg2[%551, %c0_104, %c0_105] : memref<32x8x16xf32, #tpu.memory_space<vmem>>, vector<1x8x16xf32>
    %553 = vector.shape_cast %552 : vector<1x8x16xf32> to vector<8x16xf32>
    %554 = tpu.concatenate %553, %539 in 1 : vector<8x16xf32>, vector<8x32xf32> -> vector<8x48xf32>
    %cst_106 = arith.constant dense<0.000000e+00> : vector<8x128xf32>
    %555 = tpu.matmul %554, %0, %cst_106 {dimension_numbers = #tpu.dot_dimension_numbers<[1], [0], [0], [1], [0, 0, 1, 1], [], []>} : vector<8x48xf32>, vector<48x128xf32>, vector<8x128xf32> -> vector<8x128xf32>
    %556 = vector.broadcast %1 : vector<1x128xf32> to vector<8x128xf32>
    %557 = arith.addf %555, %556 : vector<8x128xf32>
    %558 = vector.extract_strided_slice %557 {offsets = [0, 0], sizes = [8, 96], strides = [1, 1]} : vector<8x128xf32> to vector<8x96xf32>
    %559 = arith.negf %558 : vector<8x96xf32>
    %560 = math.exp %559 : vector<8x96xf32>
    %cst_107 = arith.constant 1.000000e+00 : f32
    %561 = vector.broadcast %cst_107 : f32 to vector<8x96xf32>
    %562 = arith.addf %561, %560 : vector<8x96xf32>
    %563 = arith.divf %561, %562 : vector<8x96xf32>
    %564 = vector.extract_strided_slice %557 {offsets = [0, 96], sizes = [8, 32], strides = [1, 1]} : vector<8x128xf32> to vector<8x32xf32>
    %565 = math.tanh %564 : vector<8x32xf32>
    %566 = vector.extract_strided_slice %563 {offsets = [0, 0], sizes = [8, 32], strides = [1, 1]} : vector<8x96xf32> to vector<8x32xf32>
    %567 = vector.extract_strided_slice %563 {offsets = [0, 32], sizes = [8, 32], strides = [1, 1]} : vector<8x96xf32> to vector<8x32xf32>
    %568 = vector.extract_strided_slice %563 {offsets = [0, 64], sizes = [8, 32], strides = [1, 1]} : vector<8x96xf32> to vector<8x32xf32>
    %569 = arith.mulf %567, %542 : vector<8x32xf32>
    %570 = arith.mulf %566, %565 : vector<8x32xf32>
    %571 = arith.addf %569, %570 : vector<8x32xf32>
    %572 = math.tanh %571 : vector<8x32xf32>
    %573 = arith.mulf %568, %572 : vector<8x32xf32>
    %574 = vector.broadcast %c14_i32 : i32 to vector<8x1xi32>
    %575 = arith.cmpi slt, %574, %2 : vector<8x1xi32>
    %576 = vector.shape_cast %575 : vector<8x1xi1> to vector<8x1xi1>
    %577 = vector.broadcast %576 : vector<8x1xi1> to vector<8x32xi1>
    %578 = arith.select %577, %573, %539 : vector<8x32xi1>, vector<8x32xf32>
    %579 = vector.shape_cast %575 : vector<8x1xi1> to vector<8x1xi1>
    %580 = vector.broadcast %579 : vector<8x1xi1> to vector<8x32xi1>
    %581 = arith.select %580, %571, %542 : vector<8x32xi1>, vector<8x32xf32>
    %cst_108 = arith.constant 0.000000e+00 : f32
    %582 = vector.shape_cast %575 : vector<8x1xi1> to vector<8x1xi1>
    %583 = vector.broadcast %582 : vector<8x1xi1> to vector<8x32xi1>
    %584 = vector.broadcast %cst_108 : f32 to vector<8x32xf32>
    %585 = arith.select %583, %578, %584 : vector<8x32xi1>, vector<8x32xf32>
    %586 = arith.index_cast %c14_i32 : i32 to index
    %c0_109 = arith.constant 0 : index
    %c0_110 = arith.constant 0 : index
    %587 = vector.load %arg5[%586, %c0_109, %c0_110] : memref<32x8x32xf32, #tpu.memory_space<vmem>>, vector<1x8x32xf32>
    %588 = vector.shape_cast %587 : vector<1x8x32xf32> to vector<8x32xf32>
    %589 = vector.shape_cast %585 : vector<8x32xf32> to vector<1x8x32xf32>
    tpu.vector_store %arg5[%586, %c0_109, %c0_110], %589 {strides = array<i32>} : memref<32x8x32xf32, #tpu.memory_space<vmem>>, vector<1x8x32xf32>,
    %c15_i32 = arith.constant 15 : i32
    %590 = arith.index_cast %c15_i32 : i32 to index
    %c0_111 = arith.constant 0 : index
    %c0_112 = arith.constant 0 : index
    %591 = vector.load %arg2[%590, %c0_111, %c0_112] : memref<32x8x16xf32, #tpu.memory_space<vmem>>, vector<1x8x16xf32>
    %592 = vector.shape_cast %591 : vector<1x8x16xf32> to vector<8x16xf32>
    %593 = tpu.concatenate %592, %578 in 1 : vector<8x16xf32>, vector<8x32xf32> -> vector<8x48xf32>
    %cst_113 = arith.constant dense<0.000000e+00> : vector<8x128xf32>
    %594 = tpu.matmul %593, %0, %cst_113 {dimension_numbers = #tpu.dot_dimension_numbers<[1], [0], [0], [1], [0, 0, 1, 1], [], []>} : vector<8x48xf32>, vector<48x128xf32>, vector<8x128xf32> -> vector<8x128xf32>
    %595 = vector.broadcast %1 : vector<1x128xf32> to vector<8x128xf32>
    %596 = arith.addf %594, %595 : vector<8x128xf32>
    %597 = vector.extract_strided_slice %596 {offsets = [0, 0], sizes = [8, 96], strides = [1, 1]} : vector<8x128xf32> to vector<8x96xf32>
    %598 = arith.negf %597 : vector<8x96xf32>
    %599 = math.exp %598 : vector<8x96xf32>
    %cst_114 = arith.constant 1.000000e+00 : f32
    %600 = vector.broadcast %cst_114 : f32 to vector<8x96xf32>
    %601 = arith.addf %600, %599 : vector<8x96xf32>
    %602 = arith.divf %600, %601 : vector<8x96xf32>
    %603 = vector.extract_strided_slice %596 {offsets = [0, 96], sizes = [8, 32], strides = [1, 1]} : vector<8x128xf32> to vector<8x32xf32>
    %604 = math.tanh %603 : vector<8x32xf32>
    %605 = vector.extract_strided_slice %602 {offsets = [0, 0], sizes = [8, 32], strides = [1, 1]} : vector<8x96xf32> to vector<8x32xf32>
    %606 = vector.extract_strided_slice %602 {offsets = [0, 32], sizes = [8, 32], strides = [1, 1]} : vector<8x96xf32> to vector<8x32xf32>
    %607 = vector.extract_strided_slice %602 {offsets = [0, 64], sizes = [8, 32], strides = [1, 1]} : vector<8x96xf32> to vector<8x32xf32>
    %608 = arith.mulf %606, %581 : vector<8x32xf32>
    %609 = arith.mulf %605, %604 : vector<8x32xf32>
    %610 = arith.addf %608, %609 : vector<8x32xf32>
    %611 = math.tanh %610 : vector<8x32xf32>
    %612 = arith.mulf %607, %611 : vector<8x32xf32>
    %613 = vector.broadcast %c15_i32 : i32 to vector<8x1xi32>
    %614 = arith.cmpi slt, %613, %2 : vector<8x1xi32>
    %615 = vector.shape_cast %614 : vector<8x1xi1> to vector<8x1xi1>
    %616 = vector.broadcast %615 : vector<8x1xi1> to vector<8x32xi1>
    %617 = arith.select %616, %612, %578 : vector<8x32xi1>, vector<8x32xf32>
    %618 = vector.shape_cast %614 : vector<8x1xi1> to vector<8x1xi1>
    %619 = vector.broadcast %618 : vector<8x1xi1> to vector<8x32xi1>
    %620 = arith.select %619, %610, %581 : vector<8x32xi1>, vector<8x32xf32>
    %cst_115 = arith.constant 0.000000e+00 : f32
    %621 = vector.shape_cast %614 : vector<8x1xi1> to vector<8x1xi1>
    %622 = vector.broadcast %621 : vector<8x1xi1> to vector<8x32xi1>
    %623 = vector.broadcast %cst_115 : f32 to vector<8x32xf32>
    %624 = arith.select %622, %617, %623 : vector<8x32xi1>, vector<8x32xf32>
    %625 = arith.index_cast %c15_i32 : i32 to index
    %c0_116 = arith.constant 0 : index
    %c0_117 = arith.constant 0 : index
    %626 = vector.load %arg5[%625, %c0_116, %c0_117] : memref<32x8x32xf32, #tpu.memory_space<vmem>>, vector<1x8x32xf32>
    %627 = vector.shape_cast %626 : vector<1x8x32xf32> to vector<8x32xf32>
    %628 = vector.shape_cast %624 : vector<8x32xf32> to vector<1x8x32xf32>
    tpu.vector_store %arg5[%625, %c0_116, %c0_117], %628 {strides = array<i32>} : memref<32x8x32xf32, #tpu.memory_space<vmem>>, vector<1x8x32xf32>,
    %c16_i32 = arith.constant 16 : i32
    %629 = arith.index_cast %c16_i32 : i32 to index
    %c0_118 = arith.constant 0 : index
    %c0_119 = arith.constant 0 : index
    %630 = vector.load %arg2[%629, %c0_118, %c0_119] : memref<32x8x16xf32, #tpu.memory_space<vmem>>, vector<1x8x16xf32>
    %631 = vector.shape_cast %630 : vector<1x8x16xf32> to vector<8x16xf32>
    %632 = tpu.concatenate %631, %617 in 1 : vector<8x16xf32>, vector<8x32xf32> -> vector<8x48xf32>
    %cst_120 = arith.constant dense<0.000000e+00> : vector<8x128xf32>
    %633 = tpu.matmul %632, %0, %cst_120 {dimension_numbers = #tpu.dot_dimension_numbers<[1], [0], [0], [1], [0, 0, 1, 1], [], []>} : vector<8x48xf32>, vector<48x128xf32>, vector<8x128xf32> -> vector<8x128xf32>
    %634 = vector.broadcast %1 : vector<1x128xf32> to vector<8x128xf32>
    %635 = arith.addf %633, %634 : vector<8x128xf32>
    %636 = vector.extract_strided_slice %635 {offsets = [0, 0], sizes = [8, 96], strides = [1, 1]} : vector<8x128xf32> to vector<8x96xf32>
    %637 = arith.negf %636 : vector<8x96xf32>
    %638 = math.exp %637 : vector<8x96xf32>
    %cst_121 = arith.constant 1.000000e+00 : f32
    %639 = vector.broadcast %cst_121 : f32 to vector<8x96xf32>
    %640 = arith.addf %639, %638 : vector<8x96xf32>
    %641 = arith.divf %639, %640 : vector<8x96xf32>
    %642 = vector.extract_strided_slice %635 {offsets = [0, 96], sizes = [8, 32], strides = [1, 1]} : vector<8x128xf32> to vector<8x32xf32>
    %643 = math.tanh %642 : vector<8x32xf32>
    %644 = vector.extract_strided_slice %641 {offsets = [0, 0], sizes = [8, 32], strides = [1, 1]} : vector<8x96xf32> to vector<8x32xf32>
    %645 = vector.extract_strided_slice %641 {offsets = [0, 32], sizes = [8, 32], strides = [1, 1]} : vector<8x96xf32> to vector<8x32xf32>
    %646 = vector.extract_strided_slice %641 {offsets = [0, 64], sizes = [8, 32], strides = [1, 1]} : vector<8x96xf32> to vector<8x32xf32>
    %647 = arith.mulf %645, %620 : vector<8x32xf32>
    %648 = arith.mulf %644, %643 : vector<8x32xf32>
    %649 = arith.addf %647, %648 : vector<8x32xf32>
    %650 = math.tanh %649 : vector<8x32xf32>
    %651 = arith.mulf %646, %650 : vector<8x32xf32>
    %652 = vector.broadcast %c16_i32 : i32 to vector<8x1xi32>
    %653 = arith.cmpi slt, %652, %2 : vector<8x1xi32>
    %654 = vector.shape_cast %653 : vector<8x1xi1> to vector<8x1xi1>
    %655 = vector.broadcast %654 : vector<8x1xi1> to vector<8x32xi1>
    %656 = arith.select %655, %651, %617 : vector<8x32xi1>, vector<8x32xf32>
    %657 = vector.shape_cast %653 : vector<8x1xi1> to vector<8x1xi1>
    %658 = vector.broadcast %657 : vector<8x1xi1> to vector<8x32xi1>
    %659 = arith.select %658, %649, %620 : vector<8x32xi1>, vector<8x32xf32>
    %cst_122 = arith.constant 0.000000e+00 : f32
    %660 = vector.shape_cast %653 : vector<8x1xi1> to vector<8x1xi1>
    %661 = vector.broadcast %660 : vector<8x1xi1> to vector<8x32xi1>
    %662 = vector.broadcast %cst_122 : f32 to vector<8x32xf32>
    %663 = arith.select %661, %656, %662 : vector<8x32xi1>, vector<8x32xf32>
    %664 = arith.index_cast %c16_i32 : i32 to index
    %c0_123 = arith.constant 0 : index
    %c0_124 = arith.constant 0 : index
    %665 = vector.load %arg5[%664, %c0_123, %c0_124] : memref<32x8x32xf32, #tpu.memory_space<vmem>>, vector<1x8x32xf32>
    %666 = vector.shape_cast %665 : vector<1x8x32xf32> to vector<8x32xf32>
    %667 = vector.shape_cast %663 : vector<8x32xf32> to vector<1x8x32xf32>
    tpu.vector_store %arg5[%664, %c0_123, %c0_124], %667 {strides = array<i32>} : memref<32x8x32xf32, #tpu.memory_space<vmem>>, vector<1x8x32xf32>,
    %c17_i32 = arith.constant 17 : i32
    %668 = arith.index_cast %c17_i32 : i32 to index
    %c0_125 = arith.constant 0 : index
    %c0_126 = arith.constant 0 : index
    %669 = vector.load %arg2[%668, %c0_125, %c0_126] : memref<32x8x16xf32, #tpu.memory_space<vmem>>, vector<1x8x16xf32>
    %670 = vector.shape_cast %669 : vector<1x8x16xf32> to vector<8x16xf32>
    %671 = tpu.concatenate %670, %656 in 1 : vector<8x16xf32>, vector<8x32xf32> -> vector<8x48xf32>
    %cst_127 = arith.constant dense<0.000000e+00> : vector<8x128xf32>
    %672 = tpu.matmul %671, %0, %cst_127 {dimension_numbers = #tpu.dot_dimension_numbers<[1], [0], [0], [1], [0, 0, 1, 1], [], []>} : vector<8x48xf32>, vector<48x128xf32>, vector<8x128xf32> -> vector<8x128xf32>
    %673 = vector.broadcast %1 : vector<1x128xf32> to vector<8x128xf32>
    %674 = arith.addf %672, %673 : vector<8x128xf32>
    %675 = vector.extract_strided_slice %674 {offsets = [0, 0], sizes = [8, 96], strides = [1, 1]} : vector<8x128xf32> to vector<8x96xf32>
    %676 = arith.negf %675 : vector<8x96xf32>
    %677 = math.exp %676 : vector<8x96xf32>
    %cst_128 = arith.constant 1.000000e+00 : f32
    %678 = vector.broadcast %cst_128 : f32 to vector<8x96xf32>
    %679 = arith.addf %678, %677 : vector<8x96xf32>
    %680 = arith.divf %678, %679 : vector<8x96xf32>
    %681 = vector.extract_strided_slice %674 {offsets = [0, 96], sizes = [8, 32], strides = [1, 1]} : vector<8x128xf32> to vector<8x32xf32>
    %682 = math.tanh %681 : vector<8x32xf32>
    %683 = vector.extract_strided_slice %680 {offsets = [0, 0], sizes = [8, 32], strides = [1, 1]} : vector<8x96xf32> to vector<8x32xf32>
    %684 = vector.extract_strided_slice %680 {offsets = [0, 32], sizes = [8, 32], strides = [1, 1]} : vector<8x96xf32> to vector<8x32xf32>
    %685 = vector.extract_strided_slice %680 {offsets = [0, 64], sizes = [8, 32], strides = [1, 1]} : vector<8x96xf32> to vector<8x32xf32>
    %686 = arith.mulf %684, %659 : vector<8x32xf32>
    %687 = arith.mulf %683, %682 : vector<8x32xf32>
    %688 = arith.addf %686, %687 : vector<8x32xf32>
    %689 = math.tanh %688 : vector<8x32xf32>
    %690 = arith.mulf %685, %689 : vector<8x32xf32>
    %691 = vector.broadcast %c17_i32 : i32 to vector<8x1xi32>
    %692 = arith.cmpi slt, %691, %2 : vector<8x1xi32>
    %693 = vector.shape_cast %692 : vector<8x1xi1> to vector<8x1xi1>
    %694 = vector.broadcast %693 : vector<8x1xi1> to vector<8x32xi1>
    %695 = arith.select %694, %690, %656 : vector<8x32xi1>, vector<8x32xf32>
    %696 = vector.shape_cast %692 : vector<8x1xi1> to vector<8x1xi1>
    %697 = vector.broadcast %696 : vector<8x1xi1> to vector<8x32xi1>
    %698 = arith.select %697, %688, %659 : vector<8x32xi1>, vector<8x32xf32>
    %cst_129 = arith.constant 0.000000e+00 : f32
    %699 = vector.shape_cast %692 : vector<8x1xi1> to vector<8x1xi1>
    %700 = vector.broadcast %699 : vector<8x1xi1> to vector<8x32xi1>
    %701 = vector.broadcast %cst_129 : f32 to vector<8x32xf32>
    %702 = arith.select %700, %695, %701 : vector<8x32xi1>, vector<8x32xf32>
    %703 = arith.index_cast %c17_i32 : i32 to index
    %c0_130 = arith.constant 0 : index
    %c0_131 = arith.constant 0 : index
    %704 = vector.load %arg5[%703, %c0_130, %c0_131] : memref<32x8x32xf32, #tpu.memory_space<vmem>>, vector<1x8x32xf32>
    %705 = vector.shape_cast %704 : vector<1x8x32xf32> to vector<8x32xf32>
    %706 = vector.shape_cast %702 : vector<8x32xf32> to vector<1x8x32xf32>
    tpu.vector_store %arg5[%703, %c0_130, %c0_131], %706 {strides = array<i32>} : memref<32x8x32xf32, #tpu.memory_space<vmem>>, vector<1x8x32xf32>,
    %c18_i32 = arith.constant 18 : i32
    %707 = arith.index_cast %c18_i32 : i32 to index
    %c0_132 = arith.constant 0 : index
    %c0_133 = arith.constant 0 : index
    %708 = vector.load %arg2[%707, %c0_132, %c0_133] : memref<32x8x16xf32, #tpu.memory_space<vmem>>, vector<1x8x16xf32>
    %709 = vector.shape_cast %708 : vector<1x8x16xf32> to vector<8x16xf32>
    %710 = tpu.concatenate %709, %695 in 1 : vector<8x16xf32>, vector<8x32xf32> -> vector<8x48xf32>
    %cst_134 = arith.constant dense<0.000000e+00> : vector<8x128xf32>
    %711 = tpu.matmul %710, %0, %cst_134 {dimension_numbers = #tpu.dot_dimension_numbers<[1], [0], [0], [1], [0, 0, 1, 1], [], []>} : vector<8x48xf32>, vector<48x128xf32>, vector<8x128xf32> -> vector<8x128xf32>
    %712 = vector.broadcast %1 : vector<1x128xf32> to vector<8x128xf32>
    %713 = arith.addf %711, %712 : vector<8x128xf32>
    %714 = vector.extract_strided_slice %713 {offsets = [0, 0], sizes = [8, 96], strides = [1, 1]} : vector<8x128xf32> to vector<8x96xf32>
    %715 = arith.negf %714 : vector<8x96xf32>
    %716 = math.exp %715 : vector<8x96xf32>
    %cst_135 = arith.constant 1.000000e+00 : f32
    %717 = vector.broadcast %cst_135 : f32 to vector<8x96xf32>
    %718 = arith.addf %717, %716 : vector<8x96xf32>
    %719 = arith.divf %717, %718 : vector<8x96xf32>
    %720 = vector.extract_strided_slice %713 {offsets = [0, 96], sizes = [8, 32], strides = [1, 1]} : vector<8x128xf32> to vector<8x32xf32>
    %721 = math.tanh %720 : vector<8x32xf32>
    %722 = vector.extract_strided_slice %719 {offsets = [0, 0], sizes = [8, 32], strides = [1, 1]} : vector<8x96xf32> to vector<8x32xf32>
    %723 = vector.extract_strided_slice %719 {offsets = [0, 32], sizes = [8, 32], strides = [1, 1]} : vector<8x96xf32> to vector<8x32xf32>
    %724 = vector.extract_strided_slice %719 {offsets = [0, 64], sizes = [8, 32], strides = [1, 1]} : vector<8x96xf32> to vector<8x32xf32>
    %725 = arith.mulf %723, %698 : vector<8x32xf32>
    %726 = arith.mulf %722, %721 : vector<8x32xf32>
    %727 = arith.addf %725, %726 : vector<8x32xf32>
    %728 = math.tanh %727 : vector<8x32xf32>
    %729 = arith.mulf %724, %728 : vector<8x32xf32>
    %730 = vector.broadcast %c18_i32 : i32 to vector<8x1xi32>
    %731 = arith.cmpi slt, %730, %2 : vector<8x1xi32>
    %732 = vector.shape_cast %731 : vector<8x1xi1> to vector<8x1xi1>
    %733 = vector.broadcast %732 : vector<8x1xi1> to vector<8x32xi1>
    %734 = arith.select %733, %729, %695 : vector<8x32xi1>, vector<8x32xf32>
    %735 = vector.shape_cast %731 : vector<8x1xi1> to vector<8x1xi1>
    %736 = vector.broadcast %735 : vector<8x1xi1> to vector<8x32xi1>
    %737 = arith.select %736, %727, %698 : vector<8x32xi1>, vector<8x32xf32>
    %cst_136 = arith.constant 0.000000e+00 : f32
    %738 = vector.shape_cast %731 : vector<8x1xi1> to vector<8x1xi1>
    %739 = vector.broadcast %738 : vector<8x1xi1> to vector<8x32xi1>
    %740 = vector.broadcast %cst_136 : f32 to vector<8x32xf32>
    %741 = arith.select %739, %734, %740 : vector<8x32xi1>, vector<8x32xf32>
    %742 = arith.index_cast %c18_i32 : i32 to index
    %c0_137 = arith.constant 0 : index
    %c0_138 = arith.constant 0 : index
    %743 = vector.load %arg5[%742, %c0_137, %c0_138] : memref<32x8x32xf32, #tpu.memory_space<vmem>>, vector<1x8x32xf32>
    %744 = vector.shape_cast %743 : vector<1x8x32xf32> to vector<8x32xf32>
    %745 = vector.shape_cast %741 : vector<8x32xf32> to vector<1x8x32xf32>
    tpu.vector_store %arg5[%742, %c0_137, %c0_138], %745 {strides = array<i32>} : memref<32x8x32xf32, #tpu.memory_space<vmem>>, vector<1x8x32xf32>,
    %c19_i32 = arith.constant 19 : i32
    %746 = arith.index_cast %c19_i32 : i32 to index
    %c0_139 = arith.constant 0 : index
    %c0_140 = arith.constant 0 : index
    %747 = vector.load %arg2[%746, %c0_139, %c0_140] : memref<32x8x16xf32, #tpu.memory_space<vmem>>, vector<1x8x16xf32>
    %748 = vector.shape_cast %747 : vector<1x8x16xf32> to vector<8x16xf32>
    %749 = tpu.concatenate %748, %734 in 1 : vector<8x16xf32>, vector<8x32xf32> -> vector<8x48xf32>
    %cst_141 = arith.constant dense<0.000000e+00> : vector<8x128xf32>
    %750 = tpu.matmul %749, %0, %cst_141 {dimension_numbers = #tpu.dot_dimension_numbers<[1], [0], [0], [1], [0, 0, 1, 1], [], []>} : vector<8x48xf32>, vector<48x128xf32>, vector<8x128xf32> -> vector<8x128xf32>
    %751 = vector.broadcast %1 : vector<1x128xf32> to vector<8x128xf32>
    %752 = arith.addf %750, %751 : vector<8x128xf32>
    %753 = vector.extract_strided_slice %752 {offsets = [0, 0], sizes = [8, 96], strides = [1, 1]} : vector<8x128xf32> to vector<8x96xf32>
    %754 = arith.negf %753 : vector<8x96xf32>
    %755 = math.exp %754 : vector<8x96xf32>
    %cst_142 = arith.constant 1.000000e+00 : f32
    %756 = vector.broadcast %cst_142 : f32 to vector<8x96xf32>
    %757 = arith.addf %756, %755 : vector<8x96xf32>
    %758 = arith.divf %756, %757 : vector<8x96xf32>
    %759 = vector.extract_strided_slice %752 {offsets = [0, 96], sizes = [8, 32], strides = [1, 1]} : vector<8x128xf32> to vector<8x32xf32>
    %760 = math.tanh %759 : vector<8x32xf32>
    %761 = vector.extract_strided_slice %758 {offsets = [0, 0], sizes = [8, 32], strides = [1, 1]} : vector<8x96xf32> to vector<8x32xf32>
    %762 = vector.extract_strided_slice %758 {offsets = [0, 32], sizes = [8, 32], strides = [1, 1]} : vector<8x96xf32> to vector<8x32xf32>
    %763 = vector.extract_strided_slice %758 {offsets = [0, 64], sizes = [8, 32], strides = [1, 1]} : vector<8x96xf32> to vector<8x32xf32>
    %764 = arith.mulf %762, %737 : vector<8x32xf32>
    %765 = arith.mulf %761, %760 : vector<8x32xf32>
    %766 = arith.addf %764, %765 : vector<8x32xf32>
    %767 = math.tanh %766 : vector<8x32xf32>
    %768 = arith.mulf %763, %767 : vector<8x32xf32>
    %769 = vector.broadcast %c19_i32 : i32 to vector<8x1xi32>
    %770 = arith.cmpi slt, %769, %2 : vector<8x1xi32>
    %771 = vector.shape_cast %770 : vector<8x1xi1> to vector<8x1xi1>
    %772 = vector.broadcast %771 : vector<8x1xi1> to vector<8x32xi1>
    %773 = arith.select %772, %768, %734 : vector<8x32xi1>, vector<8x32xf32>
    %774 = vector.shape_cast %770 : vector<8x1xi1> to vector<8x1xi1>
    %775 = vector.broadcast %774 : vector<8x1xi1> to vector<8x32xi1>
    %776 = arith.select %775, %766, %737 : vector<8x32xi1>, vector<8x32xf32>
    %cst_143 = arith.constant 0.000000e+00 : f32
    %777 = vector.shape_cast %770 : vector<8x1xi1> to vector<8x1xi1>
    %778 = vector.broadcast %777 : vector<8x1xi1> to vector<8x32xi1>
    %779 = vector.broadcast %cst_143 : f32 to vector<8x32xf32>
    %780 = arith.select %778, %773, %779 : vector<8x32xi1>, vector<8x32xf32>
    %781 = arith.index_cast %c19_i32 : i32 to index
    %c0_144 = arith.constant 0 : index
    %c0_145 = arith.constant 0 : index
    %782 = vector.load %arg5[%781, %c0_144, %c0_145] : memref<32x8x32xf32, #tpu.memory_space<vmem>>, vector<1x8x32xf32>
    %783 = vector.shape_cast %782 : vector<1x8x32xf32> to vector<8x32xf32>
    %784 = vector.shape_cast %780 : vector<8x32xf32> to vector<1x8x32xf32>
    tpu.vector_store %arg5[%781, %c0_144, %c0_145], %784 {strides = array<i32>} : memref<32x8x32xf32, #tpu.memory_space<vmem>>, vector<1x8x32xf32>,
    %c20_i32 = arith.constant 20 : i32
    %785 = arith.index_cast %c20_i32 : i32 to index
    %c0_146 = arith.constant 0 : index
    %c0_147 = arith.constant 0 : index
    %786 = vector.load %arg2[%785, %c0_146, %c0_147] : memref<32x8x16xf32, #tpu.memory_space<vmem>>, vector<1x8x16xf32>
    %787 = vector.shape_cast %786 : vector<1x8x16xf32> to vector<8x16xf32>
    %788 = tpu.concatenate %787, %773 in 1 : vector<8x16xf32>, vector<8x32xf32> -> vector<8x48xf32>
    %cst_148 = arith.constant dense<0.000000e+00> : vector<8x128xf32>
    %789 = tpu.matmul %788, %0, %cst_148 {dimension_numbers = #tpu.dot_dimension_numbers<[1], [0], [0], [1], [0, 0, 1, 1], [], []>} : vector<8x48xf32>, vector<48x128xf32>, vector<8x128xf32> -> vector<8x128xf32>
    %790 = vector.broadcast %1 : vector<1x128xf32> to vector<8x128xf32>
    %791 = arith.addf %789, %790 : vector<8x128xf32>
    %792 = vector.extract_strided_slice %791 {offsets = [0, 0], sizes = [8, 96], strides = [1, 1]} : vector<8x128xf32> to vector<8x96xf32>
    %793 = arith.negf %792 : vector<8x96xf32>
    %794 = math.exp %793 : vector<8x96xf32>
    %cst_149 = arith.constant 1.000000e+00 : f32
    %795 = vector.broadcast %cst_149 : f32 to vector<8x96xf32>
    %796 = arith.addf %795, %794 : vector<8x96xf32>
    %797 = arith.divf %795, %796 : vector<8x96xf32>
    %798 = vector.extract_strided_slice %791 {offsets = [0, 96], sizes = [8, 32], strides = [1, 1]} : vector<8x128xf32> to vector<8x32xf32>
    %799 = math.tanh %798 : vector<8x32xf32>
    %800 = vector.extract_strided_slice %797 {offsets = [0, 0], sizes = [8, 32], strides = [1, 1]} : vector<8x96xf32> to vector<8x32xf32>
    %801 = vector.extract_strided_slice %797 {offsets = [0, 32], sizes = [8, 32], strides = [1, 1]} : vector<8x96xf32> to vector<8x32xf32>
    %802 = vector.extract_strided_slice %797 {offsets = [0, 64], sizes = [8, 32], strides = [1, 1]} : vector<8x96xf32> to vector<8x32xf32>
    %803 = arith.mulf %801, %776 : vector<8x32xf32>
    %804 = arith.mulf %800, %799 : vector<8x32xf32>
    %805 = arith.addf %803, %804 : vector<8x32xf32>
    %806 = math.tanh %805 : vector<8x32xf32>
    %807 = arith.mulf %802, %806 : vector<8x32xf32>
    %808 = vector.broadcast %c20_i32 : i32 to vector<8x1xi32>
    %809 = arith.cmpi slt, %808, %2 : vector<8x1xi32>
    %810 = vector.shape_cast %809 : vector<8x1xi1> to vector<8x1xi1>
    %811 = vector.broadcast %810 : vector<8x1xi1> to vector<8x32xi1>
    %812 = arith.select %811, %807, %773 : vector<8x32xi1>, vector<8x32xf32>
    %813 = vector.shape_cast %809 : vector<8x1xi1> to vector<8x1xi1>
    %814 = vector.broadcast %813 : vector<8x1xi1> to vector<8x32xi1>
    %815 = arith.select %814, %805, %776 : vector<8x32xi1>, vector<8x32xf32>
    %cst_150 = arith.constant 0.000000e+00 : f32
    %816 = vector.shape_cast %809 : vector<8x1xi1> to vector<8x1xi1>
    %817 = vector.broadcast %816 : vector<8x1xi1> to vector<8x32xi1>
    %818 = vector.broadcast %cst_150 : f32 to vector<8x32xf32>
    %819 = arith.select %817, %812, %818 : vector<8x32xi1>, vector<8x32xf32>
    %820 = arith.index_cast %c20_i32 : i32 to index
    %c0_151 = arith.constant 0 : index
    %c0_152 = arith.constant 0 : index
    %821 = vector.load %arg5[%820, %c0_151, %c0_152] : memref<32x8x32xf32, #tpu.memory_space<vmem>>, vector<1x8x32xf32>
    %822 = vector.shape_cast %821 : vector<1x8x32xf32> to vector<8x32xf32>
    %823 = vector.shape_cast %819 : vector<8x32xf32> to vector<1x8x32xf32>
    tpu.vector_store %arg5[%820, %c0_151, %c0_152], %823 {strides = array<i32>} : memref<32x8x32xf32, #tpu.memory_space<vmem>>, vector<1x8x32xf32>,
    %c21_i32 = arith.constant 21 : i32
    %824 = arith.index_cast %c21_i32 : i32 to index
    %c0_153 = arith.constant 0 : index
    %c0_154 = arith.constant 0 : index
    %825 = vector.load %arg2[%824, %c0_153, %c0_154] : memref<32x8x16xf32, #tpu.memory_space<vmem>>, vector<1x8x16xf32>
    %826 = vector.shape_cast %825 : vector<1x8x16xf32> to vector<8x16xf32>
    %827 = tpu.concatenate %826, %812 in 1 : vector<8x16xf32>, vector<8x32xf32> -> vector<8x48xf32>
    %cst_155 = arith.constant dense<0.000000e+00> : vector<8x128xf32>
    %828 = tpu.matmul %827, %0, %cst_155 {dimension_numbers = #tpu.dot_dimension_numbers<[1], [0], [0], [1], [0, 0, 1, 1], [], []>} : vector<8x48xf32>, vector<48x128xf32>, vector<8x128xf32> -> vector<8x128xf32>
    %829 = vector.broadcast %1 : vector<1x128xf32> to vector<8x128xf32>
    %830 = arith.addf %828, %829 : vector<8x128xf32>
    %831 = vector.extract_strided_slice %830 {offsets = [0, 0], sizes = [8, 96], strides = [1, 1]} : vector<8x128xf32> to vector<8x96xf32>
    %832 = arith.negf %831 : vector<8x96xf32>
    %833 = math.exp %832 : vector<8x96xf32>
    %cst_156 = arith.constant 1.000000e+00 : f32
    %834 = vector.broadcast %cst_156 : f32 to vector<8x96xf32>
    %835 = arith.addf %834, %833 : vector<8x96xf32>
    %836 = arith.divf %834, %835 : vector<8x96xf32>
    %837 = vector.extract_strided_slice %830 {offsets = [0, 96], sizes = [8, 32], strides = [1, 1]} : vector<8x128xf32> to vector<8x32xf32>
    %838 = math.tanh %837 : vector<8x32xf32>
    %839 = vector.extract_strided_slice %836 {offsets = [0, 0], sizes = [8, 32], strides = [1, 1]} : vector<8x96xf32> to vector<8x32xf32>
    %840 = vector.extract_strided_slice %836 {offsets = [0, 32], sizes = [8, 32], strides = [1, 1]} : vector<8x96xf32> to vector<8x32xf32>
    %841 = vector.extract_strided_slice %836 {offsets = [0, 64], sizes = [8, 32], strides = [1, 1]} : vector<8x96xf32> to vector<8x32xf32>
    %842 = arith.mulf %840, %815 : vector<8x32xf32>
    %843 = arith.mulf %839, %838 : vector<8x32xf32>
    %844 = arith.addf %842, %843 : vector<8x32xf32>
    %845 = math.tanh %844 : vector<8x32xf32>
    %846 = arith.mulf %841, %845 : vector<8x32xf32>
    %847 = vector.broadcast %c21_i32 : i32 to vector<8x1xi32>
    %848 = arith.cmpi slt, %847, %2 : vector<8x1xi32>
    %849 = vector.shape_cast %848 : vector<8x1xi1> to vector<8x1xi1>
    %850 = vector.broadcast %849 : vector<8x1xi1> to vector<8x32xi1>
    %851 = arith.select %850, %846, %812 : vector<8x32xi1>, vector<8x32xf32>
    %852 = vector.shape_cast %848 : vector<8x1xi1> to vector<8x1xi1>
    %853 = vector.broadcast %852 : vector<8x1xi1> to vector<8x32xi1>
    %854 = arith.select %853, %844, %815 : vector<8x32xi1>, vector<8x32xf32>
    %cst_157 = arith.constant 0.000000e+00 : f32
    %855 = vector.shape_cast %848 : vector<8x1xi1> to vector<8x1xi1>
    %856 = vector.broadcast %855 : vector<8x1xi1> to vector<8x32xi1>
    %857 = vector.broadcast %cst_157 : f32 to vector<8x32xf32>
    %858 = arith.select %856, %851, %857 : vector<8x32xi1>, vector<8x32xf32>
    %859 = arith.index_cast %c21_i32 : i32 to index
    %c0_158 = arith.constant 0 : index
    %c0_159 = arith.constant 0 : index
    %860 = vector.load %arg5[%859, %c0_158, %c0_159] : memref<32x8x32xf32, #tpu.memory_space<vmem>>, vector<1x8x32xf32>
    %861 = vector.shape_cast %860 : vector<1x8x32xf32> to vector<8x32xf32>
    %862 = vector.shape_cast %858 : vector<8x32xf32> to vector<1x8x32xf32>
    tpu.vector_store %arg5[%859, %c0_158, %c0_159], %862 {strides = array<i32>} : memref<32x8x32xf32, #tpu.memory_space<vmem>>, vector<1x8x32xf32>,
    %c22_i32 = arith.constant 22 : i32
    %863 = arith.index_cast %c22_i32 : i32 to index
    %c0_160 = arith.constant 0 : index
    %c0_161 = arith.constant 0 : index
    %864 = vector.load %arg2[%863, %c0_160, %c0_161] : memref<32x8x16xf32, #tpu.memory_space<vmem>>, vector<1x8x16xf32>
    %865 = vector.shape_cast %864 : vector<1x8x16xf32> to vector<8x16xf32>
    %866 = tpu.concatenate %865, %851 in 1 : vector<8x16xf32>, vector<8x32xf32> -> vector<8x48xf32>
    %cst_162 = arith.constant dense<0.000000e+00> : vector<8x128xf32>
    %867 = tpu.matmul %866, %0, %cst_162 {dimension_numbers = #tpu.dot_dimension_numbers<[1], [0], [0], [1], [0, 0, 1, 1], [], []>} : vector<8x48xf32>, vector<48x128xf32>, vector<8x128xf32> -> vector<8x128xf32>
    %868 = vector.broadcast %1 : vector<1x128xf32> to vector<8x128xf32>
    %869 = arith.addf %867, %868 : vector<8x128xf32>
    %870 = vector.extract_strided_slice %869 {offsets = [0, 0], sizes = [8, 96], strides = [1, 1]} : vector<8x128xf32> to vector<8x96xf32>
    %871 = arith.negf %870 : vector<8x96xf32>
    %872 = math.exp %871 : vector<8x96xf32>
    %cst_163 = arith.constant 1.000000e+00 : f32
    %873 = vector.broadcast %cst_163 : f32 to vector<8x96xf32>
    %874 = arith.addf %873, %872 : vector<8x96xf32>
    %875 = arith.divf %873, %874 : vector<8x96xf32>
    %876 = vector.extract_strided_slice %869 {offsets = [0, 96], sizes = [8, 32], strides = [1, 1]} : vector<8x128xf32> to vector<8x32xf32>
    %877 = math.tanh %876 : vector<8x32xf32>
    %878 = vector.extract_strided_slice %875 {offsets = [0, 0], sizes = [8, 32], strides = [1, 1]} : vector<8x96xf32> to vector<8x32xf32>
    %879 = vector.extract_strided_slice %875 {offsets = [0, 32], sizes = [8, 32], strides = [1, 1]} : vector<8x96xf32> to vector<8x32xf32>
    %880 = vector.extract_strided_slice %875 {offsets = [0, 64], sizes = [8, 32], strides = [1, 1]} : vector<8x96xf32> to vector<8x32xf32>
    %881 = arith.mulf %879, %854 : vector<8x32xf32>
    %882 = arith.mulf %878, %877 : vector<8x32xf32>
    %883 = arith.addf %881, %882 : vector<8x32xf32>
    %884 = math.tanh %883 : vector<8x32xf32>
    %885 = arith.mulf %880, %884 : vector<8x32xf32>
    %886 = vector.broadcast %c22_i32 : i32 to vector<8x1xi32>
    %887 = arith.cmpi slt, %886, %2 : vector<8x1xi32>
    %888 = vector.shape_cast %887 : vector<8x1xi1> to vector<8x1xi1>
    %889 = vector.broadcast %888 : vector<8x1xi1> to vector<8x32xi1>
    %890 = arith.select %889, %885, %851 : vector<8x32xi1>, vector<8x32xf32>
    %891 = vector.shape_cast %887 : vector<8x1xi1> to vector<8x1xi1>
    %892 = vector.broadcast %891 : vector<8x1xi1> to vector<8x32xi1>
    %893 = arith.select %892, %883, %854 : vector<8x32xi1>, vector<8x32xf32>
    %cst_164 = arith.constant 0.000000e+00 : f32
    %894 = vector.shape_cast %887 : vector<8x1xi1> to vector<8x1xi1>
    %895 = vector.broadcast %894 : vector<8x1xi1> to vector<8x32xi1>
    %896 = vector.broadcast %cst_164 : f32 to vector<8x32xf32>
    %897 = arith.select %895, %890, %896 : vector<8x32xi1>, vector<8x32xf32>
    %898 = arith.index_cast %c22_i32 : i32 to index
    %c0_165 = arith.constant 0 : index
    %c0_166 = arith.constant 0 : index
    %899 = vector.load %arg5[%898, %c0_165, %c0_166] : memref<32x8x32xf32, #tpu.memory_space<vmem>>, vector<1x8x32xf32>
    %900 = vector.shape_cast %899 : vector<1x8x32xf32> to vector<8x32xf32>
    %901 = vector.shape_cast %897 : vector<8x32xf32> to vector<1x8x32xf32>
    tpu.vector_store %arg5[%898, %c0_165, %c0_166], %901 {strides = array<i32>} : memref<32x8x32xf32, #tpu.memory_space<vmem>>, vector<1x8x32xf32>,
    %c23_i32 = arith.constant 23 : i32
    %902 = arith.index_cast %c23_i32 : i32 to index
    %c0_167 = arith.constant 0 : index
    %c0_168 = arith.constant 0 : index
    %903 = vector.load %arg2[%902, %c0_167, %c0_168] : memref<32x8x16xf32, #tpu.memory_space<vmem>>, vector<1x8x16xf32>
    %904 = vector.shape_cast %903 : vector<1x8x16xf32> to vector<8x16xf32>
    %905 = tpu.concatenate %904, %890 in 1 : vector<8x16xf32>, vector<8x32xf32> -> vector<8x48xf32>
    %cst_169 = arith.constant dense<0.000000e+00> : vector<8x128xf32>
    %906 = tpu.matmul %905, %0, %cst_169 {dimension_numbers = #tpu.dot_dimension_numbers<[1], [0], [0], [1], [0, 0, 1, 1], [], []>} : vector<8x48xf32>, vector<48x128xf32>, vector<8x128xf32> -> vector<8x128xf32>
    %907 = vector.broadcast %1 : vector<1x128xf32> to vector<8x128xf32>
    %908 = arith.addf %906, %907 : vector<8x128xf32>
    %909 = vector.extract_strided_slice %908 {offsets = [0, 0], sizes = [8, 96], strides = [1, 1]} : vector<8x128xf32> to vector<8x96xf32>
    %910 = arith.negf %909 : vector<8x96xf32>
    %911 = math.exp %910 : vector<8x96xf32>
    %cst_170 = arith.constant 1.000000e+00 : f32
    %912 = vector.broadcast %cst_170 : f32 to vector<8x96xf32>
    %913 = arith.addf %912, %911 : vector<8x96xf32>
    %914 = arith.divf %912, %913 : vector<8x96xf32>
    %915 = vector.extract_strided_slice %908 {offsets = [0, 96], sizes = [8, 32], strides = [1, 1]} : vector<8x128xf32> to vector<8x32xf32>
    %916 = math.tanh %915 : vector<8x32xf32>
    %917 = vector.extract_strided_slice %914 {offsets = [0, 0], sizes = [8, 32], strides = [1, 1]} : vector<8x96xf32> to vector<8x32xf32>
    %918 = vector.extract_strided_slice %914 {offsets = [0, 32], sizes = [8, 32], strides = [1, 1]} : vector<8x96xf32> to vector<8x32xf32>
    %919 = vector.extract_strided_slice %914 {offsets = [0, 64], sizes = [8, 32], strides = [1, 1]} : vector<8x96xf32> to vector<8x32xf32>
    %920 = arith.mulf %918, %893 : vector<8x32xf32>
    %921 = arith.mulf %917, %916 : vector<8x32xf32>
    %922 = arith.addf %920, %921 : vector<8x32xf32>
    %923 = math.tanh %922 : vector<8x32xf32>
    %924 = arith.mulf %919, %923 : vector<8x32xf32>
    %925 = vector.broadcast %c23_i32 : i32 to vector<8x1xi32>
    %926 = arith.cmpi slt, %925, %2 : vector<8x1xi32>
    %927 = vector.shape_cast %926 : vector<8x1xi1> to vector<8x1xi1>
    %928 = vector.broadcast %927 : vector<8x1xi1> to vector<8x32xi1>
    %929 = arith.select %928, %924, %890 : vector<8x32xi1>, vector<8x32xf32>
    %930 = vector.shape_cast %926 : vector<8x1xi1> to vector<8x1xi1>
    %931 = vector.broadcast %930 : vector<8x1xi1> to vector<8x32xi1>
    %932 = arith.select %931, %922, %893 : vector<8x32xi1>, vector<8x32xf32>
    %cst_171 = arith.constant 0.000000e+00 : f32
    %933 = vector.shape_cast %926 : vector<8x1xi1> to vector<8x1xi1>
    %934 = vector.broadcast %933 : vector<8x1xi1> to vector<8x32xi1>
    %935 = vector.broadcast %cst_171 : f32 to vector<8x32xf32>
    %936 = arith.select %934, %929, %935 : vector<8x32xi1>, vector<8x32xf32>
    %937 = arith.index_cast %c23_i32 : i32 to index
    %c0_172 = arith.constant 0 : index
    %c0_173 = arith.constant 0 : index
    %938 = vector.load %arg5[%937, %c0_172, %c0_173] : memref<32x8x32xf32, #tpu.memory_space<vmem>>, vector<1x8x32xf32>
    %939 = vector.shape_cast %938 : vector<1x8x32xf32> to vector<8x32xf32>
    %940 = vector.shape_cast %936 : vector<8x32xf32> to vector<1x8x32xf32>
    tpu.vector_store %arg5[%937, %c0_172, %c0_173], %940 {strides = array<i32>} : memref<32x8x32xf32, #tpu.memory_space<vmem>>, vector<1x8x32xf32>,
    %c24_i32 = arith.constant 24 : i32
    %941 = arith.index_cast %c24_i32 : i32 to index
    %c0_174 = arith.constant 0 : index
    %c0_175 = arith.constant 0 : index
    %942 = vector.load %arg2[%941, %c0_174, %c0_175] : memref<32x8x16xf32, #tpu.memory_space<vmem>>, vector<1x8x16xf32>
    %943 = vector.shape_cast %942 : vector<1x8x16xf32> to vector<8x16xf32>
    %944 = tpu.concatenate %943, %929 in 1 : vector<8x16xf32>, vector<8x32xf32> -> vector<8x48xf32>
    %cst_176 = arith.constant dense<0.000000e+00> : vector<8x128xf32>
    %945 = tpu.matmul %944, %0, %cst_176 {dimension_numbers = #tpu.dot_dimension_numbers<[1], [0], [0], [1], [0, 0, 1, 1], [], []>} : vector<8x48xf32>, vector<48x128xf32>, vector<8x128xf32> -> vector<8x128xf32>
    %946 = vector.broadcast %1 : vector<1x128xf32> to vector<8x128xf32>
    %947 = arith.addf %945, %946 : vector<8x128xf32>
    %948 = vector.extract_strided_slice %947 {offsets = [0, 0], sizes = [8, 96], strides = [1, 1]} : vector<8x128xf32> to vector<8x96xf32>
    %949 = arith.negf %948 : vector<8x96xf32>
    %950 = math.exp %949 : vector<8x96xf32>
    %cst_177 = arith.constant 1.000000e+00 : f32
    %951 = vector.broadcast %cst_177 : f32 to vector<8x96xf32>
    %952 = arith.addf %951, %950 : vector<8x96xf32>
    %953 = arith.divf %951, %952 : vector<8x96xf32>
    %954 = vector.extract_strided_slice %947 {offsets = [0, 96], sizes = [8, 32], strides = [1, 1]} : vector<8x128xf32> to vector<8x32xf32>
    %955 = math.tanh %954 : vector<8x32xf32>
    %956 = vector.extract_strided_slice %953 {offsets = [0, 0], sizes = [8, 32], strides = [1, 1]} : vector<8x96xf32> to vector<8x32xf32>
    %957 = vector.extract_strided_slice %953 {offsets = [0, 32], sizes = [8, 32], strides = [1, 1]} : vector<8x96xf32> to vector<8x32xf32>
    %958 = vector.extract_strided_slice %953 {offsets = [0, 64], sizes = [8, 32], strides = [1, 1]} : vector<8x96xf32> to vector<8x32xf32>
    %959 = arith.mulf %957, %932 : vector<8x32xf32>
    %960 = arith.mulf %956, %955 : vector<8x32xf32>
    %961 = arith.addf %959, %960 : vector<8x32xf32>
    %962 = math.tanh %961 : vector<8x32xf32>
    %963 = arith.mulf %958, %962 : vector<8x32xf32>
    %964 = vector.broadcast %c24_i32 : i32 to vector<8x1xi32>
    %965 = arith.cmpi slt, %964, %2 : vector<8x1xi32>
    %966 = vector.shape_cast %965 : vector<8x1xi1> to vector<8x1xi1>
    %967 = vector.broadcast %966 : vector<8x1xi1> to vector<8x32xi1>
    %968 = arith.select %967, %963, %929 : vector<8x32xi1>, vector<8x32xf32>
    %969 = vector.shape_cast %965 : vector<8x1xi1> to vector<8x1xi1>
    %970 = vector.broadcast %969 : vector<8x1xi1> to vector<8x32xi1>
    %971 = arith.select %970, %961, %932 : vector<8x32xi1>, vector<8x32xf32>
    %cst_178 = arith.constant 0.000000e+00 : f32
    %972 = vector.shape_cast %965 : vector<8x1xi1> to vector<8x1xi1>
    %973 = vector.broadcast %972 : vector<8x1xi1> to vector<8x32xi1>
    %974 = vector.broadcast %cst_178 : f32 to vector<8x32xf32>
    %975 = arith.select %973, %968, %974 : vector<8x32xi1>, vector<8x32xf32>
    %976 = arith.index_cast %c24_i32 : i32 to index
    %c0_179 = arith.constant 0 : index
    %c0_180 = arith.constant 0 : index
    %977 = vector.load %arg5[%976, %c0_179, %c0_180] : memref<32x8x32xf32, #tpu.memory_space<vmem>>, vector<1x8x32xf32>
    %978 = vector.shape_cast %977 : vector<1x8x32xf32> to vector<8x32xf32>
    %979 = vector.shape_cast %975 : vector<8x32xf32> to vector<1x8x32xf32>
    tpu.vector_store %arg5[%976, %c0_179, %c0_180], %979 {strides = array<i32>} : memref<32x8x32xf32, #tpu.memory_space<vmem>>, vector<1x8x32xf32>,
    %c25_i32 = arith.constant 25 : i32
    %980 = arith.index_cast %c25_i32 : i32 to index
    %c0_181 = arith.constant 0 : index
    %c0_182 = arith.constant 0 : index
    %981 = vector.load %arg2[%980, %c0_181, %c0_182] : memref<32x8x16xf32, #tpu.memory_space<vmem>>, vector<1x8x16xf32>
    %982 = vector.shape_cast %981 : vector<1x8x16xf32> to vector<8x16xf32>
    %983 = tpu.concatenate %982, %968 in 1 : vector<8x16xf32>, vector<8x32xf32> -> vector<8x48xf32>
    %cst_183 = arith.constant dense<0.000000e+00> : vector<8x128xf32>
    %984 = tpu.matmul %983, %0, %cst_183 {dimension_numbers = #tpu.dot_dimension_numbers<[1], [0], [0], [1], [0, 0, 1, 1], [], []>} : vector<8x48xf32>, vector<48x128xf32>, vector<8x128xf32> -> vector<8x128xf32>
    %985 = vector.broadcast %1 : vector<1x128xf32> to vector<8x128xf32>
    %986 = arith.addf %984, %985 : vector<8x128xf32>
    %987 = vector.extract_strided_slice %986 {offsets = [0, 0], sizes = [8, 96], strides = [1, 1]} : vector<8x128xf32> to vector<8x96xf32>
    %988 = arith.negf %987 : vector<8x96xf32>
    %989 = math.exp %988 : vector<8x96xf32>
    %cst_184 = arith.constant 1.000000e+00 : f32
    %990 = vector.broadcast %cst_184 : f32 to vector<8x96xf32>
    %991 = arith.addf %990, %989 : vector<8x96xf32>
    %992 = arith.divf %990, %991 : vector<8x96xf32>
    %993 = vector.extract_strided_slice %986 {offsets = [0, 96], sizes = [8, 32], strides = [1, 1]} : vector<8x128xf32> to vector<8x32xf32>
    %994 = math.tanh %993 : vector<8x32xf32>
    %995 = vector.extract_strided_slice %992 {offsets = [0, 0], sizes = [8, 32], strides = [1, 1]} : vector<8x96xf32> to vector<8x32xf32>
    %996 = vector.extract_strided_slice %992 {offsets = [0, 32], sizes = [8, 32], strides = [1, 1]} : vector<8x96xf32> to vector<8x32xf32>
    %997 = vector.extract_strided_slice %992 {offsets = [0, 64], sizes = [8, 32], strides = [1, 1]} : vector<8x96xf32> to vector<8x32xf32>
    %998 = arith.mulf %996, %971 : vector<8x32xf32>
    %999 = arith.mulf %995, %994 : vector<8x32xf32>
    %1000 = arith.addf %998, %999 : vector<8x32xf32>
    %1001 = math.tanh %1000 : vector<8x32xf32>
    %1002 = arith.mulf %997, %1001 : vector<8x32xf32>
    %1003 = vector.broadcast %c25_i32 : i32 to vector<8x1xi32>
    %1004 = arith.cmpi slt, %1003, %2 : vector<8x1xi32>
    %1005 = vector.shape_cast %1004 : vector<8x1xi1> to vector<8x1xi1>
    %1006 = vector.broadcast %1005 : vector<8x1xi1> to vector<8x32xi1>
    %1007 = arith.select %1006, %1002, %968 : vector<8x32xi1>, vector<8x32xf32>
    %1008 = vector.shape_cast %1004 : vector<8x1xi1> to vector<8x1xi1>
    %1009 = vector.broadcast %1008 : vector<8x1xi1> to vector<8x32xi1>
    %1010 = arith.select %1009, %1000, %971 : vector<8x32xi1>, vector<8x32xf32>
    %cst_185 = arith.constant 0.000000e+00 : f32
    %1011 = vector.shape_cast %1004 : vector<8x1xi1> to vector<8x1xi1>
    %1012 = vector.broadcast %1011 : vector<8x1xi1> to vector<8x32xi1>
    %1013 = vector.broadcast %cst_185 : f32 to vector<8x32xf32>
    %1014 = arith.select %1012, %1007, %1013 : vector<8x32xi1>, vector<8x32xf32>
    %1015 = arith.index_cast %c25_i32 : i32 to index
    %c0_186 = arith.constant 0 : index
    %c0_187 = arith.constant 0 : index
    %1016 = vector.load %arg5[%1015, %c0_186, %c0_187] : memref<32x8x32xf32, #tpu.memory_space<vmem>>, vector<1x8x32xf32>
    %1017 = vector.shape_cast %1016 : vector<1x8x32xf32> to vector<8x32xf32>
    %1018 = vector.shape_cast %1014 : vector<8x32xf32> to vector<1x8x32xf32>
    tpu.vector_store %arg5[%1015, %c0_186, %c0_187], %1018 {strides = array<i32>} : memref<32x8x32xf32, #tpu.memory_space<vmem>>, vector<1x8x32xf32>,
    %c26_i32 = arith.constant 26 : i32
    %1019 = arith.index_cast %c26_i32 : i32 to index
    %c0_188 = arith.constant 0 : index
    %c0_189 = arith.constant 0 : index
    %1020 = vector.load %arg2[%1019, %c0_188, %c0_189] : memref<32x8x16xf32, #tpu.memory_space<vmem>>, vector<1x8x16xf32>
    %1021 = vector.shape_cast %1020 : vector<1x8x16xf32> to vector<8x16xf32>
    %1022 = tpu.concatenate %1021, %1007 in 1 : vector<8x16xf32>, vector<8x32xf32> -> vector<8x48xf32>
    %cst_190 = arith.constant dense<0.000000e+00> : vector<8x128xf32>
    %1023 = tpu.matmul %1022, %0, %cst_190 {dimension_numbers = #tpu.dot_dimension_numbers<[1], [0], [0], [1], [0, 0, 1, 1], [], []>} : vector<8x48xf32>, vector<48x128xf32>, vector<8x128xf32> -> vector<8x128xf32>
    %1024 = vector.broadcast %1 : vector<1x128xf32> to vector<8x128xf32>
    %1025 = arith.addf %1023, %1024 : vector<8x128xf32>
    %1026 = vector.extract_strided_slice %1025 {offsets = [0, 0], sizes = [8, 96], strides = [1, 1]} : vector<8x128xf32> to vector<8x96xf32>
    %1027 = arith.negf %1026 : vector<8x96xf32>
    %1028 = math.exp %1027 : vector<8x96xf32>
    %cst_191 = arith.constant 1.000000e+00 : f32
    %1029 = vector.broadcast %cst_191 : f32 to vector<8x96xf32>
    %1030 = arith.addf %1029, %1028 : vector<8x96xf32>
    %1031 = arith.divf %1029, %1030 : vector<8x96xf32>
    %1032 = vector.extract_strided_slice %1025 {offsets = [0, 96], sizes = [8, 32], strides = [1, 1]} : vector<8x128xf32> to vector<8x32xf32>
    %1033 = math.tanh %1032 : vector<8x32xf32>
    %1034 = vector.extract_strided_slice %1031 {offsets = [0, 0], sizes = [8, 32], strides = [1, 1]} : vector<8x96xf32> to vector<8x32xf32>
    %1035 = vector.extract_strided_slice %1031 {offsets = [0, 32], sizes = [8, 32], strides = [1, 1]} : vector<8x96xf32> to vector<8x32xf32>
    %1036 = vector.extract_strided_slice %1031 {offsets = [0, 64], sizes = [8, 32], strides = [1, 1]} : vector<8x96xf32> to vector<8x32xf32>
    %1037 = arith.mulf %1035, %1010 : vector<8x32xf32>
    %1038 = arith.mulf %1034, %1033 : vector<8x32xf32>
    %1039 = arith.addf %1037, %1038 : vector<8x32xf32>
    %1040 = math.tanh %1039 : vector<8x32xf32>
    %1041 = arith.mulf %1036, %1040 : vector<8x32xf32>
    %1042 = vector.broadcast %c26_i32 : i32 to vector<8x1xi32>
    %1043 = arith.cmpi slt, %1042, %2 : vector<8x1xi32>
    %1044 = vector.shape_cast %1043 : vector<8x1xi1> to vector<8x1xi1>
    %1045 = vector.broadcast %1044 : vector<8x1xi1> to vector<8x32xi1>
    %1046 = arith.select %1045, %1041, %1007 : vector<8x32xi1>, vector<8x32xf32>
    %1047 = vector.shape_cast %1043 : vector<8x1xi1> to vector<8x1xi1>
    %1048 = vector.broadcast %1047 : vector<8x1xi1> to vector<8x32xi1>
    %1049 = arith.select %1048, %1039, %1010 : vector<8x32xi1>, vector<8x32xf32>
    %cst_192 = arith.constant 0.000000e+00 : f32
    %1050 = vector.shape_cast %1043 : vector<8x1xi1> to vector<8x1xi1>
    %1051 = vector.broadcast %1050 : vector<8x1xi1> to vector<8x32xi1>
    %1052 = vector.broadcast %cst_192 : f32 to vector<8x32xf32>
    %1053 = arith.select %1051, %1046, %1052 : vector<8x32xi1>, vector<8x32xf32>
    %1054 = arith.index_cast %c26_i32 : i32 to index
    %c0_193 = arith.constant 0 : index
    %c0_194 = arith.constant 0 : index
    %1055 = vector.load %arg5[%1054, %c0_193, %c0_194] : memref<32x8x32xf32, #tpu.memory_space<vmem>>, vector<1x8x32xf32>
    %1056 = vector.shape_cast %1055 : vector<1x8x32xf32> to vector<8x32xf32>
    %1057 = vector.shape_cast %1053 : vector<8x32xf32> to vector<1x8x32xf32>
    tpu.vector_store %arg5[%1054, %c0_193, %c0_194], %1057 {strides = array<i32>} : memref<32x8x32xf32, #tpu.memory_space<vmem>>, vector<1x8x32xf32>,
    %c27_i32 = arith.constant 27 : i32
    %1058 = arith.index_cast %c27_i32 : i32 to index
    %c0_195 = arith.constant 0 : index
    %c0_196 = arith.constant 0 : index
    %1059 = vector.load %arg2[%1058, %c0_195, %c0_196] : memref<32x8x16xf32, #tpu.memory_space<vmem>>, vector<1x8x16xf32>
    %1060 = vector.shape_cast %1059 : vector<1x8x16xf32> to vector<8x16xf32>
    %1061 = tpu.concatenate %1060, %1046 in 1 : vector<8x16xf32>, vector<8x32xf32> -> vector<8x48xf32>
    %cst_197 = arith.constant dense<0.000000e+00> : vector<8x128xf32>
    %1062 = tpu.matmul %1061, %0, %cst_197 {dimension_numbers = #tpu.dot_dimension_numbers<[1], [0], [0], [1], [0, 0, 1, 1], [], []>} : vector<8x48xf32>, vector<48x128xf32>, vector<8x128xf32> -> vector<8x128xf32>
    %1063 = vector.broadcast %1 : vector<1x128xf32> to vector<8x128xf32>
    %1064 = arith.addf %1062, %1063 : vector<8x128xf32>
    %1065 = vector.extract_strided_slice %1064 {offsets = [0, 0], sizes = [8, 96], strides = [1, 1]} : vector<8x128xf32> to vector<8x96xf32>
    %1066 = arith.negf %1065 : vector<8x96xf32>
    %1067 = math.exp %1066 : vector<8x96xf32>
    %cst_198 = arith.constant 1.000000e+00 : f32
    %1068 = vector.broadcast %cst_198 : f32 to vector<8x96xf32>
    %1069 = arith.addf %1068, %1067 : vector<8x96xf32>
    %1070 = arith.divf %1068, %1069 : vector<8x96xf32>
    %1071 = vector.extract_strided_slice %1064 {offsets = [0, 96], sizes = [8, 32], strides = [1, 1]} : vector<8x128xf32> to vector<8x32xf32>
    %1072 = math.tanh %1071 : vector<8x32xf32>
    %1073 = vector.extract_strided_slice %1070 {offsets = [0, 0], sizes = [8, 32], strides = [1, 1]} : vector<8x96xf32> to vector<8x32xf32>
    %1074 = vector.extract_strided_slice %1070 {offsets = [0, 32], sizes = [8, 32], strides = [1, 1]} : vector<8x96xf32> to vector<8x32xf32>
    %1075 = vector.extract_strided_slice %1070 {offsets = [0, 64], sizes = [8, 32], strides = [1, 1]} : vector<8x96xf32> to vector<8x32xf32>
    %1076 = arith.mulf %1074, %1049 : vector<8x32xf32>
    %1077 = arith.mulf %1073, %1072 : vector<8x32xf32>
    %1078 = arith.addf %1076, %1077 : vector<8x32xf32>
    %1079 = math.tanh %1078 : vector<8x32xf32>
    %1080 = arith.mulf %1075, %1079 : vector<8x32xf32>
    %1081 = vector.broadcast %c27_i32 : i32 to vector<8x1xi32>
    %1082 = arith.cmpi slt, %1081, %2 : vector<8x1xi32>
    %1083 = vector.shape_cast %1082 : vector<8x1xi1> to vector<8x1xi1>
    %1084 = vector.broadcast %1083 : vector<8x1xi1> to vector<8x32xi1>
    %1085 = arith.select %1084, %1080, %1046 : vector<8x32xi1>, vector<8x32xf32>
    %1086 = vector.shape_cast %1082 : vector<8x1xi1> to vector<8x1xi1>
    %1087 = vector.broadcast %1086 : vector<8x1xi1> to vector<8x32xi1>
    %1088 = arith.select %1087, %1078, %1049 : vector<8x32xi1>, vector<8x32xf32>
    %cst_199 = arith.constant 0.000000e+00 : f32
    %1089 = vector.shape_cast %1082 : vector<8x1xi1> to vector<8x1xi1>
    %1090 = vector.broadcast %1089 : vector<8x1xi1> to vector<8x32xi1>
    %1091 = vector.broadcast %cst_199 : f32 to vector<8x32xf32>
    %1092 = arith.select %1090, %1085, %1091 : vector<8x32xi1>, vector<8x32xf32>
    %1093 = arith.index_cast %c27_i32 : i32 to index
    %c0_200 = arith.constant 0 : index
    %c0_201 = arith.constant 0 : index
    %1094 = vector.load %arg5[%1093, %c0_200, %c0_201] : memref<32x8x32xf32, #tpu.memory_space<vmem>>, vector<1x8x32xf32>
    %1095 = vector.shape_cast %1094 : vector<1x8x32xf32> to vector<8x32xf32>
    %1096 = vector.shape_cast %1092 : vector<8x32xf32> to vector<1x8x32xf32>
    tpu.vector_store %arg5[%1093, %c0_200, %c0_201], %1096 {strides = array<i32>} : memref<32x8x32xf32, #tpu.memory_space<vmem>>, vector<1x8x32xf32>,
    %c28_i32 = arith.constant 28 : i32
    %1097 = arith.index_cast %c28_i32 : i32 to index
    %c0_202 = arith.constant 0 : index
    %c0_203 = arith.constant 0 : index
    %1098 = vector.load %arg2[%1097, %c0_202, %c0_203] : memref<32x8x16xf32, #tpu.memory_space<vmem>>, vector<1x8x16xf32>
    %1099 = vector.shape_cast %1098 : vector<1x8x16xf32> to vector<8x16xf32>
    %1100 = tpu.concatenate %1099, %1085 in 1 : vector<8x16xf32>, vector<8x32xf32> -> vector<8x48xf32>
    %cst_204 = arith.constant dense<0.000000e+00> : vector<8x128xf32>
    %1101 = tpu.matmul %1100, %0, %cst_204 {dimension_numbers = #tpu.dot_dimension_numbers<[1], [0], [0], [1], [0, 0, 1, 1], [], []>} : vector<8x48xf32>, vector<48x128xf32>, vector<8x128xf32> -> vector<8x128xf32>
    %1102 = vector.broadcast %1 : vector<1x128xf32> to vector<8x128xf32>
    %1103 = arith.addf %1101, %1102 : vector<8x128xf32>
    %1104 = vector.extract_strided_slice %1103 {offsets = [0, 0], sizes = [8, 96], strides = [1, 1]} : vector<8x128xf32> to vector<8x96xf32>
    %1105 = arith.negf %1104 : vector<8x96xf32>
    %1106 = math.exp %1105 : vector<8x96xf32>
    %cst_205 = arith.constant 1.000000e+00 : f32
    %1107 = vector.broadcast %cst_205 : f32 to vector<8x96xf32>
    %1108 = arith.addf %1107, %1106 : vector<8x96xf32>
    %1109 = arith.divf %1107, %1108 : vector<8x96xf32>
    %1110 = vector.extract_strided_slice %1103 {offsets = [0, 96], sizes = [8, 32], strides = [1, 1]} : vector<8x128xf32> to vector<8x32xf32>
    %1111 = math.tanh %1110 : vector<8x32xf32>
    %1112 = vector.extract_strided_slice %1109 {offsets = [0, 0], sizes = [8, 32], strides = [1, 1]} : vector<8x96xf32> to vector<8x32xf32>
    %1113 = vector.extract_strided_slice %1109 {offsets = [0, 32], sizes = [8, 32], strides = [1, 1]} : vector<8x96xf32> to vector<8x32xf32>
    %1114 = vector.extract_strided_slice %1109 {offsets = [0, 64], sizes = [8, 32], strides = [1, 1]} : vector<8x96xf32> to vector<8x32xf32>
    %1115 = arith.mulf %1113, %1088 : vector<8x32xf32>
    %1116 = arith.mulf %1112, %1111 : vector<8x32xf32>
    %1117 = arith.addf %1115, %1116 : vector<8x32xf32>
    %1118 = math.tanh %1117 : vector<8x32xf32>
    %1119 = arith.mulf %1114, %1118 : vector<8x32xf32>
    %1120 = vector.broadcast %c28_i32 : i32 to vector<8x1xi32>
    %1121 = arith.cmpi slt, %1120, %2 : vector<8x1xi32>
    %1122 = vector.shape_cast %1121 : vector<8x1xi1> to vector<8x1xi1>
    %1123 = vector.broadcast %1122 : vector<8x1xi1> to vector<8x32xi1>
    %1124 = arith.select %1123, %1119, %1085 : vector<8x32xi1>, vector<8x32xf32>
    %1125 = vector.shape_cast %1121 : vector<8x1xi1> to vector<8x1xi1>
    %1126 = vector.broadcast %1125 : vector<8x1xi1> to vector<8x32xi1>
    %1127 = arith.select %1126, %1117, %1088 : vector<8x32xi1>, vector<8x32xf32>
    %cst_206 = arith.constant 0.000000e+00 : f32
    %1128 = vector.shape_cast %1121 : vector<8x1xi1> to vector<8x1xi1>
    %1129 = vector.broadcast %1128 : vector<8x1xi1> to vector<8x32xi1>
    %1130 = vector.broadcast %cst_206 : f32 to vector<8x32xf32>
    %1131 = arith.select %1129, %1124, %1130 : vector<8x32xi1>, vector<8x32xf32>
    %1132 = arith.index_cast %c28_i32 : i32 to index
    %c0_207 = arith.constant 0 : index
    %c0_208 = arith.constant 0 : index
    %1133 = vector.load %arg5[%1132, %c0_207, %c0_208] : memref<32x8x32xf32, #tpu.memory_space<vmem>>, vector<1x8x32xf32>
    %1134 = vector.shape_cast %1133 : vector<1x8x32xf32> to vector<8x32xf32>
    %1135 = vector.shape_cast %1131 : vector<8x32xf32> to vector<1x8x32xf32>
    tpu.vector_store %arg5[%1132, %c0_207, %c0_208], %1135 {strides = array<i32>} : memref<32x8x32xf32, #tpu.memory_space<vmem>>, vector<1x8x32xf32>,
    %c29_i32 = arith.constant 29 : i32
    %1136 = arith.index_cast %c29_i32 : i32 to index
    %c0_209 = arith.constant 0 : index
    %c0_210 = arith.constant 0 : index
    %1137 = vector.load %arg2[%1136, %c0_209, %c0_210] : memref<32x8x16xf32, #tpu.memory_space<vmem>>, vector<1x8x16xf32>
    %1138 = vector.shape_cast %1137 : vector<1x8x16xf32> to vector<8x16xf32>
    %1139 = tpu.concatenate %1138, %1124 in 1 : vector<8x16xf32>, vector<8x32xf32> -> vector<8x48xf32>
    %cst_211 = arith.constant dense<0.000000e+00> : vector<8x128xf32>
    %1140 = tpu.matmul %1139, %0, %cst_211 {dimension_numbers = #tpu.dot_dimension_numbers<[1], [0], [0], [1], [0, 0, 1, 1], [], []>} : vector<8x48xf32>, vector<48x128xf32>, vector<8x128xf32> -> vector<8x128xf32>
    %1141 = vector.broadcast %1 : vector<1x128xf32> to vector<8x128xf32>
    %1142 = arith.addf %1140, %1141 : vector<8x128xf32>
    %1143 = vector.extract_strided_slice %1142 {offsets = [0, 0], sizes = [8, 96], strides = [1, 1]} : vector<8x128xf32> to vector<8x96xf32>
    %1144 = arith.negf %1143 : vector<8x96xf32>
    %1145 = math.exp %1144 : vector<8x96xf32>
    %cst_212 = arith.constant 1.000000e+00 : f32
    %1146 = vector.broadcast %cst_212 : f32 to vector<8x96xf32>
    %1147 = arith.addf %1146, %1145 : vector<8x96xf32>
    %1148 = arith.divf %1146, %1147 : vector<8x96xf32>
    %1149 = vector.extract_strided_slice %1142 {offsets = [0, 96], sizes = [8, 32], strides = [1, 1]} : vector<8x128xf32> to vector<8x32xf32>
    %1150 = math.tanh %1149 : vector<8x32xf32>
    %1151 = vector.extract_strided_slice %1148 {offsets = [0, 0], sizes = [8, 32], strides = [1, 1]} : vector<8x96xf32> to vector<8x32xf32>
    %1152 = vector.extract_strided_slice %1148 {offsets = [0, 32], sizes = [8, 32], strides = [1, 1]} : vector<8x96xf32> to vector<8x32xf32>
    %1153 = vector.extract_strided_slice %1148 {offsets = [0, 64], sizes = [8, 32], strides = [1, 1]} : vector<8x96xf32> to vector<8x32xf32>
    %1154 = arith.mulf %1152, %1127 : vector<8x32xf32>
    %1155 = arith.mulf %1151, %1150 : vector<8x32xf32>
    %1156 = arith.addf %1154, %1155 : vector<8x32xf32>
    %1157 = math.tanh %1156 : vector<8x32xf32>
    %1158 = arith.mulf %1153, %1157 : vector<8x32xf32>
    %1159 = vector.broadcast %c29_i32 : i32 to vector<8x1xi32>
    %1160 = arith.cmpi slt, %1159, %2 : vector<8x1xi32>
    %1161 = vector.shape_cast %1160 : vector<8x1xi1> to vector<8x1xi1>
    %1162 = vector.broadcast %1161 : vector<8x1xi1> to vector<8x32xi1>
    %1163 = arith.select %1162, %1158, %1124 : vector<8x32xi1>, vector<8x32xf32>
    %1164 = vector.shape_cast %1160 : vector<8x1xi1> to vector<8x1xi1>
    %1165 = vector.broadcast %1164 : vector<8x1xi1> to vector<8x32xi1>
    %1166 = arith.select %1165, %1156, %1127 : vector<8x32xi1>, vector<8x32xf32>
    %cst_213 = arith.constant 0.000000e+00 : f32
    %1167 = vector.shape_cast %1160 : vector<8x1xi1> to vector<8x1xi1>
    %1168 = vector.broadcast %1167 : vector<8x1xi1> to vector<8x32xi1>
    %1169 = vector.broadcast %cst_213 : f32 to vector<8x32xf32>
    %1170 = arith.select %1168, %1163, %1169 : vector<8x32xi1>, vector<8x32xf32>
    %1171 = arith.index_cast %c29_i32 : i32 to index
    %c0_214 = arith.constant 0 : index
    %c0_215 = arith.constant 0 : index
    %1172 = vector.load %arg5[%1171, %c0_214, %c0_215] : memref<32x8x32xf32, #tpu.memory_space<vmem>>, vector<1x8x32xf32>
    %1173 = vector.shape_cast %1172 : vector<1x8x32xf32> to vector<8x32xf32>
    %1174 = vector.shape_cast %1170 : vector<8x32xf32> to vector<1x8x32xf32>
    tpu.vector_store %arg5[%1171, %c0_214, %c0_215], %1174 {strides = array<i32>} : memref<32x8x32xf32, #tpu.memory_space<vmem>>, vector<1x8x32xf32>,
    %c30_i32 = arith.constant 30 : i32
    %1175 = arith.index_cast %c30_i32 : i32 to index
    %c0_216 = arith.constant 0 : index
    %c0_217 = arith.constant 0 : index
    %1176 = vector.load %arg2[%1175, %c0_216, %c0_217] : memref<32x8x16xf32, #tpu.memory_space<vmem>>, vector<1x8x16xf32>
    %1177 = vector.shape_cast %1176 : vector<1x8x16xf32> to vector<8x16xf32>
    %1178 = tpu.concatenate %1177, %1163 in 1 : vector<8x16xf32>, vector<8x32xf32> -> vector<8x48xf32>
    %cst_218 = arith.constant dense<0.000000e+00> : vector<8x128xf32>
    %1179 = tpu.matmul %1178, %0, %cst_218 {dimension_numbers = #tpu.dot_dimension_numbers<[1], [0], [0], [1], [0, 0, 1, 1], [], []>} : vector<8x48xf32>, vector<48x128xf32>, vector<8x128xf32> -> vector<8x128xf32>
    %1180 = vector.broadcast %1 : vector<1x128xf32> to vector<8x128xf32>
    %1181 = arith.addf %1179, %1180 : vector<8x128xf32>
    %1182 = vector.extract_strided_slice %1181 {offsets = [0, 0], sizes = [8, 96], strides = [1, 1]} : vector<8x128xf32> to vector<8x96xf32>
    %1183 = arith.negf %1182 : vector<8x96xf32>
    %1184 = math.exp %1183 : vector<8x96xf32>
    %cst_219 = arith.constant 1.000000e+00 : f32
    %1185 = vector.broadcast %cst_219 : f32 to vector<8x96xf32>
    %1186 = arith.addf %1185, %1184 : vector<8x96xf32>
    %1187 = arith.divf %1185, %1186 : vector<8x96xf32>
    %1188 = vector.extract_strided_slice %1181 {offsets = [0, 96], sizes = [8, 32], strides = [1, 1]} : vector<8x128xf32> to vector<8x32xf32>
    %1189 = math.tanh %1188 : vector<8x32xf32>
    %1190 = vector.extract_strided_slice %1187 {offsets = [0, 0], sizes = [8, 32], strides = [1, 1]} : vector<8x96xf32> to vector<8x32xf32>
    %1191 = vector.extract_strided_slice %1187 {offsets = [0, 32], sizes = [8, 32], strides = [1, 1]} : vector<8x96xf32> to vector<8x32xf32>
    %1192 = vector.extract_strided_slice %1187 {offsets = [0, 64], sizes = [8, 32], strides = [1, 1]} : vector<8x96xf32> to vector<8x32xf32>
    %1193 = arith.mulf %1191, %1166 : vector<8x32xf32>
    %1194 = arith.mulf %1190, %1189 : vector<8x32xf32>
    %1195 = arith.addf %1193, %1194 : vector<8x32xf32>
    %1196 = math.tanh %1195 : vector<8x32xf32>
    %1197 = arith.mulf %1192, %1196 : vector<8x32xf32>
    %1198 = vector.broadcast %c30_i32 : i32 to vector<8x1xi32>
    %1199 = arith.cmpi slt, %1198, %2 : vector<8x1xi32>
    %1200 = vector.shape_cast %1199 : vector<8x1xi1> to vector<8x1xi1>
    %1201 = vector.broadcast %1200 : vector<8x1xi1> to vector<8x32xi1>
    %1202 = arith.select %1201, %1197, %1163 : vector<8x32xi1>, vector<8x32xf32>
    %1203 = vector.shape_cast %1199 : vector<8x1xi1> to vector<8x1xi1>
    %1204 = vector.broadcast %1203 : vector<8x1xi1> to vector<8x32xi1>
    %1205 = arith.select %1204, %1195, %1166 : vector<8x32xi1>, vector<8x32xf32>
    %cst_220 = arith.constant 0.000000e+00 : f32
    %1206 = vector.shape_cast %1199 : vector<8x1xi1> to vector<8x1xi1>
    %1207 = vector.broadcast %1206 : vector<8x1xi1> to vector<8x32xi1>
    %1208 = vector.broadcast %cst_220 : f32 to vector<8x32xf32>
    %1209 = arith.select %1207, %1202, %1208 : vector<8x32xi1>, vector<8x32xf32>
    %1210 = arith.index_cast %c30_i32 : i32 to index
    %c0_221 = arith.constant 0 : index
    %c0_222 = arith.constant 0 : index
    %1211 = vector.load %arg5[%1210, %c0_221, %c0_222] : memref<32x8x32xf32, #tpu.memory_space<vmem>>, vector<1x8x32xf32>
    %1212 = vector.shape_cast %1211 : vector<1x8x32xf32> to vector<8x32xf32>
    %1213 = vector.shape_cast %1209 : vector<8x32xf32> to vector<1x8x32xf32>
    tpu.vector_store %arg5[%1210, %c0_221, %c0_222], %1213 {strides = array<i32>} : memref<32x8x32xf32, #tpu.memory_space<vmem>>, vector<1x8x32xf32>,
    %c31_i32 = arith.constant 31 : i32
    %1214 = arith.index_cast %c31_i32 : i32 to index
    %c0_223 = arith.constant 0 : index
    %c0_224 = arith.constant 0 : index
    %1215 = vector.load %arg2[%1214, %c0_223, %c0_224] : memref<32x8x16xf32, #tpu.memory_space<vmem>>, vector<1x8x16xf32>
    %1216 = vector.shape_cast %1215 : vector<1x8x16xf32> to vector<8x16xf32>
    %1217 = tpu.concatenate %1216, %1202 in 1 : vector<8x16xf32>, vector<8x32xf32> -> vector<8x48xf32>
    %cst_225 = arith.constant dense<0.000000e+00> : vector<8x128xf32>
    %1218 = tpu.matmul %1217, %0, %cst_225 {dimension_numbers = #tpu.dot_dimension_numbers<[1], [0], [0], [1], [0, 0, 1, 1], [], []>} : vector<8x48xf32>, vector<48x128xf32>, vector<8x128xf32> -> vector<8x128xf32>
    %1219 = vector.broadcast %1 : vector<1x128xf32> to vector<8x128xf32>
    %1220 = arith.addf %1218, %1219 : vector<8x128xf32>
    %1221 = vector.extract_strided_slice %1220 {offsets = [0, 0], sizes = [8, 96], strides = [1, 1]} : vector<8x128xf32> to vector<8x96xf32>
    %1222 = arith.negf %1221 : vector<8x96xf32>
    %1223 = math.exp %1222 : vector<8x96xf32>
    %cst_226 = arith.constant 1.000000e+00 : f32
    %1224 = vector.broadcast %cst_226 : f32 to vector<8x96xf32>
    %1225 = arith.addf %1224, %1223 : vector<8x96xf32>
    %1226 = arith.divf %1224, %1225 : vector<8x96xf32>
    %1227 = vector.extract_strided_slice %1220 {offsets = [0, 96], sizes = [8, 32], strides = [1, 1]} : vector<8x128xf32> to vector<8x32xf32>
    %1228 = math.tanh %1227 : vector<8x32xf32>
    %1229 = vector.extract_strided_slice %1226 {offsets = [0, 0], sizes = [8, 32], strides = [1, 1]} : vector<8x96xf32> to vector<8x32xf32>
    %1230 = vector.extract_strided_slice %1226 {offsets = [0, 32], sizes = [8, 32], strides = [1, 1]} : vector<8x96xf32> to vector<8x32xf32>
    %1231 = vector.extract_strided_slice %1226 {offsets = [0, 64], sizes = [8, 32], strides = [1, 1]} : vector<8x96xf32> to vector<8x32xf32>
    %1232 = arith.mulf %1230, %1205 : vector<8x32xf32>
    %1233 = arith.mulf %1229, %1228 : vector<8x32xf32>
    %1234 = arith.addf %1232, %1233 : vector<8x32xf32>
    %1235 = math.tanh %1234 : vector<8x32xf32>
    %1236 = arith.mulf %1231, %1235 : vector<8x32xf32>
    %1237 = vector.broadcast %c31_i32 : i32 to vector<8x1xi32>
    %1238 = arith.cmpi slt, %1237, %2 : vector<8x1xi32>
    %1239 = vector.shape_cast %1238 : vector<8x1xi1> to vector<8x1xi1>
    %1240 = vector.broadcast %1239 : vector<8x1xi1> to vector<8x32xi1>
    %1241 = arith.select %1240, %1236, %1202 : vector<8x32xi1>, vector<8x32xf32>
    %1242 = vector.shape_cast %1238 : vector<8x1xi1> to vector<8x1xi1>
    %1243 = vector.broadcast %1242 : vector<8x1xi1> to vector<8x32xi1>
    %1244 = arith.select %1243, %1234, %1205 : vector<8x32xi1>, vector<8x32xf32>
    %cst_227 = arith.constant 0.000000e+00 : f32
    %1245 = vector.shape_cast %1238 : vector<8x1xi1> to vector<8x1xi1>
    %1246 = vector.broadcast %1245 : vector<8x1xi1> to vector<8x32xi1>
    %1247 = vector.broadcast %cst_227 : f32 to vector<8x32xf32>
    %1248 = arith.select %1246, %1241, %1247 : vector<8x32xi1>, vector<8x32xf32>
    %1249 = arith.index_cast %c31_i32 : i32 to index
    %c0_228 = arith.constant 0 : index
    %c0_229 = arith.constant 0 : index
    %1250 = vector.load %arg5[%1249, %c0_228, %c0_229] : memref<32x8x32xf32, #tpu.memory_space<vmem>>, vector<1x8x32xf32>
    %1251 = vector.shape_cast %1250 : vector<1x8x32xf32> to vector<8x32xf32>
    %1252 = vector.shape_cast %1248 : vector<8x32xf32> to vector<1x8x32xf32>
    tpu.vector_store %arg5[%1249, %c0_228, %c0_229], %1252 {strides = array<i32>} : memref<32x8x32xf32, #tpu.memory_space<vmem>>, vector<1x8x32xf32>,
    %c32_i32 = arith.constant 32 : i32
    %c0_230 = arith.constant 0 : index
    %c0_231 = arith.constant 0 : index
    %1253 = vector.load %arg6[%c0_230, %c0_231] : memref<8x32xf32, #tpu.memory_space<vmem>>, vector<8x32xf32>
    tpu.vector_store %arg6[%c0_230, %c0_231], %1241 {strides = array<i32>} : memref<8x32xf32, #tpu.memory_space<vmem>>, vector<8x32xf32>,
    %c0_232 = arith.constant 0 : index
    %c0_233 = arith.constant 0 : index
    %1254 = vector.load %arg7[%c0_232, %c0_233] : memref<8x32xf32, #tpu.memory_space<vmem>>, vector<8x32xf32>
    tpu.vector_store %arg7[%c0_232, %c0_233], %1244 {strides = array<i32>} : memref<8x32xf32, #tpu.memory_space<vmem>>, vector<8x32xf32>,
    return
  }
  func.func @transform_0(%arg0: i32) -> (i32, i32) {
    %c0_i32 = arith.constant 0 : i32
    %c0_i32_0 = arith.constant 0 : i32
    %c0_i32_1 = arith.constant 0 : i32
    return %c0_i32, %c0_i32_0 : i32, i32
  }
  func.func @transform_1(%arg0: i32) -> (i32, i32, i32) {
    %c0_i32 = arith.constant 0 : i32
    %c0_i32_0 = arith.constant 0 : i32
    %c0_i32_1 = arith.constant 0 : i32
    %c0_i32_2 = arith.constant 0 : i32
    return %c0_i32, %c0_i32_0, %c0_i32_1 : i32, i32, i32
  }
  func.func @transform_2(%arg0: i32) -> (i32, i32) {
    %c0_i32 = arith.constant 0 : i32
    %c0_i32_0 = arith.constant 0 : i32
    %c0_i32_1 = arith.constant 0 : i32
    return %c0_i32, %c0_i32_0 : i32, i32
  }
  func.func @transform_3(%arg0: i32) -> (i32, i32) {
    %c0_i32 = arith.constant 0 : i32
    %c0_i32_0 = arith.constant 0 : i32
    %c0_i32_1 = arith.constant 0 : i32
    return %c0_i32, %c0_i32_0 : i32, i32
  }
  func.func @transform_4(%arg0: i32) -> (i32, i32, i32) {
    %c0_i32 = arith.constant 0 : i32
    %c0_i32_0 = arith.constant 0 : i32
    %c0_i32_1 = arith.constant 0 : i32
    %c0_i32_2 = arith.constant 0 : i32
    return %c0_i32, %c0_i32_0, %c0_i32_1 : i32, i32, i32
  }
  func.func @transform_5(%arg0: i32) -> (i32, i32) {
    %c0_i32 = arith.constant 0 : i32
    %c0_i32_0 = arith.constant 0 : i32
    %c0_i32_1 = arith.constant 0 : i32
    return %c0_i32, %c0_i32_0 : i32, i32
  }
  func.func @transform_6(%arg0: i32) -> (i32, i32) {
    %c0_i32 = arith.constant 0 : i32
    %c0_i32_0 = arith.constant 0 : i32
    %c0_i32_1 = arith.constant 0 : i32
    return %c0_i32, %c0_i32_0 : i32, i32
  }
}

</mosaic_0001>

<bundles_post_ra>
// kernel: tpu_custom_call.1
= control target key start
LH: loop header
LB: loop body
LE: loop exit
PB: predicated region body
PF: predicated region fallthrough
CT: control target
= control target key end

     0   :  { %12 = vsyncpa [#allocation3], 0  ;;  %v6616_v3 = vmov 0.0|0.0   ;;  %vm5326_vm0 = vmmov 0   ;;  %v6619_v6 = vmov 0.0   ;;  %s6601_s0 = inlined_call_operand.vmem [shape: s32[8,1], index: 0, kind: input, shape index: {}]   ;;  %s6602_s1 = inlined_call_operand.vmem [shape: f32[32,8,16], index: 1, kind: input, shape index: {}]   ;;  %s6603_s2 = inlined_call_operand.vmem [shape: f32[48,128], index: 2, kind: input, shape index: {}]   ;;  %s6604_s3 = inlined_call_operand.vmem [shape: f32[1,128], index: 3, kind: input, shape index: {}]   ;;  %s6605_s4 = inlined_call_operand.hbm [shape: f32[32,8,32], index: 4, kind: output, shape index: {0}]   ;;  %s6606_s5 = inlined_call_operand.hbm [shape: f32[8,32], index: 5, kind: output, shape index: {1}]   ;;  %s6607_s6 = inlined_call_operand.hbm [shape: f32[8,32], index: 6, kind: output, shape index: {2}]  }
   0x1   :  { %v22_v0 = vld [vmem:[%s6603_s2] sm:$0xff]  ;;  %v23_v1 = vld [vmem:[%s6603_s2 + $0x8] sm:$0xff]  ;;  %v24_v2 = vld [vmem:[%s6603_s2 + $0x10] sm:$0xff]  ;;  %4692 = vmatprep.subr.bf16.mxu0 %v6616_v3  ;;  %4224 = vmatprep.mubr.msk.f32.mxu0 %vm5326_vm0, %v6619_v6 }
   0x2   :  { %v5383_v4 = vpack.c.bf16 %v23_v1, %v22_v0  ;;  %v25_v5 = vld [vmem:[%s6603_s2 + $0x18] sm:$0xff]  ;;  %4701 = vmatprep.subr.bf16.mxu1 %v6616_v3  ;;  %4239 = vmatprep.mubr.msk.f32.mxu1 %vm5326_vm0, %v6619_v6 }
   0x3   :  { %13 = vsyncpa [#allocation5], 0  ;;  %v5394_v7 = vpack.c.bf16 %v25_v5, %v24_v2  ;;  %v26_v8 = vld [vmem:[%s6603_s2 + $0x20] sm:$0xff]  ;;  %v27_v9 = vld [vmem:[%s6603_s2 + $0x28] sm:$0xff]  ;;  %vm31_vm1 = vcmask 130048   ;;  %vm39_vm2 = vcmask 392192  }
   0x4   :  { %4694 = vmatpush3.bf16.msra.mxu0 %v5383_v4  ;;  %4703 = vmatpush3.bf16.msra.mxu1 %v5383_v4  ;;  %v5406_v10 = vpack.c.bf16 %v27_v9, %v26_v8  ;;  %v30_v11 = vld [vmem:[%s6602_s1] sm:$0xff]  ;;  %v5328_v14 = vmov 0   ;;  %s5329_s14 = smov 32   ;;  %s5330_s15 = smov 80   ;;  %v3895_v35 = vld [vmem:[%s6602_s1 + $0x8] sm:$0xff]  ;;  %v3898_v58 = vld [vmem:[%s6602_s1 + $0x10] sm:$0xff] }
   0x5   :  { %4695 = vmatprep.subr.bf16.mxu0 %v6616_v3  ;;  %4704 = vmatprep.subr.bf16.mxu1 %v6616_v3  ;;  %v32_v12 = vsel %vm31_vm1, %v30_v11, 0.0  ;;  %v5431_v13 = vld [vmem:[%s6601_s0] sm:$0xff]  ;;  %s5334_s16 = smov [#allocation2]   ;;  %s5335_s18 = smov [#allocation6]  }
   0x6   :  { %4993 = vset.pattern.permute.xlu1 %v5328_v14  ;;  %vm137_vm3 = vcmp.gt.s32.totalorder %v5431_v13, 0  ;;  %4994 = vset.pattern.permute.xlu0 %v5328_v14  ;;  %v5440_v16 = vld [vmem:[%s6604_s3] ss:$0 sm:$0xff]  ;;  %vm254_vm5 = vcmp.gt.s32.totalorder %v5431_v13, 1  ;;  %vm373_vm7 = vcmp.gt.s32.totalorder %v5431_v13, 2  ;;  %vm492_vm9 = vcmp.gt.s32.totalorder %v5431_v13, 3 }
   0x7   :  { %v138_v15 = vsel %vm137_vm3, 1, %v5328_v14  ;;  %v255_v42 = vsel %vm254_vm5, 1, %v5328_v14  ;;  %v374_v1 = vsel %vm373_vm7, 1, %v5328_v14  ;;  %vm611_vm11 = vcmp.gt.s32.totalorder %v5431_v13, 4  ;;  %s3854_s17 = sshll.u32 %s5334_s16, 4  ;;  %s3877_s19 = sshll.u32 %s5335_s18, 4  ;;  %s6556_s17 = int_to_ptr.vmem [resolvable:$true] %s3854_s17  ;;  %s3878_s19 = int_to_ptr.vmem [resolvable:$true] %s3877_s19 }
   0x8   :  { %4697 = vmatpush3.bf16.msra.mxu0 %v5394_v7  ;;  %4706 = vmatpush3.bf16.msra.mxu1 %v5394_v7  ;;  %vm730_vm13 = vcmp.gt.s32.totalorder %v5431_v13, 5  ;;  %vm849_vm15 = vcmp.gt.s32.totalorder %v5431_v13, 6  ;;  %vm1087_vm7 = vcmp.gt.s32.totalorder %v5431_v13, 8 }
   0x9   :  { %4698 = vmatprep.subr.bf16.mxu0 %v6616_v3  ;;  %4707 = vmatprep.subr.bf16.mxu1 %v6616_v3 }
   0xa   :  { %140 = vperm.xlu1 %4993, %v138_v15  }
   0xc   :  { %4700 = vmatpush3.bf16.msra.mxu0 %v5406_v10  ;;  %4709 = vmatpush3.bf16.msra.mxu1 %v5406_v10 }
   0xd   :  { %4710 = vmatprep.subr.bf16.mxu0 %v6616_v3  ;;  %4719 = vmatprep.subr.bf16.mxu1 %v6616_v3 }
   0xf   :  { %4225 = vmatmul.mubr.msk.f32.vlgmr.msra.gmra.mrb[0].mxu0 %vm39_vm2, %v32_v12 }
  0x10   :  { %4712 = vmatpush3.bf16.msra.mxu0 %v5383_v4  ;;  %4254 = vmatprep.mubr.msk.f32.mxu0 %vm5326_vm0, %v6619_v6 }
  0x11   :  { %4713 = vmatprep.subr.bf16.mxu0 %v6616_v3 }
  0x14   :  { %4715 = vmatpush3.bf16.msra.mxu0 %v5394_v7 }
  0x15   :  { %4716 = vmatprep.subr.bf16.mxu0 %v6616_v3 }
  0x18   :  { %4718 = vmatpush3.bf16.msra.mxu0 %v5406_v10 }
  0x19   :  { %4728 = vmatprep.subr.bf16.mxu0 %v6616_v3 }
  0x89   :  { %v141_v31 = vpop.permute.xlu1 %140 }
  0x8a   :  { %vm142_vm4 = vcmp.eq.s32.totalorder %v141_v31, 1 }
  0xe2   :  { %v109_v17 = vpop.f32.mrb[0].mxu0 }
  0xe3   :  { %v110_v18 = vadd.f32 %v5440_v16, %v109_v17  ;;  %v4226_v19 = vpop.f32.mrb[1].mxu0 }
  0xe5   :  { %4995 = vtanh.f32 %v110_v18  ;;  %v3894_v21 = vmul.f32 -1.442695, %v110_v18 }
  0xe7   :  { %4997 = vpow2.f32 %v3894_v21 }
  0xef   :  { %v4996_v20 = vpop.eup %4995 }
  0xf0   :  { %122 = vrot.lane.b32.xlu0 %v4996_v20, %s5329_s14 }
  0xf1   :  { %v4998_v22 = vpop.eup %4997 }
  0xf2   :  { %v116_v23 = vadd.f32 1.0, %v4998_v22 }
  0xf4   :  { %4999 = vrcp.f32 %v116_v23 }
  0xfe   :  { %v5000_v24 = vpop.eup %4999 }
  0xff   :  { %v120_v27 = vmul.f32 0.0, %v5000_v24 }
 0x162   :  { %v123_v25 = vpop.permute.xlu0 %122 }
 0x163   :  { %v125_v26 = vmul.f32 %v5000_v24, %v123_v25  ;;  %v3901_v25 = vld [vmem:[%s6602_s1 + $0x18] sm:$0xff] }
 0x165   :  { %127 = vrot.lane.b32.xlu0 %v125_v26, %s5329_s14 }
 0x1d7   :  { %v128_v28 = vpop.permute.xlu0 %127 }
 0x1d8   :  { %v130_v29 = vadd.f32 %v128_v28, %v120_v27 }
 0x1da   :  { %5001 = vtanh.f32 %v130_v29  ;;  %v144_v49 = vsel %vm142_vm4, %v130_v29, 0.0 }
 0x1e4   :  { %v5002_v30 = vpop.eup %5001 }
 0x1e5   :  { %133 = vrot.lane.b32.xlu1 %v5002_v30, %s5329_s14 }
 0x257   :  { %v134_v32 = vpop.permute.xlu1 %133 }
 0x258   :  { %v136_v33 = vmul.f32 %v5000_v24, %v134_v32  ;;  %v493_v32 = vsel %vm492_vm9, 1, %v5328_v14 }
 0x25a   :  { %v5447_v34 = vsel %vm142_vm4, %v136_v33, 0.0  ;;  %vm968_vm4 = vcmp.gt.s32.totalorder %v5431_v13, 7 }
 0x25b   :  { %153 = vrot.lane.b32.xlu0 %v5447_v34, %s5330_s15 }
 0x2cd   :  { %v154_v36 = vpop.permute.xlu0 %153 }
 0x2ce   :  { %v156_v37 = vsel %vm31_vm1, %v3895_v35, %v154_v36 }
 0x2cf   :  { %4240 = vmatmul.mubr.msk.f32.vlgmr.msra.gmra.mrb[0].mxu1 %vm39_vm2, %v156_v37 }
 0x2d0   :  { %4721 = vmatpush3.bf16.msra.mxu1 %v5383_v4  ;;  %4269 = vmatprep.mubr.msk.f32.mxu1 %vm5326_vm0, %v6619_v6 }
 0x2d1   :  { %4722 = vmatprep.subr.bf16.mxu1 %v6616_v3 }
 0x2d4   :  { %4724 = vmatpush3.bf16.msra.mxu1 %v5394_v7 }
 0x2d5   :  { %4725 = vmatprep.subr.bf16.mxu1 %v6616_v3 }
 0x2d8   :  { %4727 = vmatpush3.bf16.msra.mxu1 %v5406_v10 }
 0x2d9   :  { %4737 = vmatprep.subr.bf16.mxu1 %v6616_v3 }
 0x3a2   :  { %v226_v38 = vpop.f32.mrb[0].mxu1 }
 0x3a3   :  { %v227_v39 = vadd.f32 %v5440_v16, %v226_v38  ;;  %v4241_v40 = vpop.f32.mrb[1].mxu1 }
 0x3a5   :  { %5003 = vtanh.f32 %v227_v39  ;;  %v3897_v43 = vmul.f32 -1.442695, %v227_v39 }
 0x3a7   :  { %5005 = vpow2.f32 %v3897_v43 }
 0x3af   :  { %v5004_v41 = vpop.eup %5003 }
 0x3b0   :  { %239 = vrot.lane.b32.xlu1 %v5004_v41, %s5329_s14 }
 0x3b1   :  { %v5006_v44 = vpop.eup %5005 }
 0x3b2   :  { %v233_v45 = vadd.f32 1.0, %v5006_v44 }
 0x3b4   :  { %257 = vperm.xlu1 %4993, %v255_v42   ;;  %5007 = vrcp.f32 %v233_v45 }
 0x3be   :  { %v5008_v46 = vpop.eup %5007 }
 0x3bf   :  { %v237_v50 = vmul.f32 %v5008_v46, %v144_v49 }
 0x422   :  { %v240_v47 = vpop.permute.xlu1 %239 }
 0x423   :  { %v242_v48 = vmul.f32 %v5008_v46, %v240_v47 }
 0x425   :  { %244 = vrot.lane.b32.xlu0 %v242_v48, %s5329_s14 }
 0x433   :  { %v5471_v54 = vpop.permute.xlu1 %257 }
 0x434   :  { %vm6629_vm6 = vcmp.eq.s32.totalorder %v5471_v54, 1 }
 0x497   :  { %v245_v51 = vpop.permute.xlu0 %244 }
 0x498   :  { %v247_v52 = vadd.f32 %v245_v51, %v237_v50 }
 0x49a   :  { %5009 = vtanh.f32 %v247_v52  ;;  %v261_v15 = vsel %vm6629_vm6, %v247_v52, %v144_v49  ;;  %v3904_v49 = vld [vmem:[%s6602_s1 + $0x20] sm:$0xff] }
 0x4a4   :  { %v5010_v53 = vpop.eup %5009 }
 0x4a5   :  { %250 = vrot.lane.b32.xlu0 %v5010_v53, %s5329_s14 }
 0x517   :  { %v251_v55 = vpop.permute.xlu0 %250 }
 0x518   :  { %v5473_v56 = vmul.f32 %v5008_v46, %v251_v55 }
 0x51a   :  { %v260_v57 = vsel %vm6629_vm6, %v5473_v56, %v5447_v34 }
 0x51b   :  { %272 = vrot.lane.b32.xlu1 %v260_v57, %s5330_s15 }
 0x58d   :  { %v273_v59 = vpop.permute.xlu1 %272 }
 0x58e   :  { %v275_v60 = vsel %vm31_vm1, %v3898_v58, %v273_v59  ;;  %v612_v58 = vsel %vm611_vm11, 1, %v5328_v14  ;;  %vm1206_vm11 = vcmp.gt.s32.totalorder %v5431_v13, 9 }
 0x58f   :  { %4255 = vmatmul.mubr.msk.f32.vlgmr.msra.gmra.mrb[2].mxu0 %vm39_vm2, %v275_v60 }
 0x590   :  { %4730 = vmatpush3.bf16.msra.mxu0 %v5383_v4  ;;  %4284 = vmatprep.mubr.msk.f32.mxu0 %vm5326_vm0, %v6619_v6 }
 0x591   :  { %4731 = vmatprep.subr.bf16.mxu0 %v6616_v3 }
 0x594   :  { %4733 = vmatpush3.bf16.msra.mxu0 %v5394_v7 }
 0x595   :  { %4734 = vmatprep.subr.bf16.mxu0 %v6616_v3 }
 0x598   :  { %4736 = vmatpush3.bf16.msra.mxu0 %v5406_v10 }
 0x599   :  { %4746 = vmatprep.subr.bf16.mxu0 %v6616_v3 }
 0x662   :  { %v345_v61 = vpop.f32.mrb[2].mxu0 }
 0x663   :  { %v346_v62 = vadd.f32 %v5440_v16, %v345_v61  ;;  %v4256_v63 = vpop.f32.mrb[3].mxu0 }
 0x665   :  { %5011 = vtanh.f32 %v346_v62  ;;  %v3900_v2 = vmul.f32 -1.442695, %v346_v62 }
 0x667   :  { %5013 = vpow2.f32 %v3900_v2 }
 0x66f   :  { %v5012_v0 = vpop.eup %5011 }
 0x670   :  { %358 = vrot.lane.b32.xlu0 %v5012_v0, %s5329_s14 }
 0x671   :  { %v5014_v5 = vpop.eup %5013 }
 0x672   :  { %v352_v8 = vadd.f32 1.0, %v5014_v5 }
 0x674   :  { %376 = vperm.xlu0 %4994, %v374_v1   ;;  %5015 = vrcp.f32 %v352_v8 }
 0x67e   :  { %v5016_v9 = vpop.eup %5015 }
 0x67f   :  { %v356_v17 = vmul.f32 %v5016_v9, %v261_v15 }
 0x6e2   :  { %v359_v11 = vpop.permute.xlu0 %358 }
 0x6e3   :  { %v361_v12 = vmul.f32 %v5016_v9, %v359_v11 }
 0x6e5   :  { %363 = vrot.lane.b32.xlu1 %v361_v12, %s5329_s14 }
 0x6f3   :  { %v5502_v21 = vpop.permute.xlu0 %376 }
 0x6f4   :  { %vm378_vm8 = vcmp.eq.s32.totalorder %v5502_v21, 1 }
 0x757   :  { %v364_v18 = vpop.permute.xlu1 %363 }
 0x758   :  { %v366_v19 = vadd.f32 %v364_v18, %v356_v17  ;;  %v3907_v18 = vld [vmem:[%s6602_s1 + $0x28] sm:$0xff] }
 0x75a   :  { %5017 = vtanh.f32 %v366_v19  ;;  %v380_v40 = vsel %vm378_vm8, %v366_v19, %v261_v15 }
 0x764   :  { %v5018_v20 = vpop.eup %5017 }
 0x765   :  { %369 = vrot.lane.b32.xlu1 %v5018_v20, %s5329_s14 }
 0x7d7   :  { %v370_v22 = vpop.permute.xlu1 %369 }
 0x7d8   :  { %v5504_v23 = vmul.f32 %v5016_v9, %v370_v22 }
 0x7da   :  { %v379_v24 = vsel %vm378_vm8, %v5504_v23, %v260_v57 }
 0x7db   :  { %391 = vrot.lane.b32.xlu1 %v379_v24, %s5330_s15 }
 0x84d   :  { %v392_v26 = vpop.permute.xlu1 %391 }
 0x84e   :  { %v394_v27 = vsel %vm31_vm1, %v3901_v25, %v392_v26 }
 0x84f   :  { %4270 = vmatmul.mubr.msk.f32.vlgmr.msra.gmra.mrb[2].mxu1 %vm39_vm2, %v394_v27  ;;  %v731_v27 = vsel %vm730_vm13, 1, %v5328_v14 }
 0x850   :  { %4739 = vmatpush3.bf16.msra.mxu1 %v5383_v4  ;;  %4299 = vmatprep.mubr.msk.f32.mxu1 %vm5326_vm0, %v6619_v6 }
 0x851   :  { %4740 = vmatprep.subr.bf16.mxu1 %v6616_v3 }
 0x854   :  { %4742 = vmatpush3.bf16.msra.mxu1 %v5394_v7 }
 0x855   :  { %4743 = vmatprep.subr.bf16.mxu1 %v6616_v3 }
 0x858   :  { %4745 = vmatpush3.bf16.msra.mxu1 %v5406_v10 }
 0x859   :  { %4755 = vmatprep.subr.bf16.mxu1 %v6616_v3 }
 0x922   :  { %v464_v28 = vpop.f32.mrb[2].mxu1 }
 0x923   :  { %v465_v29 = vadd.f32 %v5440_v16, %v464_v28  ;;  %v4271_v30 = vpop.f32.mrb[3].mxu1 }
 0x925   :  { %5019 = vtanh.f32 %v465_v29  ;;  %v3903_v33 = vmul.f32 -1.442695, %v465_v29 }
 0x927   :  { %5021 = vpow2.f32 %v3903_v33 }
 0x92f   :  { %v5020_v31 = vpop.eup %5019 }
 0x930   :  { %477 = vrot.lane.b32.xlu0 %v5020_v31, %s5329_s14 }
 0x931   :  { %v5022_v35 = vpop.eup %5021 }
 0x932   :  { %v471_v36 = vadd.f32 1.0, %v5022_v35 }
 0x934   :  { %495 = vperm.xlu0 %4994, %v493_v32   ;;  %5023 = vrcp.f32 %v471_v36 }
 0x93e   :  { %v5024_v37 = vpop.eup %5023 }
 0x93f   :  { %v475_v41 = vmul.f32 %v5024_v37, %v380_v40 }
 0x9a2   :  { %v478_v38 = vpop.permute.xlu0 %477 }
 0x9a3   :  { %v480_v39 = vmul.f32 %v5024_v37, %v478_v38 }
 0x9a5   :  { %482 = vrot.lane.b32.xlu1 %v480_v39, %s5329_s14 }
 0x9b3   :  { %v5532_v45 = vpop.permute.xlu0 %495 }
 0x9b4   :  { %vm6623_vm10 = vcmp.eq.s32.totalorder %v5532_v45, 1 }
 0xa17   :  { %v483_v42 = vpop.permute.xlu1 %482 }
 0xa18   :  { %v485_v43 = vadd.f32 %v483_v42, %v475_v41 }
 0xa1a   :  { %5025 = vtanh.f32 %v485_v43  ;;  %v499_v1 = vsel %vm6623_vm10, %v485_v43, %v380_v40 }
 0xa24   :  { %v5026_v44 = vpop.eup %5025 }
 0xa25   :  { %488 = vrot.lane.b32.xlu1 %v5026_v44, %s5329_s14  ;;  %v3910_v44 = vld [vmem:[%s6602_s1 + $0x30] sm:$0xff] }
 0xa97   :  { %v489_v46 = vpop.permute.xlu1 %488 }
 0xa98   :  { %v5534_v47 = vmul.f32 %v5024_v37, %v489_v46 }
 0xa9a   :  { %v498_v48 = vsel %vm6623_vm10, %v5534_v47, %v379_v24 }
 0xa9b   :  { %510 = vrot.lane.b32.xlu0 %v498_v48, %s5330_s15 }
 0xb0d   :  { %v511_v50 = vpop.permute.xlu0 %510 }
 0xb0e   :  { %v513_v51 = vsel %vm31_vm1, %v3904_v49, %v511_v50 }
 0xb0f   :  { %4285 = vmatmul.mubr.msk.f32.vlgmr.msra.gmra.mrb[4].mxu0 %vm39_vm2, %v513_v51 }
 0xb10   :  { %4748 = vmatpush3.bf16.msra.mxu0 %v5383_v4  ;;  %4314 = vmatprep.mubr.msk.f32.mxu0 %vm5326_vm0, %v6619_v6 }
 0xb11   :  { %4749 = vmatprep.subr.bf16.mxu0 %v6616_v3 }
 0xb14   :  { %4751 = vmatpush3.bf16.msra.mxu0 %v5394_v7 }
 0xb15   :  { %4752 = vmatprep.subr.bf16.mxu0 %v6616_v3 }
 0xb18   :  { %4754 = vmatpush3.bf16.msra.mxu0 %v5406_v10 }
 0xb19   :  { %4764 = vmatprep.subr.bf16.mxu0 %v6616_v3 }
 0xbe2   :  { %v583_v52 = vpop.f32.mrb[4].mxu0 }
 0xbe3   :  { %v584_v53 = vadd.f32 %v5440_v16, %v583_v52  ;;  %v4286_v55 = vpop.f32.mrb[5].mxu0 }
 0xbe5   :  { %5027 = vtanh.f32 %v584_v53  ;;  %v3906_v59 = vmul.f32 -1.442695, %v584_v53  ;;  %v850_v53 = vsel %vm849_vm15, 1, %v5328_v14  ;;  %vm1325_vm15 = vcmp.gt.s32.totalorder %v5431_v13, 10 }
 0xbe7   :  { %5029 = vpow2.f32 %v3906_v59 }
 0xbef   :  { %v5028_v57 = vpop.eup %5027 }
 0xbf0   :  { %596 = vrot.lane.b32.xlu1 %v5028_v57, %s5329_s14 }
 0xbf1   :  { %v5030_v60 = vpop.eup %5029 }
 0xbf2   :  { %v590_v61 = vadd.f32 1.0, %v5030_v60 }
 0xbf4   :  { %614 = vperm.xlu1 %4993, %v612_v58   ;;  %5031 = vrcp.f32 %v590_v61 }
 0xbfe   :  { %v5032_v62 = vpop.eup %5031 }
 0xbff   :  { %v594_v2 = vmul.f32 %v5032_v62, %v499_v1 }
 0xc62   :  { %v597_v63 = vpop.permute.xlu1 %596 }
 0xc63   :  { %v599_v0 = vmul.f32 %v5032_v62, %v597_v63 }
 0xc65   :  { %601 = vrot.lane.b32.xlu0 %v599_v0, %s5329_s14 }
 0xc73   :  { %v5562_v11 = vpop.permute.xlu1 %614 }
 0xc74   :  { %vm6615_vm12 = vcmp.eq.s32.totalorder %v5562_v11, 1 }
 0xcd7   :  { %v602_v5 = vpop.permute.xlu0 %601 }
 0xcd8   :  { %v604_v8 = vadd.f32 %v602_v5, %v594_v2 }
 0xcda   :  { %5033 = vtanh.f32 %v604_v8  ;;  %v618_v35 = vsel %vm6615_vm12, %v604_v8, %v499_v1 }
 0xce4   :  { %v5034_v9 = vpop.eup %5033 }
 0xce5   :  { %607 = vrot.lane.b32.xlu0 %v5034_v9, %s5329_s14 }
 0xd57   :  { %v608_v12 = vpop.permute.xlu0 %607 }
 0xd58   :  { %v5564_v15 = vmul.f32 %v5032_v62, %v608_v12 }
 0xd5a   :  { %v617_v17 = vsel %vm6615_vm12, %v5564_v15, %v498_v48 }
 0xd5b   :  { %629 = vrot.lane.b32.xlu1 %v617_v17, %s5330_s15 }
 0xdcd   :  { %v630_v19 = vpop.permute.xlu1 %629 }
 0xdce   :  { %v632_v20 = vsel %vm31_vm1, %v3907_v18, %v630_v19 }
 0xdcf   :  { %4300 = vmatmul.mubr.msk.f32.vlgmr.msra.gmra.mrb[4].mxu1 %vm39_vm2, %v632_v20 }
 0xdd0   :  { %4757 = vmatpush3.bf16.msra.mxu1 %v5383_v4  ;;  %4329 = vmatprep.mubr.msk.f32.mxu1 %vm5326_vm0, %v6619_v6 }
 0xdd1   :  { %4758 = vmatprep.subr.bf16.mxu1 %v6616_v3 }
 0xdd4   :  { %4760 = vmatpush3.bf16.msra.mxu1 %v5394_v7 }
 0xdd5   :  { %4761 = vmatprep.subr.bf16.mxu1 %v6616_v3 }
 0xdd8   :  { %4763 = vmatpush3.bf16.msra.mxu1 %v5406_v10 }
 0xdd9   :  { %4773 = vmatprep.subr.bf16.mxu1 %v6616_v3 }
 0xea2   :  { %v702_v22 = vpop.f32.mrb[4].mxu1 }
 0xea3   :  { %v703_v24 = vadd.f32 %v5440_v16, %v702_v22  ;;  %v4301_v25 = vpop.f32.mrb[5].mxu1 }
 0xea5   :  { %5035 = vtanh.f32 %v703_v24  ;;  %v3909_v28 = vmul.f32 -1.442695, %v703_v24 }
 0xea7   :  { %5037 = vpow2.f32 %v3909_v28 }
 0xeaf   :  { %v5036_v26 = vpop.eup %5035 }
 0xeb0   :  { %715 = vrot.lane.b32.xlu0 %v5036_v26, %s5329_s14  ;;  %v969_v26 = vsel %vm968_vm4, 1, %v5328_v14 }
 0xeb1   :  { %v5038_v29 = vpop.eup %5037 }
 0xeb2   :  { %v709_v30 = vadd.f32 1.0, %v5038_v29 }
 0xeb4   :  { %733 = vperm.xlu0 %4994, %v731_v27   ;;  %5039 = vrcp.f32 %v709_v30 }
 0xebe   :  { %v5040_v31 = vpop.eup %5039 }
 0xebf   :  { %v713_v36 = vmul.f32 %v5040_v31, %v618_v35 }
 0xf22   :  { %v716_v32 = vpop.permute.xlu0 %715 }
 0xf23   :  { %v718_v33 = vmul.f32 %v5040_v31, %v716_v32 }
 0xf25   :  { %720 = vrot.lane.b32.xlu1 %v718_v33, %s5329_s14 }
 0xf33   :  { %v5592_v40 = vpop.permute.xlu0 %733 }
 0xf34   :  { %vm735_vm14 = vcmp.eq.s32.totalorder %v5592_v40, 1 }
 0xf97   :  { %v721_v37 = vpop.permute.xlu1 %720 }
 0xf98   :  { %v723_v38 = vadd.f32 %v721_v37, %v713_v36 }
 0xf9a   :  { %5041 = vtanh.f32 %v723_v38  ;;  %v737_v62 = vsel %vm735_vm14, %v723_v38, %v618_v35 }
 0xfa4   :  { %v5042_v39 = vpop.eup %5041 }
 0xfa5   :  { %726 = vrot.lane.b32.xlu1 %v5042_v39, %s5329_s14 }
0x1017   :  { %v727_v41 = vpop.permute.xlu1 %726 }
0x1018   :  { %v5594_v42 = vmul.f32 %v5040_v31, %v727_v41 }
0x101a   :  { %v736_v43 = vsel %vm735_vm14, %v5594_v42, %v617_v17  ;;  %v3913_v17 = vld [vmem:[%s6602_s1 + $0x38] sm:$0xff] }
0x101b   :  { %748 = vrot.lane.b32.xlu0 %v736_v43, %s5330_s15 }
0x108d   :  { %v749_v46 = vpop.permute.xlu0 %748 }
0x108e   :  { %v751_v48 = vsel %vm31_vm1, %v3910_v44, %v749_v46  ;;  %v3916_v46 = vld [vmem:[%s6602_s1 + $0x40] sm:$0xff] }
0x108f   :  { %4315 = vmatmul.mubr.msk.f32.vlgmr.msra.gmra.mrb[6].mxu0 %vm39_vm2, %v751_v48 }
0x1090   :  { %4766 = vmatpush3.bf16.msra.mxu0 %v5383_v4  ;;  %4344 = vmatprep.mubr.msk.f32.mxu0 %vm5326_vm0, %v6619_v6 }
0x1091   :  { %4767 = vmatprep.subr.bf16.mxu0 %v6616_v3 }
0x1094   :  { %4769 = vmatpush3.bf16.msra.mxu0 %v5394_v7 }
0x1095   :  { %4770 = vmatprep.subr.bf16.mxu0 %v6616_v3 }
0x1098   :  { %4772 = vmatpush3.bf16.msra.mxu0 %v5406_v10 }
0x1099   :  { %4782 = vmatprep.subr.bf16.mxu0 %v6616_v3 }
0x1162   :  { %v821_v49 = vpop.f32.mrb[6].mxu0 }
0x1163   :  { %v822_v50 = vadd.f32 %v5440_v16, %v821_v49  ;;  %v4316_v51 = vpop.f32.mrb[7].mxu0 }
0x1165   :  { %5043 = vtanh.f32 %v822_v50  ;;  %v3912_v55 = vmul.f32 -1.442695, %v822_v50 }
0x1167   :  { %5045 = vpow2.f32 %v3912_v55  ;;  %v1088_v55 = vsel %vm1087_vm7, 1, %v5328_v14  ;;  %vm1444_vm7 = vcmp.gt.s32.totalorder %v5431_v13, 11 }
0x116f   :  { %v5044_v52 = vpop.eup %5043 }
0x1170   :  { %834 = vrot.lane.b32.xlu1 %v5044_v52, %s5329_s14 }
0x1171   :  { %v5046_v57 = vpop.eup %5045 }
0x1172   :  { %v828_v58 = vadd.f32 1.0, %v5046_v57 }
0x1174   :  { %852 = vperm.xlu1 %4993, %v850_v53   ;;  %5047 = vrcp.f32 %v828_v58 }
0x117e   :  { %v5048_v59 = vpop.eup %5047 }
0x117f   :  { %v832_v63 = vmul.f32 %v5048_v59, %v737_v62 }
0x11e2   :  { %v835_v60 = vpop.permute.xlu1 %834 }
0x11e3   :  { %v837_v61 = vmul.f32 %v5048_v59, %v835_v60 }
0x11e5   :  { %839 = vrot.lane.b32.xlu0 %v837_v61, %s5329_s14 }
0x11f3   :  { %v5622_v5 = vpop.permute.xlu1 %852 }
0x11f4   :  { %vm6613_vm3 = vcmp.eq.s32.totalorder %v5622_v5, 1 }
0x1257   :  { %v840_v0 = vpop.permute.xlu0 %839 }
0x1258   :  { %v842_v1 = vadd.f32 %v840_v0, %v832_v63 }
0x125a   :  { %5049 = vtanh.f32 %v842_v1  ;;  %v856_v33 = vsel %vm6613_vm3, %v842_v1, %v737_v62 }
0x1264   :  { %v5050_v2 = vpop.eup %5049 }
0x1265   :  { %845 = vrot.lane.b32.xlu0 %v5050_v2, %s5329_s14 }
0x12d7   :  { %v846_v8 = vpop.permute.xlu0 %845 }
0x12d8   :  { %v5624_v9 = vmul.f32 %v5048_v59, %v846_v8 }
0x12da   :  { %v855_v12 = vsel %vm6613_vm3, %v5624_v9, %v736_v43 }
0x12db   :  { %867 = vrot.lane.b32.xlu1 %v855_v12, %s5330_s15 }
0x134d   :  { %v868_v18 = vpop.permute.xlu1 %867 }
0x134e   :  { %v870_v19 = vsel %vm31_vm1, %v3913_v17, %v868_v18 }
0x134f   :  { %4330 = vmatmul.mubr.msk.f32.vlgmr.msra.gmra.mrb[6].mxu1 %vm39_vm2, %v870_v19 }
0x1350   :  { %4775 = vmatpush3.bf16.msra.mxu1 %v5383_v4  ;;  %4359 = vmatprep.mubr.msk.f32.mxu1 %vm5326_vm0, %v6619_v6 }
0x1351   :  { %4776 = vmatprep.subr.bf16.mxu1 %v6616_v3 }
0x1354   :  { %4778 = vmatpush3.bf16.msra.mxu1 %v5394_v7 }
0x1355   :  { %4779 = vmatprep.subr.bf16.mxu1 %v6616_v3 }
0x1358   :  { %4781 = vmatpush3.bf16.msra.mxu1 %v5406_v10 }
0x1359   :  { %4791 = vmatprep.subr.bf16.mxu1 %v6616_v3 }
0x1422   :  { %v940_v20 = vpop.f32.mrb[6].mxu1 }
0x1423   :  { %v941_v22 = vadd.f32 %v5440_v16, %v940_v20  ;;  %v4331_v24 = vpop.f32.mrb[7].mxu1  ;;  %v3919_v20 = vld [vmem:[%s6602_s1 + $0x48] sm:$0xff] }
0x1425   :  { %5051 = vtanh.f32 %v941_v22  ;;  %v3915_v27 = vmul.f32 -1.442695, %v941_v22 }
0x1427   :  { %5053 = vpow2.f32 %v3915_v27 }
0x142f   :  { %v5052_v25 = vpop.eup %5051 }
0x1430   :  { %953 = vrot.lane.b32.xlu0 %v5052_v25, %s5329_s14 }
0x1431   :  { %v5054_v28 = vpop.eup %5053 }
0x1432   :  { %v947_v29 = vadd.f32 1.0, %v5054_v28 }
0x1434   :  { %971 = vperm.xlu0 %4994, %v969_v26   ;;  %5055 = vrcp.f32 %v947_v29  ;;  %v1207_v29 = vsel %vm1206_vm11, 1, %v5328_v14 }
0x143e   :  { %v5056_v30 = vpop.eup %5055 }
0x143f   :  { %v951_v35 = vmul.f32 %v5056_v30, %v856_v33 }
0x14a2   :  { %v954_v31 = vpop.permute.xlu0 %953 }
0x14a3   :  { %v956_v32 = vmul.f32 %v5056_v30, %v954_v31 }
0x14a5   :  { %958 = vrot.lane.b32.xlu1 %v956_v32, %s5329_s14 }
0x14b3   :  { %v5652_v39 = vpop.permute.xlu0 %971 }
0x14b4   :  { %vm973_vm5 = vcmp.eq.s32.totalorder %v5652_v39, 1 }
0x1517   :  { %v959_v36 = vpop.permute.xlu1 %958 }
0x1518   :  { %v961_v37 = vadd.f32 %v959_v36, %v951_v35 }
0x151a   :  { %5057 = vtanh.f32 %v961_v37  ;;  %v975_v63 = vsel %vm973_vm5, %v961_v37, %v856_v33 }
0x1524   :  { %v5058_v38 = vpop.eup %5057 }
0x1525   :  { %964 = vrot.lane.b32.xlu1 %v5058_v38, %s5329_s14 }
0x1597   :  { %v965_v41 = vpop.permute.xlu1 %964 }
0x1598   :  { %v5654_v43 = vmul.f32 %v5056_v30, %v965_v41 }
0x159a   :  { %v974_v44 = vsel %vm973_vm5, %v5654_v43, %v855_v12 }
0x159b   :  { %986 = vrot.lane.b32.xlu0 %v974_v44, %s5330_s15 }
0x160d   :  { %v987_v48 = vpop.permute.xlu0 %986 }
0x160e   :  { %v989_v49 = vsel %vm31_vm1, %v3916_v46, %v987_v48 }
0x160f   :  { %4345 = vmatmul.mubr.msk.f32.vlgmr.msra.gmra.mrb[8].mxu0 %vm39_vm2, %v989_v49 }
0x1610   :  { %4784 = vmatpush3.bf16.msra.mxu0 %v5383_v4  ;;  %4374 = vmatprep.mubr.msk.f32.mxu0 %vm5326_vm0, %v6619_v6 }
0x1611   :  { %4785 = vmatprep.subr.bf16.mxu0 %v6616_v3 }
0x1614   :  { %4787 = vmatpush3.bf16.msra.mxu0 %v5394_v7 }
0x1615   :  { %4788 = vmatprep.subr.bf16.mxu0 %v6616_v3 }
0x1618   :  { %4790 = vmatpush3.bf16.msra.mxu0 %v5406_v10 }
0x1619   :  { %4800 = vmatprep.subr.bf16.mxu0 %v6616_v3 }
0x16e2   :  { %v1059_v50 = vpop.f32.mrb[8].mxu0 }
0x16e3   :  { %v1060_v51 = vadd.f32 %v5440_v16, %v1059_v50  ;;  %v4346_v52 = vpop.f32.mrb[9].mxu0 }
0x16e4   :  { %v3922_v52 = vld [vmem:[%s6602_s1 + $0x50] sm:$0xff] }
0x16e5   :  { %5059 = vtanh.f32 %v1060_v51  ;;  %v3918_v57 = vmul.f32 -1.442695, %v1060_v51 }
0x16e7   :  { %5061 = vpow2.f32 %v3918_v57 }
0x16ef   :  { %v5060_v53 = vpop.eup %5059 }
0x16f0   :  { %1072 = vrot.lane.b32.xlu1 %v5060_v53, %s5329_s14 }
0x16f1   :  { %v5062_v58 = vpop.eup %5061 }
0x16f2   :  { %v1066_v59 = vadd.f32 1.0, %v5062_v58 }
0x16f4   :  { %1090 = vperm.xlu1 %4993, %v1088_v55   ;;  %5063 = vrcp.f32 %v1066_v59 }
0x16fe   :  { %v5064_v60 = vpop.eup %5063 }
0x16ff   :  { %v1070_v0 = vmul.f32 %v5064_v60, %v975_v63 }
0x1762   :  { %v1073_v61 = vpop.permute.xlu1 %1072 }
0x1763   :  { %v1075_v62 = vmul.f32 %v5064_v60, %v1073_v61  ;;  %v1326_v61 = vsel %vm1325_vm15, 1, %v5328_v14 }
0x1765   :  { %1077 = vrot.lane.b32.xlu0 %v1075_v62, %s5329_s14 }
0x1773   :  { %v5682_v12 = vpop.permute.xlu1 %1090 }
0x1774   :  { %vm6611_vm9 = vcmp.eq.s32.totalorder %v5682_v12, 1 }
0x17d7   :  { %v1078_v1 = vpop.permute.xlu0 %1077 }
0x17d8   :  { %v1080_v2 = vadd.f32 %v1078_v1, %v1070_v0 }
0x17da   :  { %5065 = vtanh.f32 %v1080_v2  ;;  %v1094_v37 = vsel %vm6611_vm9, %v1080_v2, %v975_v63 }
0x17e4   :  { %v5066_v8 = vpop.eup %5065 }
0x17e5   :  { %1083 = vrot.lane.b32.xlu0 %v5066_v8, %s5329_s14 }
0x1857   :  { %v1084_v17 = vpop.permute.xlu0 %1083 }
0x1858   :  { %v5684_v18 = vmul.f32 %v5064_v60, %v1084_v17 }
0x185a   :  { %v1093_v19 = vsel %vm6611_vm9, %v5684_v18, %v974_v44 }
0x185b   :  { %1105 = vrot.lane.b32.xlu1 %v1093_v19, %s5330_s15 }
0x18cd   :  { %v1106_v22 = vpop.permute.xlu1 %1105 }
0x18ce   :  { %v1108_v24 = vsel %vm31_vm1, %v3919_v20, %v1106_v22 }
0x18cf   :  { %4360 = vmatmul.mubr.msk.f32.vlgmr.msra.gmra.mrb[8].mxu1 %vm39_vm2, %v1108_v24 }
0x18d0   :  { %4793 = vmatpush3.bf16.msra.mxu1 %v5383_v4  ;;  %4389 = vmatprep.mubr.msk.f32.mxu1 %vm5326_vm0, %v6619_v6 }
0x18d1   :  { %4794 = vmatprep.subr.bf16.mxu1 %v6616_v3 }
0x18d4   :  { %4796 = vmatpush3.bf16.msra.mxu1 %v5394_v7 }
0x18d5   :  { %4797 = vmatprep.subr.bf16.mxu1 %v6616_v3 }
0x18d8   :  { %4799 = vmatpush3.bf16.msra.mxu1 %v5406_v10 }
0x18d9   :  { %4809 = vmatprep.subr.bf16.mxu1 %v6616_v3 }
0x19a2   :  { %v1178_v25 = vpop.f32.mrb[8].mxu1 }
0x19a3   :  { %v1179_v26 = vadd.f32 %v5440_v16, %v1178_v25  ;;  %v4361_v27 = vpop.f32.mrb[9].mxu1 }
0x19a5   :  { %5067 = vtanh.f32 %v1179_v26  ;;  %v3921_v30 = vmul.f32 -1.442695, %v1179_v26 }
0x19a7   :  { %5069 = vpow2.f32 %v3921_v30 }
0x19af   :  { %v5068_v28 = vpop.eup %5067 }
0x19b0   :  { %1191 = vrot.lane.b32.xlu0 %v5068_v28, %s5329_s14 }
0x19b1   :  { %v5070_v31 = vpop.eup %5069 }
0x19b2   :  { %v1185_v32 = vadd.f32 1.0, %v5070_v31 }
0x19b4   :  { %1209 = vperm.xlu0 %4994, %v1207_v29   ;;  %5071 = vrcp.f32 %v1185_v32  ;;  %v3925_v29 = vld [vmem:[%s6602_s1 + $0x58] sm:$0xff] }
0x19be   :  { %v5072_v33 = vpop.eup %5071 }
0x19bf   :  { %v1189_v38 = vmul.f32 %v5072_v33, %v1094_v37 }
0x1a22   :  { %v1192_v35 = vpop.permute.xlu0 %1191 }
0x1a23   :  { %v1194_v36 = vmul.f32 %v5072_v33, %v1192_v35 }
0x1a25   :  { %1196 = vrot.lane.b32.xlu1 %v1194_v36, %s5329_s14 }
0x1a33   :  { %v5712_v48 = vpop.permute.xlu0 %1209 }
0x1a34   :  { %vm1211_vm13 = vcmp.eq.s32.totalorder %v5712_v48, 1 }
0x1a97   :  { %v1197_v41 = vpop.permute.xlu1 %1196 }
0x1a98   :  { %v1199_v44 = vadd.f32 %v1197_v41, %v1189_v38 }
0x1a9a   :  { %5073 = vtanh.f32 %v1199_v44  ;;  %v1213_v17 = vsel %vm1211_vm13, %v1199_v44, %v1094_v37  ;;  %v1445_v37 = vsel %vm1444_vm7, 1, %v5328_v14 }
0x1aa4   :  { %v5074_v46 = vpop.eup %5073 }
0x1aa5   :  { %1202 = vrot.lane.b32.xlu1 %v5074_v46, %s5329_s14 }
0x1b17   :  { %v1203_v49 = vpop.permute.xlu1 %1202 }
0x1b18   :  { %v5714_v50 = vmul.f32 %v5072_v33, %v1203_v49 }
0x1b1a   :  { %v1212_v51 = vsel %vm1211_vm13, %v5714_v50, %v1093_v19 }
0x1b1b   :  { %1224 = vrot.lane.b32.xlu0 %v1212_v51, %s5330_s15 }
0x1b8d   :  { %v1225_v53 = vpop.permute.xlu0 %1224 }
0x1b8e   :  { %v1227_v55 = vsel %vm31_vm1, %v3922_v52, %v1225_v53 }
0x1b8f   :  { %4375 = vmatmul.mubr.msk.f32.vlgmr.msra.gmra.mrb[10].mxu0 %vm39_vm2, %v1227_v55 }
0x1b90   :  { %4802 = vmatpush3.bf16.msra.mxu0 %v5383_v4  ;;  %4404 = vmatprep.mubr.msk.f32.mxu0 %vm5326_vm0, %v6619_v6 }
0x1b91   :  { %4803 = vmatprep.subr.bf16.mxu0 %v6616_v3 }
0x1b94   :  { %4805 = vmatpush3.bf16.msra.mxu0 %v5394_v7 }
0x1b95   :  { %4806 = vmatprep.subr.bf16.mxu0 %v6616_v3 }
0x1b98   :  { %4808 = vmatpush3.bf16.msra.mxu0 %v5406_v10 }
0x1b99   :  { %4818 = vmatprep.subr.bf16.mxu0 %v6616_v3 }
0x1c62   :  { %v1297_v57 = vpop.f32.mrb[10].mxu0 }
0x1c63   :  { %v1298_v58 = vadd.f32 %v5440_v16, %v1297_v57  ;;  %v4376_v59 = vpop.f32.mrb[11].mxu0 }
0x1c65   :  { %5075 = vtanh.f32 %v1298_v58  ;;  %v3924_v62 = vmul.f32 -1.442695, %v1298_v58 }
0x1c67   :  { %5077 = vpow2.f32 %v3924_v62  ;;  %v3928_v62 = vld [vmem:[%s6602_s1 + $0x60] sm:$0xff] }
0x1c6f   :  { %v5076_v60 = vpop.eup %5075 }
0x1c70   :  { %1310 = vrot.lane.b32.xlu1 %v5076_v60, %s5329_s14 }
0x1c71   :  { %v5078_v63 = vpop.eup %5077 }
0x1c72   :  { %v1304_v0 = vadd.f32 1.0, %v5078_v63 }
0x1c74   :  { %1328 = vperm.xlu1 %4993, %v1326_v61   ;;  %5079 = vrcp.f32 %v1304_v0 }
0x1c7e   :  { %v5080_v1 = vpop.eup %5079 }
0x1c7f   :  { %v1308_v19 = vmul.f32 %v5080_v1, %v1213_v17 }
0x1ce2   :  { %v1311_v2 = vpop.permute.xlu1 %1310 }
0x1ce3   :  { %v1313_v8 = vmul.f32 %v5080_v1, %v1311_v2 }
0x1ce5   :  { %1315 = vrot.lane.b32.xlu0 %v1313_v8, %s5329_s14 }
0x1cf3   :  { %v5742_v25 = vpop.permute.xlu1 %1328 }
0x1cf4   :  { %vm6609_vm4 = vcmp.eq.s32.totalorder %v5742_v25, 1 }
0x1d57   :  { %v1316_v20 = vpop.permute.xlu0 %1315 }
0x1d58   :  { %v1318_v22 = vadd.f32 %v1316_v20, %v1308_v19 }
0x1d5a   :  { %5081 = vtanh.f32 %v1318_v22  ;;  %v1332_v52 = vsel %vm6609_vm4, %v1318_v22, %v1213_v17  ;;  %v5798_v17 = vld [vmem:[%s6601_s0] sm:$0xff] }
0x1d5b   :  { %vm1563_vm15 = vcmp.gt.s32.totalorder %v5798_v17, 12  ;;  %vm2158_vm9 = vcmp.gt.s32.totalorder %v5798_v17, 17  ;;  %vm2396_vm3 = vcmp.gt.s32.totalorder %v5798_v17, 19  ;;  %vm2634_vm12 = vcmp.gt.s32.totalorder %v5798_v17, 21 }
0x1d5c   :  { %v1564_v20 = vsel %vm1563_vm15, 1, %v5328_v14  ;;  %vm1682_vm15 = vcmp.gt.s32.totalorder %v5798_v17, 13  ;;  %vm2872_vm10 = vcmp.gt.s32.totalorder %v5798_v17, 23 }
0x1d64   :  { %v5082_v24 = vpop.eup %5081 }
0x1d65   :  { %1321 = vrot.lane.b32.xlu0 %v5082_v24, %s5329_s14 }
0x1dd7   :  { %v1322_v26 = vpop.permute.xlu0 %1321 }
0x1dd8   :  { %v5744_v27 = vmul.f32 %v5080_v1, %v1322_v26 }
0x1dda   :  { %v1331_v28 = vsel %vm6609_vm4, %v5744_v27, %v1212_v51  ;;  %vm1920_vm4 = vcmp.gt.s32.totalorder %v5798_v17, 15 }
0x1ddb   :  { %1343 = vrot.lane.b32.xlu1 %v1331_v28, %s5330_s15 }
0x1e4d   :  { %v1344_v30 = vpop.permute.xlu1 %1343 }
0x1e4e   :  { %v1346_v31 = vsel %vm31_vm1, %v3925_v29, %v1344_v30 }
0x1e4f   :  { %4390 = vmatmul.mubr.msk.f32.vlgmr.msra.gmra.mrb[10].mxu1 %vm39_vm2, %v1346_v31 }
0x1e50   :  { %4811 = vmatpush3.bf16.msra.mxu1 %v5383_v4  ;;  %4419 = vmatprep.mubr.msk.f32.mxu1 %vm5326_vm0, %v6619_v6 }
0x1e51   :  { %4812 = vmatprep.subr.bf16.mxu1 %v6616_v3 }
0x1e54   :  { %4814 = vmatpush3.bf16.msra.mxu1 %v5394_v7 }
0x1e55   :  { %4815 = vmatprep.subr.bf16.mxu1 %v6616_v3 }
0x1e58   :  { %4817 = vmatpush3.bf16.msra.mxu1 %v5406_v10 }
0x1e59   :  { %4827 = vmatprep.subr.bf16.mxu1 %v6616_v3 }
0x1f22   :  { %v1416_v32 = vpop.f32.mrb[10].mxu1 }
0x1f23   :  { %v1417_v33 = vadd.f32 %v5440_v16, %v1416_v32  ;;  %v4391_v35 = vpop.f32.mrb[11].mxu1 }
0x1f25   :  { %5083 = vtanh.f32 %v1417_v33  ;;  %v3927_v38 = vmul.f32 -1.442695, %v1417_v33 }
0x1f27   :  { %5085 = vpow2.f32 %v3927_v38 }
0x1f2f   :  { %v5084_v36 = vpop.eup %5083 }
0x1f30   :  { %1429 = vrot.lane.b32.xlu0 %v5084_v36, %s5329_s14 }
0x1f31   :  { %v5086_v41 = vpop.eup %5085 }
0x1f32   :  { %v1423_v44 = vadd.f32 1.0, %v5086_v41 }
0x1f34   :  { %1447 = vperm.xlu0 %4994, %v1445_v37   ;;  %5087 = vrcp.f32 %v1423_v44  ;;  %v3931_v44 = vld [vmem:[%s6602_s1 + $0x68] sm:$0xff] }
0x1f3e   :  { %v5088_v46 = vpop.eup %5087 }
0x1f3f   :  { %v1427_v13 = vmul.f32 %v5088_v46, %v1332_v52 }
0x1fa2   :  { %v1430_v49 = vpop.permute.xlu0 %1429 }
0x1fa3   :  { %v1432_v51 = vmul.f32 %v5088_v46, %v1430_v49 }
0x1fa5   :  { %1434 = vrot.lane.b32.xlu1 %v1432_v51, %s5329_s14 }
0x1fb3   :  { %v5772_v58 = vpop.permute.xlu0 %1447 }
0x1fb4   :  { %vm1449_vm11 = vcmp.eq.s32.totalorder %v5772_v58, 1 }
0x2017   :  { %v1435_v53 = vpop.permute.xlu1 %1434 }
0x2018   :  { %v1437_v55 = vadd.f32 %v1435_v53, %v1427_v13 }
0x201a   :  { %5089 = vtanh.f32 %v1437_v55  ;;  %v1451_v30 = vsel %vm1449_vm11, %v1437_v55, %v1332_v52  ;;  %v5832_v52 = vld [vmem:[%s6604_s3] ss:$0 sm:$0xff] }
0x2024   :  { %v5090_v57 = vpop.eup %5089 }
0x2025   :  { %1440 = vrot.lane.b32.xlu1 %v5090_v57, %s5329_s14  ;;  %v1683_v57 = vsel %vm1682_vm15, 1, %v5328_v14 }
0x2097   :  { %v1441_v59 = vpop.permute.xlu1 %1440 }
0x2098   :  { %v5774_v60 = vmul.f32 %v5088_v46, %v1441_v59 }
0x209a   :  { %v1450_v61 = vsel %vm1449_vm11, %v5774_v60, %v1331_v28  ;;  %v1452_v21 = vsel %vm1449_vm11, %v5774_v60, 0.0  ;;  %vm6665_vm11 = vcmp.eq.s32.totalorder %v5562_v11, 1 }
0x209b   :  { %1462 = vrot.lane.b32.xlu0 %v1450_v61, %s5330_s15 }
0x210d   :  { %v1463_v63 = vpop.permute.xlu0 %1462 }
0x210e   :  { %v1465_v0 = vsel %vm31_vm1, %v3928_v62, %v1463_v63 }
0x210f   :  { %4405 = vmatmul.mubr.msk.f32.vlgmr.msra.gmra.mrb[12].mxu0 %vm39_vm2, %v1465_v0 }
0x2110   :  { %4820 = vmatpush3.bf16.msra.mxu0 %v5383_v4  ;;  %4434 = vmatprep.mubr.msk.f32.mxu0 %vm5326_vm0, %v6619_v6 }
0x2111   :  { %4821 = vmatprep.subr.bf16.mxu0 %v6616_v3 }
0x2114   :  { %4823 = vmatpush3.bf16.msra.mxu0 %v5394_v7 }
0x2115   :  { %4824 = vmatprep.subr.bf16.mxu0 %v6616_v3 }
0x2118   :  { %4826 = vmatpush3.bf16.msra.mxu0 %v5406_v10 }
0x2119   :  { %4836 = vmatprep.subr.bf16.mxu0 %v6616_v3 }
0x21e2   :  { %v1535_v1 = vpop.f32.mrb[12].mxu0 }
0x21e3   :  { %v1536_v2 = vadd.f32 %v5440_v16, %v1535_v1  ;;  %v4406_v8 = vpop.f32.mrb[13].mxu0 }
0x21e5   :  { %5091 = vtanh.f32 %v1536_v2  ;;  %v3930_v22 = vmul.f32 -1.442695, %v1536_v2 }
0x21e7   :  { %5093 = vpow2.f32 %v3930_v22 }
0x21ef   :  { %v5092_v19 = vpop.eup %5091 }
0x21f0   :  { %1548 = vrot.lane.b32.xlu1 %v5092_v19, %s5329_s14 }
0x21f1   :  { %v5094_v24 = vpop.eup %5093 }
0x21f2   :  { %v1542_v26 = vadd.f32 1.0, %v5094_v24 }
0x21f4   :  { %1566 = vperm.xlu1 %4993, %v1564_v20   ;;  %5095 = vrcp.f32 %v1542_v26 }
0x21fe   :  { %v5096_v16 = vpop.eup %5095 }
0x21ff   :  { %v1546_v31 = vmul.f32 %v5096_v16, %v1451_v30 }
0x2262   :  { %v1549_v28 = vpop.permute.xlu1 %1548 }
0x2263   :  { %v1551_v29 = vmul.f32 %v5096_v16, %v1549_v28 }
0x2265   :  { %1553 = vrot.lane.b32.xlu0 %v1551_v29, %s5329_s14  ;;  %v3934_v29 = vld [vmem:[%s6602_s1 + $0x70] sm:$0xff] }
0x2273   :  { %v5807_v36 = vpop.permute.xlu1 %1566 }
0x2274   :  { %6644 = vst [vmem:[#allocation9_spill] sm:$0xff] %v5807_v36  ;;  %vm6608_vm7 = vcmp.eq.s32.totalorder %v5807_v36, 1 }
0x22d7   :  { %v1554_v32 = vpop.permute.xlu0 %1553 }
0x22d8   :  { %v1556_v33 = vadd.f32 %v1554_v32, %v1546_v31 }
0x22da   :  { %5097 = vtanh.f32 %v1556_v33  ;;  %v1570_v2 = vsel %vm6608_vm7, %v1556_v33, %v1451_v30 }
0x22e4   :  { %v5098_v35 = vpop.eup %5097 }
0x22e5   :  { %1559 = vrot.lane.b32.xlu0 %v5098_v35, %s5329_s14 }
0x2357   :  { %v1560_v37 = vpop.permute.xlu0 %1559 }
0x2358   :  { %v5809_v38 = vmul.f32 %v5096_v16, %v1560_v37 }
0x235a   :  { %v1569_v41 = vsel %vm6608_vm7, %v5809_v38, %v1450_v61  ;;  %vm1801_vm7 = vcmp.gt.s32.totalorder %v5798_v17, 14 }
0x235b   :  { %1581 = vrot.lane.b32.xlu1 %v1569_v41, %s5330_s15 }
0x23cd   :  { %v1582_v46 = vpop.permute.xlu1 %1581 }
0x23ce   :  { %v1584_v49 = vsel %vm31_vm1, %v3931_v44, %v1582_v46 }
0x23cf   :  { %4420 = vmatmul.mubr.msk.f32.vlgmr.msra.gmra.mrb[12].mxu1 %vm39_vm2, %v1584_v49 }
0x23d0   :  { %4829 = vmatpush3.bf16.msra.mxu1 %v5383_v4  ;;  %4449 = vmatprep.mubr.msk.f32.mxu1 %vm5326_vm0, %v6619_v6 }
0x23d1   :  { %4830 = vmatprep.subr.bf16.mxu1 %v6616_v3 }
0x23d4   :  { %4832 = vmatpush3.bf16.msra.mxu1 %v5394_v7 }
0x23d5   :  { %4833 = vmatprep.subr.bf16.mxu1 %v6616_v3 }
0x23d8   :  { %4835 = vmatpush3.bf16.msra.mxu1 %v5406_v10 }
0x23d9   :  { %4845 = vmatprep.subr.bf16.mxu1 %v6616_v3 }
0x24a2   :  { %v1654_v51 = vpop.f32.mrb[12].mxu1 }
0x24a3   :  { %v1655_v13 = vadd.f32 %v5832_v52, %v1654_v51  ;;  %v4421_v53 = vpop.f32.mrb[13].mxu1 }
0x24a5   :  { %5099 = vtanh.f32 %v1655_v13  ;;  %v3933_v59 = vmul.f32 -1.442695, %v1655_v13 }
0x24a7   :  { %5101 = vpow2.f32 %v3933_v59 }
0x24af   :  { %v5100_v55 = vpop.eup %5099 }
0x24b0   :  { %1667 = vrot.lane.b32.xlu0 %v5100_v55, %s5329_s14 }
0x24b1   :  { %v5102_v61 = vpop.eup %5101 }
0x24b2   :  { %v1661_v62 = vadd.f32 1.0, %v5102_v61 }
0x24b4   :  { %1685 = vperm.xlu0 %4994, %v1683_v57   ;;  %5103 = vrcp.f32 %v1661_v62 }
0x24be   :  { %v5104_v63 = vpop.eup %5103 }
0x24bf   :  { %v1665_v8 = vmul.f32 %v5104_v63, %v1570_v2 }
0x2522   :  { %v1668_v0 = vpop.permute.xlu0 %1667 }
0x2523   :  { %v1670_v1 = vmul.f32 %v5104_v63, %v1668_v0 }
0x2525   :  { %1672 = vrot.lane.b32.xlu1 %v1670_v1, %s5329_s14 }
0x2533   :  { %v5842_v24 = vpop.permute.xlu0 %1685 }
0x2534   :  { %vm1687_vm15 = vcmp.eq.s32.totalorder %v5842_v24, 1 }
0x2597   :  { %v1673_v19 = vpop.permute.xlu1 %1672 }
0x2598   :  { %v1675_v20 = vadd.f32 %v1673_v19, %v1665_v8 }
0x259a   :  { %5105 = vtanh.f32 %v1675_v20  ;;  %v1689_v55 = vsel %vm1687_vm15, %v1675_v20, %v1570_v2  ;;  %v3937_v2 = vld [vmem:[%s6602_s1 + $0x78] sm:$0xff] }
0x25a4   :  { %v5106_v22 = vpop.eup %5105 }
0x25a5   :  { %1678 = vrot.lane.b32.xlu1 %v5106_v22, %s5329_s14 }
0x2617   :  { %v1679_v26 = vpop.permute.xlu1 %1678 }
0x2618   :  { %v5844_v16 = vmul.f32 %v5104_v63, %v1679_v26 }
0x261a   :  { %v1688_v28 = vsel %vm1687_vm15, %v5844_v16, %v1569_v41  ;;  %v1802_v41 = vsel %vm1801_vm7, 1, %v5328_v14 }
0x261b   :  { %1700 = vrot.lane.b32.xlu0 %v1688_v28, %s5330_s15 }
0x268d   :  { %v1701_v30 = vpop.permute.xlu0 %1700 }
0x268e   :  { %v1703_v31 = vsel %vm31_vm1, %v3934_v29, %v1701_v30  ;;  %v1921_v30 = vsel %vm1920_vm4, 1, %v5328_v14 }
0x268f   :  { %4435 = vmatmul.mubr.msk.f32.vlgmr.msra.gmra.mrb[14].mxu0 %vm39_vm2, %v1703_v31 }
0x2690   :  { %4838 = vmatpush3.bf16.msra.mxu0 %v5383_v4  ;;  %4464 = vmatprep.mubr.msk.f32.mxu0 %vm5326_vm0, %v6619_v6 }
0x2691   :  { %4839 = vmatprep.subr.bf16.mxu0 %v6616_v3 }
0x2694   :  { %4841 = vmatpush3.bf16.msra.mxu0 %v5394_v7 }
0x2695   :  { %4842 = vmatprep.subr.bf16.mxu0 %v6616_v3 }
0x2698   :  { %4844 = vmatpush3.bf16.msra.mxu0 %v5406_v10 }
0x2699   :  { %4854 = vmatprep.subr.bf16.mxu0 %v6616_v3 }
0x2762   :  { %v1773_v32 = vpop.f32.mrb[14].mxu0 }
0x2763   :  { %v1774_v33 = vadd.f32 %v5832_v52, %v1773_v32  ;;  %v4436_v35 = vpop.f32.mrb[15].mxu0 }
0x2765   :  { %5107 = vtanh.f32 %v1774_v33  ;;  %v3936_v44 = vmul.f32 -1.442695, %v1774_v33 }
0x2767   :  { %5109 = vpow2.f32 %v3936_v44 }
0x276f   :  { %v5108_v37 = vpop.eup %5107 }
0x2770   :  { %1786 = vrot.lane.b32.xlu1 %v5108_v37, %s5329_s14 }
0x2771   :  { %v5110_v46 = vpop.eup %5109 }
0x2772   :  { %v1780_v49 = vadd.f32 1.0, %v5110_v46 }
0x2774   :  { %1804 = vperm.xlu1 %4993, %v1802_v41   ;;  %5111 = vrcp.f32 %v1780_v49 }
0x277e   :  { %v5112_v51 = vpop.eup %5111 }
0x277f   :  { %v1784_v57 = vmul.f32 %v5112_v51, %v1689_v55 }
0x27e2   :  { %v1787_v13 = vpop.permute.xlu1 %1786 }
0x27e3   :  { %v1789_v53 = vmul.f32 %v5112_v51, %v1787_v13 }
0x27e5   :  { %1791 = vrot.lane.b32.xlu0 %v1789_v53, %s5329_s14 }
0x27f3   :  { %v5872_v63 = vpop.permute.xlu1 %1804 }
0x27f4   :  { %6645 = vst [vmem:[#allocation10_spill] sm:$0xff] %v5872_v63  ;;  %vm6610_vm7 = vcmp.eq.s32.totalorder %v5872_v63, 1 }
0x2857   :  { %v1792_v59 = vpop.permute.xlu0 %1791 }
0x2858   :  { %v1794_v61 = vadd.f32 %v1792_v59, %v1784_v57 }
0x285a   :  { %5113 = vtanh.f32 %v1794_v61  ;;  %v1808_v44 = vsel %vm6610_vm7, %v1794_v61, %v1689_v55  ;;  %v3940_v55 = vld [vmem:[%s6602_s1 + $0x80] sm:$0xff] }
0x2864   :  { %v5114_v62 = vpop.eup %5113 }
0x2865   :  { %1797 = vrot.lane.b32.xlu0 %v5114_v62, %s5329_s14 }
0x28d7   :  { %v1798_v0 = vpop.permute.xlu0 %1797 }
0x28d8   :  { %v5874_v1 = vmul.f32 %v5112_v51, %v1798_v0 }
0x28da   :  { %6646 = vst [vmem:[#allocation11_spill] sm:$0xff] %v5874_v1  ;;  %v1807_v8 = vsel %vm6610_vm7, %v5874_v1, %v1688_v28  ;;  %vm2039_vm7 = vcmp.gt.s32.totalorder %v5798_v17, 16 }
0x28db   :  { %1819 = vrot.lane.b32.xlu1 %v1807_v8, %s5330_s15 }
0x294d   :  { %v1820_v19 = vpop.permute.xlu1 %1819 }
0x294e   :  { %v1822_v20 = vsel %vm31_vm1, %v3937_v2, %v1820_v19 }
0x294f   :  { %4450 = vmatmul.mubr.msk.f32.vlgmr.msra.gmra.mrb[14].mxu1 %vm39_vm2, %v1822_v20 }
0x2950   :  { %4847 = vmatpush3.bf16.msra.mxu1 %v5383_v4  ;;  %4479 = vmatprep.mubr.msk.f32.mxu1 %vm5326_vm0, %v6619_v6 }
0x2951   :  { %4848 = vmatprep.subr.bf16.mxu1 %v6616_v3 }
0x2954   :  { %4850 = vmatpush3.bf16.msra.mxu1 %v5394_v7 }
0x2955   :  { %4851 = vmatprep.subr.bf16.mxu1 %v6616_v3 }
0x2958   :  { %4853 = vmatpush3.bf16.msra.mxu1 %v5406_v10 }
0x2959   :  { %4863 = vmatprep.subr.bf16.mxu1 %v6616_v3 }
0x2a22   :  { %v1892_v22 = vpop.f32.mrb[14].mxu1 }
0x2a23   :  { %v1893_v26 = vadd.f32 %v5832_v52, %v1892_v22  ;;  %v4451_v28 = vpop.f32.mrb[15].mxu1  ;;  %v2040_v22 = vsel %vm2039_vm7, 1, %v5328_v14 }
0x2a25   :  { %5115 = vtanh.f32 %v1893_v26  ;;  %v3939_v31 = vmul.f32 -1.442695, %v1893_v26 }
0x2a27   :  { %5117 = vpow2.f32 %v3939_v31 }
0x2a2f   :  { %v5116_v29 = vpop.eup %5115 }
0x2a30   :  { %1905 = vrot.lane.b32.xlu0 %v5116_v29, %s5329_s14 }
0x2a31   :  { %v5118_v32 = vpop.eup %5117 }
0x2a32   :  { %v1899_v33 = vadd.f32 1.0, %v5118_v32 }
0x2a34   :  { %1923 = vperm.xlu0 %4994, %v1921_v30   ;;  %5119 = vrcp.f32 %v1899_v33 }
0x2a3e   :  { %v5120_v35 = vpop.eup %5119 }
0x2a3f   :  { %v1903_v46 = vmul.f32 %v5120_v35, %v1808_v44 }
0x2aa2   :  { %v1906_v37 = vpop.permute.xlu0 %1905 }
0x2aa3   :  { %v1908_v41 = vmul.f32 %v5120_v35, %v1906_v37 }
0x2aa5   :  { %1910 = vrot.lane.b32.xlu1 %v1908_v41, %s5329_s14 }
0x2ab3   :  { %v5902_v53 = vpop.permute.xlu0 %1923 }
0x2ab4   :  { %vm1925_vm4 = vcmp.eq.s32.totalorder %v5902_v53, 1 }
0x2b17   :  { %v1911_v49 = vpop.permute.xlu1 %1910 }
0x2b18   :  { %v1913_v51 = vadd.f32 %v1911_v49, %v1903_v46 }
0x2b1a   :  { %5121 = vtanh.f32 %v1913_v51  ;;  %v1927_v33 = vsel %vm1925_vm4, %v1913_v51, %v1808_v44  ;;  %v3943_v44 = vld [vmem:[%s6602_s1 + $0x88] sm:$0xff] }
0x2b24   :  { %v5122_v13 = vpop.eup %5121 }
0x2b25   :  { %1916 = vrot.lane.b32.xlu1 %v5122_v13, %s5329_s14 }
0x2b97   :  { %v1917_v57 = vpop.permute.xlu1 %1916 }
0x2b98   :  { %v5904_v59 = vmul.f32 %v5120_v35, %v1917_v57 }
0x2b9a   :  { %v1926_v62 = vsel %vm1925_vm4, %v5904_v59, %v1807_v8  ;;  %v1928_v40 = vsel %vm1925_vm4, %v5904_v59, 0.0  ;;  %vm6667_vm4 = vcmp.eq.s32.totalorder %v5682_v12, 1 }
0x2b9b   :  { %1938 = vrot.lane.b32.xlu0 %v1926_v62, %s5330_s15 }
0x2c0d   :  { %v1939_v61 = vpop.permute.xlu0 %1938 }
0x2c0e   :  { %v1941_v0 = vsel %vm31_vm1, %v3940_v55, %v1939_v61 }
0x2c0f   :  { %4465 = vmatmul.mubr.msk.f32.vlgmr.msra.gmra.mrb[16].mxu0 %vm39_vm2, %v1941_v0 }
0x2c10   :  { %4856 = vmatpush3.bf16.msra.mxu0 %v5383_v4  ;;  %4494 = vmatprep.mubr.msk.f32.mxu0 %vm5326_vm0, %v6619_v6 }
0x2c11   :  { %4857 = vmatprep.subr.bf16.mxu0 %v6616_v3 }
0x2c14   :  { %4859 = vmatpush3.bf16.msra.mxu0 %v5394_v7 }
0x2c15   :  { %4860 = vmatprep.subr.bf16.mxu0 %v6616_v3 }
0x2c18   :  { %4862 = vmatpush3.bf16.msra.mxu0 %v5406_v10 }
0x2c19   :  { %4872 = vmatprep.subr.bf16.mxu0 %v6616_v3 }
0x2ce2   :  { %v2011_v8 = vpop.f32.mrb[16].mxu0 }
0x2ce3   :  { %v2012_v2 = vadd.f32 %v5832_v52, %v2011_v8  ;;  %v4466_v19 = vpop.f32.mrb[17].mxu0 }
0x2ce4   :  { %v2159_v19 = vsel %vm2158_vm9, 1, %v5328_v14 }
0x2ce5   :  { %5123 = vtanh.f32 %v2012_v2  ;;  %v3942_v26 = vmul.f32 -1.442695, %v2012_v2 }
0x2ce7   :  { %5125 = vpow2.f32 %v3942_v26 }
0x2cef   :  { %v5124_v20 = vpop.eup %5123 }
0x2cf0   :  { %2024 = vrot.lane.b32.xlu1 %v5124_v20, %s5329_s14 }
0x2cf1   :  { %v5126_v28 = vpop.eup %5125 }
0x2cf2   :  { %v2018_v29 = vadd.f32 1.0, %v5126_v28 }
0x2cf4   :  { %2042 = vperm.xlu1 %4993, %v2040_v22   ;;  %5127 = vrcp.f32 %v2018_v29 }
0x2cfe   :  { %v5128_v30 = vpop.eup %5127 }
0x2cff   :  { %v2022_v35 = vmul.f32 %v5128_v30, %v1927_v33 }
0x2d62   :  { %v2025_v31 = vpop.permute.xlu1 %2024 }
0x2d63   :  { %v2027_v32 = vmul.f32 %v5128_v30, %v2025_v31 }
0x2d65   :  { %2029 = vrot.lane.b32.xlu0 %v2027_v32, %s5329_s14 }
0x2d73   :  { %v5932_v49 = vpop.permute.xlu1 %2042 }
0x2d74   :  { %6647 = vst [vmem:[#allocation12_spill] sm:$0xff] %v5932_v49  ;;  %vm6612_vm7 = vcmp.eq.s32.totalorder %v5932_v49, 1 }
0x2dd7   :  { %v2030_v37 = vpop.permute.xlu0 %2029 }
0x2dd8   :  { %v2032_v41 = vadd.f32 %v2030_v37, %v2022_v35 }
0x2dda   :  { %5129 = vtanh.f32 %v2032_v41  ;;  %v2046_v31 = vsel %vm6612_vm7, %v2032_v41, %v1927_v33  ;;  %v3946_v33 = vld [vmem:[%s6602_s1 + $0x90] sm:$0xff] }
0x2de4   :  { %v5130_v46 = vpop.eup %5129 }
0x2de5   :  { %2035 = vrot.lane.b32.xlu0 %v5130_v46, %s5329_s14 }
0x2e57   :  { %v2036_v13 = vpop.permute.xlu0 %2035 }
0x2e58   :  { %v5934_v57 = vmul.f32 %v5128_v30, %v2036_v13 }
0x2e5a   :  { %6648 = vst [vmem:[#allocation13_spill] sm:$0xff] %v5934_v57  ;;  %v2045_v55 = vsel %vm6612_vm7, %v5934_v57, %v1926_v62  ;;  %vm2277_vm7 = vcmp.gt.s32.totalorder %v5798_v17, 18 }
0x2e5b   :  { %2057 = vrot.lane.b32.xlu1 %v2045_v55, %s5330_s15 }
0x2e61   :  { %v6674_v12 = vld [vmem:[#allocation13_spill] sm:$0xff] }
0x2ecd   :  { %v2058_v51 = vpop.permute.xlu1 %2057 }
0x2ece   :  { %v2060_v61 = vsel %vm31_vm1, %v3943_v44, %v2058_v51 }
0x2ecf   :  { %4480 = vmatmul.mubr.msk.f32.vlgmr.msra.gmra.mrb[16].mxu1 %vm39_vm2, %v2060_v61 }
0x2ed0   :  { %4865 = vmatpush3.bf16.msra.mxu1 %v5383_v4  ;;  %4509 = vmatprep.mubr.msk.f32.mxu1 %vm5326_vm0, %v6619_v6 }
0x2ed1   :  { %4866 = vmatprep.subr.bf16.mxu1 %v6616_v3 }
0x2ed4   :  { %4868 = vmatpush3.bf16.msra.mxu1 %v5394_v7 }
0x2ed5   :  { %4869 = vmatprep.subr.bf16.mxu1 %v6616_v3 }
0x2ed8   :  { %4871 = vmatpush3.bf16.msra.mxu1 %v5406_v10 }
0x2ed9   :  { %4881 = vmatprep.subr.bf16.mxu1 %v6616_v3 }
0x2fa2   :  { %v2130_v62 = vpop.f32.mrb[16].mxu1 }
0x2fa3   :  { %v2131_v0 = vadd.f32 %v5832_v52, %v2130_v62  ;;  %v4481_v8 = vpop.f32.mrb[17].mxu1 }
0x2fa5   :  { %5131 = vtanh.f32 %v2131_v0  ;;  %v3945_v20 = vmul.f32 -1.442695, %v2131_v0 }
0x2fa7   :  { %5133 = vpow2.f32 %v3945_v20 }
0x2faf   :  { %v5132_v2 = vpop.eup %5131 }
0x2fb0   :  { %2143 = vrot.lane.b32.xlu0 %v5132_v2, %s5329_s14 }
0x2fb1   :  { %v5134_v22 = vpop.eup %5133 }
0x2fb2   :  { %v2137_v26 = vadd.f32 1.0, %v5134_v22 }
0x2fb4   :  { %2161 = vperm.xlu0 %4994, %v2159_v19   ;;  %5135 = vrcp.f32 %v2137_v26  ;;  %v2278_v19 = vsel %vm2277_vm7, 1, %v5328_v14 }
0x2fbe   :  { %v5136_v28 = vpop.eup %5135 }
0x2fbf   :  { %v2141_v32 = vmul.f32 %v5136_v28, %v2046_v31 }
0x3022   :  { %v2144_v29 = vpop.permute.xlu0 %2143 }
0x3023   :  { %v2146_v30 = vmul.f32 %v5136_v28, %v2144_v29 }
0x3025   :  { %2148 = vrot.lane.b32.xlu1 %v2146_v30, %s5329_s14 }
0x3033   :  { %v5962_v13 = vpop.permute.xlu0 %2161 }
0x3034   :  { %vm2163_vm9 = vcmp.eq.s32.totalorder %v5962_v13, 1 }
0x3097   :  { %v2149_v35 = vpop.permute.xlu1 %2148 }
0x3098   :  { %v2151_v37 = vadd.f32 %v2149_v35, %v2141_v32 }
0x309a   :  { %5137 = vtanh.f32 %v2151_v37  ;;  %v2165_v32 = vsel %vm2163_vm9, %v2151_v37, %v2046_v31  ;;  %v3949_v31 = vld [vmem:[%s6602_s1 + $0x98] sm:$0xff] }
0x30a4   :  { %v5138_v46 = vpop.eup %5137 }
0x30a5   :  { %2154 = vrot.lane.b32.xlu1 %v5138_v46, %s5329_s14 }
0x3117   :  { %v2155_v44 = vpop.permute.xlu1 %2154 }
0x3118   :  { %v5964_v51 = vmul.f32 %v5136_v28, %v2155_v44 }
0x311a   :  { %v2164_v61 = vsel %vm2163_vm9, %v5964_v51, %v2045_v55 }
0x311b   :  { %2176 = vrot.lane.b32.xlu0 %v2164_v61, %s5330_s15 }
0x318d   :  { %v2177_v41 = vpop.permute.xlu0 %2176 }
0x318e   :  { %v2179_v62 = vsel %vm31_vm1, %v3946_v33, %v2177_v41 }
0x318f   :  { %4495 = vmatmul.mubr.msk.f32.vlgmr.msra.gmra.mrb[18].mxu0 %vm39_vm2, %v2179_v62 }
0x3190   :  { %4874 = vmatpush3.bf16.msra.mxu0 %v5383_v4  ;;  %4524 = vmatprep.mubr.msk.f32.mxu0 %vm5326_vm0, %v6619_v6 }
0x3191   :  { %4875 = vmatprep.subr.bf16.mxu0 %v6616_v3 }
0x3194   :  { %4877 = vmatpush3.bf16.msra.mxu0 %v5394_v7 }
0x3195   :  { %4878 = vmatprep.subr.bf16.mxu0 %v6616_v3 }
0x3198   :  { %4880 = vmatpush3.bf16.msra.mxu0 %v5406_v10 }
0x3199   :  { %4890 = vmatprep.subr.bf16.mxu0 %v6616_v3 }
0x3262   :  { %v2249_v55 = vpop.f32.mrb[18].mxu0 }
0x3263   :  { %v2250_v0 = vadd.f32 %v5832_v52, %v2249_v55  ;;  %v4496_v8 = vpop.f32.mrb[19].mxu0 }
0x3265   :  { %5139 = vtanh.f32 %v2250_v0  ;;  %v3948_v20 = vmul.f32 -1.442695, %v2250_v0 }
0x3267   :  { %5141 = vpow2.f32 %v3948_v20 }
0x326f   :  { %v5140_v2 = vpop.eup %5139 }
0x3270   :  { %2262 = vrot.lane.b32.xlu1 %v5140_v2, %s5329_s14 }
0x3271   :  { %v5142_v22 = vpop.eup %5141 }
0x3272   :  { %v2256_v26 = vadd.f32 1.0, %v5142_v22  ;;  %v2397_v22 = vsel %vm2396_vm3, 1, %v5328_v14 }
0x3274   :  { %2280 = vperm.xlu1 %4993, %v2278_v19   ;;  %5143 = vrcp.f32 %v2256_v26 }
0x327e   :  { %v5144_v28 = vpop.eup %5143 }
0x327f   :  { %v2260_v35 = vmul.f32 %v5144_v28, %v2165_v32 }
0x32e2   :  { %v2263_v29 = vpop.permute.xlu1 %2262 }
0x32e3   :  { %v2265_v30 = vmul.f32 %v5144_v28, %v2263_v29 }
0x32e5   :  { %2267 = vrot.lane.b32.xlu0 %v2265_v30, %s5329_s14 }
0x32f3   :  { %v5992_v41 = vpop.permute.xlu1 %2280 }
0x32f4   :  { %6649 = vst [vmem:[#allocation14_spill] sm:$0xff] %v5992_v41  ;;  %vm6614_vm7 = vcmp.eq.s32.totalorder %v5992_v41, 1 }
0x3357   :  { %v2268_v46 = vpop.permute.xlu0 %2267 }
0x3358   :  { %v2270_v44 = vadd.f32 %v2268_v46, %v2260_v35 }
0x335a   :  { %5145 = vtanh.f32 %v2270_v44 }
0x3364   :  { %v5146_v33 = vpop.eup %5145 }
0x3365   :  { %2273 = vrot.lane.b32.xlu0 %v5146_v33, %s5329_s14  ;;  %v2284_v33 = vsel %vm6614_vm7, %v2270_v44, %v2165_v32  ;;  %v3952_v32 = vld [vmem:[%s6602_s1 + $0xa0] sm:$0xff] }
0x33d7   :  { %v2274_v62 = vpop.permute.xlu0 %2273 }
0x33d8   :  { %v5994_v55 = vmul.f32 %v5144_v28, %v2274_v62 }
0x33da   :  { %6650 = vst [vmem:[#allocation15_spill] sm:$0xff] %v5994_v55  ;;  %v2283_v0 = vsel %vm6614_vm7, %v5994_v55, %v2164_v61  ;;  %vm2515_vm7 = vcmp.gt.s32.totalorder %v5798_v17, 20 }
0x33db   :  { %2295 = vrot.lane.b32.xlu1 %v2283_v0, %s5330_s15 }
0x344d   :  { %v2296_v37 = vpop.permute.xlu1 %2295 }
0x344e   :  { %v2298_v8 = vsel %vm31_vm1, %v3949_v31, %v2296_v37 }
0x344f   :  { %4510 = vmatmul.mubr.msk.f32.vlgmr.msra.gmra.mrb[18].mxu1 %vm39_vm2, %v2298_v8 }
0x3450   :  { %4883 = vmatpush3.bf16.msra.mxu1 %v5383_v4  ;;  %4539 = vmatprep.mubr.msk.f32.mxu1 %vm5326_vm0, %v6619_v6 }
0x3451   :  { %4884 = vmatprep.subr.bf16.mxu1 %v6616_v3 }
0x3454   :  { %4886 = vmatpush3.bf16.msra.mxu1 %v5394_v7 }
0x3455   :  { %4887 = vmatprep.subr.bf16.mxu1 %v6616_v3 }
0x3458   :  { %4889 = vmatpush3.bf16.msra.mxu1 %v5406_v10 }
0x3459   :  { %4899 = vmatprep.subr.bf16.mxu1 %v6616_v3 }
0x3522   :  { %v2368_v61 = vpop.f32.mrb[18].mxu1 }
0x3523   :  { %v2369_v2 = vadd.f32 %v5832_v52, %v2368_v61  ;;  %v4511_v19 = vpop.f32.mrb[19].mxu1 }
0x3525   :  { %5147 = vtanh.f32 %v2369_v2  ;;  %v3951_v26 = vmul.f32 -1.442695, %v2369_v2 }
0x3527   :  { %5149 = vpow2.f32 %v3951_v26 }
0x352f   :  { %v5148_v20 = vpop.eup %5147 }
0x3530   :  { %2381 = vrot.lane.b32.xlu0 %v5148_v20, %s5329_s14 }
0x3531   :  { %v5150_v28 = vpop.eup %5149 }
0x3532   :  { %v2375_v29 = vadd.f32 1.0, %v5150_v28 }
0x3534   :  { %2399 = vperm.xlu0 %4994, %v2397_v22   ;;  %5151 = vrcp.f32 %v2375_v29 }
0x353e   :  { %v5152_v30 = vpop.eup %5151 }
0x353f   :  { %v2379_v62 = vmul.f32 %v5152_v30, %v2284_v33 }
0x35a2   :  { %v2382_v35 = vpop.permute.xlu0 %2381 }
0x35a3   :  { %v2384_v46 = vmul.f32 %v5152_v30, %v2382_v35 }
0x35a5   :  { %2386 = vrot.lane.b32.xlu1 %v2384_v46, %s5329_s14 }
0x35b3   :  { %v6022_v61 = vpop.permute.xlu0 %2399 }
0x35b4   :  { %vm2401_vm3 = vcmp.eq.s32.totalorder %v6022_v61, 1 }
0x3617   :  { %v2387_v31 = vpop.permute.xlu1 %2386 }
0x3618   :  { %v2389_v37 = vadd.f32 %v2387_v31, %v2379_v62 }
0x361a   :  { %5153 = vtanh.f32 %v2389_v37 }
0x3624   :  { %v5154_v8 = vpop.eup %5153 }
0x3625   :  { %2392 = vrot.lane.b32.xlu1 %v5154_v8, %s5329_s14 }
0x3697   :  { %v2393_v2 = vpop.permute.xlu1 %2392 }
0x3698   :  { %v6024_v19 = vmul.f32 %v5152_v30, %v2393_v2  ;;  %v2516_v30 = vsel %vm2515_vm7, 1, %v5328_v14 }
0x369a   :  { %v2402_v20 = vsel %vm2401_vm3, %v6024_v19, %v2283_v0  ;;  %v2404_v39 = vsel %vm2401_vm3, %v6024_v19, 0.0 }
0x369b   :  { %2414 = vrot.lane.b32.xlu0 %v2402_v20, %s5330_s15 }
0x370d   :  { %v2415_v44 = vpop.permute.xlu0 %2414 }
0x370e   :  { %v2417_v22 = vsel %vm31_vm1, %v3952_v32, %v2415_v44  ;;  %v2403_v32 = vsel %vm2401_vm3, %v2389_v37, %v2284_v33  ;;  %v3955_v33 = vld [vmem:[%s6602_s1 + $0xa8] sm:$0xff] }
0x370f   :  { %4525 = vmatmul.mubr.msk.f32.vlgmr.msra.gmra.mrb[20].mxu0 %vm39_vm2, %v2417_v22 }
0x3710   :  { %4892 = vmatpush3.bf16.msra.mxu0 %v5383_v4  ;;  %4554 = vmatprep.mubr.msk.f32.mxu0 %vm5326_vm0, %v6619_v6 }
0x3711   :  { %4893 = vmatprep.subr.bf16.mxu0 %v6616_v3 }
0x3714   :  { %4895 = vmatpush3.bf16.msra.mxu0 %v5394_v7 }
0x3715   :  { %4896 = vmatprep.subr.bf16.mxu0 %v6616_v3 }
0x3718   :  { %4898 = vmatpush3.bf16.msra.mxu0 %v5406_v10 }
0x3719   :  { %4908 = vmatprep.subr.bf16.mxu0 %v6616_v3 }
0x37e2   :  { %v2487_v0 = vpop.f32.mrb[20].mxu0 }
0x37e3   :  { %v2488_v26 = vadd.f32 %v5832_v52, %v2487_v0  ;;  %v4526_v28 = vpop.f32.mrb[21].mxu0 }
0x37e5   :  { %5155 = vtanh.f32 %v2488_v26  ;;  %v3954_v35 = vmul.f32 -1.442695, %v2488_v26 }
0x37e7   :  { %5157 = vpow2.f32 %v3954_v35 }
0x37ef   :  { %v5156_v29 = vpop.eup %5155 }
0x37f0   :  { %2500 = vrot.lane.b32.xlu1 %v5156_v29, %s5329_s14 }
0x37f1   :  { %v5158_v46 = vpop.eup %5157 }
0x37f2   :  { %v2494_v62 = vadd.f32 1.0, %v5158_v46 }
0x37f4   :  { %2518 = vperm.xlu1 %4993, %v2516_v30   ;;  %5159 = vrcp.f32 %v2494_v62 }
0x37fe   :  { %v5160_v31 = vpop.eup %5159 }
0x37ff   :  { %v2498_v44 = vmul.f32 %v5160_v31, %v2403_v32 }
0x3862   :  { %v2501_v8 = vpop.permute.xlu1 %2500 }
0x3863   :  { %v2503_v2 = vmul.f32 %v5160_v31, %v2501_v8 }
0x3865   :  { %2505 = vrot.lane.b32.xlu0 %v2503_v2, %s5329_s14  ;;  %v2635_v2 = vsel %vm2634_vm12, 1, %v5328_v14 }
0x3873   :  { %v6052_v26 = vpop.permute.xlu1 %2518 }
0x3874   :  { %6651 = vst [vmem:[#allocation16_spill] sm:$0xff] %v6052_v26  ;;  %vm6618_vm7 = vcmp.eq.s32.totalorder %v6052_v26, 1 }
0x38d7   :  { %v2506_v22 = vpop.permute.xlu0 %2505 }
0x38d8   :  { %v2508_v0 = vadd.f32 %v2506_v22, %v2498_v44 }
0x38da   :  { %5161 = vtanh.f32 %v2508_v0 }
0x38e4   :  { %v5162_v28 = vpop.eup %5161 }
0x38e5   :  { %2511 = vrot.lane.b32.xlu0 %v5162_v28, %s5329_s14 }
0x3957   :  { %v2512_v29 = vpop.permute.xlu0 %2511 }
0x3958   :  { %v6054_v30 = vmul.f32 %v5160_v31, %v2512_v29 }
0x395a   :  { %6652 = vst [vmem:[#allocation17_spill] sm:$0xff] %v6054_v30  ;;  %v2521_v35 = vsel %vm6618_vm7, %v6054_v30, %v2402_v20 }
0x395b   :  { %2533 = vrot.lane.b32.xlu1 %v2521_v35, %s5330_s15 }
0x39cd   :  { %v2534_v37 = vpop.permute.xlu1 %2533 }
0x39ce   :  { %v2536_v46 = vsel %vm31_vm1, %v3955_v33, %v2534_v37 }
0x39cf   :  { %4540 = vmatmul.mubr.msk.f32.vlgmr.msra.gmra.mrb[20].mxu1 %vm39_vm2, %v2536_v46  ;;  %v2522_v46 = vsel %vm6618_vm7, %v2508_v0, %v2403_v32  ;;  %v3958_v32 = vld [vmem:[%s6602_s1 + $0xb0] sm:$0xff]  ;;  %vm2753_vm7 = vcmp.gt.s32.totalorder %v5798_v17, 22 }
0x39d0   :  { %4901 = vmatpush3.bf16.msra.mxu1 %v5383_v4  ;;  %4569 = vmatprep.mubr.msk.f32.mxu1 %vm5326_vm0, %v6619_v6 }
0x39d1   :  { %4902 = vmatprep.subr.bf16.mxu1 %v6616_v3 }
0x39d4   :  { %4904 = vmatpush3.bf16.msra.mxu1 %v5394_v7 }
0x39d5   :  { %4905 = vmatprep.subr.bf16.mxu1 %v6616_v3 }
0x39d8   :  { %4907 = vmatpush3.bf16.msra.mxu1 %v5406_v10 }
0x39d9   :  { %4917 = vmatprep.subr.bf16.mxu1 %v6616_v3 }
0x3aa2   :  { %v2606_v20 = vpop.f32.mrb[20].mxu1 }
0x3aa3   :  { %v2607_v62 = vadd.f32 %v5832_v52, %v2606_v20  ;;  %v4541_v31 = vpop.f32.mrb[21].mxu1 }
0x3aa5   :  { %5163 = vtanh.f32 %v2607_v62  ;;  %v3957_v44 = vmul.f32 -1.442695, %v2607_v62 }
0x3aa7   :  { %5165 = vpow2.f32 %v3957_v44 }
0x3aaf   :  { %v5164_v8 = vpop.eup %5163 }
0x3ab0   :  { %2619 = vrot.lane.b32.xlu0 %v5164_v8, %s5329_s14 }
0x3ab1   :  { %v5166_v22 = vpop.eup %5165 }
0x3ab2   :  { %v2613_v28 = vadd.f32 1.0, %v5166_v22 }
0x3ab4   :  { %2637 = vperm.xlu0 %4994, %v2635_v2   ;;  %5167 = vrcp.f32 %v2613_v28 }
0x3abe   :  { %v5168_v29 = vpop.eup %5167 }
0x3abf   :  { %v2617_v20 = vmul.f32 %v5168_v29, %v2522_v46 }
0x3b22   :  { %v2620_v33 = vpop.permute.xlu0 %2619 }
0x3b23   :  { %v2622_v37 = vmul.f32 %v5168_v29, %v2620_v33 }
0x3b25   :  { %2624 = vrot.lane.b32.xlu1 %v2622_v37, %s5329_s14 }
0x3b33   :  { %v6082_v62 = vpop.permute.xlu0 %2637 }
0x3b34   :  { %vm2639_vm12 = vcmp.eq.s32.totalorder %v6082_v62, 1 }
0x3b97   :  { %v2625_v31 = vpop.permute.xlu1 %2624 }
0x3b98   :  { %v2627_v3 = vadd.f32 %v2625_v31, %v2617_v20  ;;  %v2754_v31 = vsel %vm2753_vm7, 1, %v5328_v14 }
0x3b9a   :  { %5169 = vtanh.f32 %v2627_v3 }
0x3ba4   :  { %v5170_v8 = vpop.eup %5169 }
0x3ba5   :  { %2630 = vrot.lane.b32.xlu1 %v5170_v8, %s5329_s14 }
0x3c17   :  { %v2631_v2 = vpop.permute.xlu1 %2630 }
0x3c18   :  { %v6084_v44 = vmul.f32 %v5168_v29, %v2631_v2  ;;  %v6653_v29 = vmov 0.0|0.0  }
0x3c1a   :  { %v2640_v22 = vsel %vm2639_vm12, %v6084_v44, %v2521_v35 }
0x3c1b   :  { %2652 = vrot.lane.b32.xlu0 %v2640_v22, %s5330_s15 }
0x3c8d   :  { %v2653_v0 = vpop.permute.xlu0 %2652 }
0x3c8e   :  { %v2655_v28 = vsel %vm31_vm1, %v3958_v32, %v2653_v0 }
0x3c8f   :  { %4555 = vmatmul.mubr.msk.f32.vlgmr.msra.gmra.mrb[22].mxu0 %vm39_vm2, %v2655_v28 }
0x3c90   :  { %4910 = vmatpush3.bf16.msra.mxu0 %v5383_v4  ;;  %4584 = vmatprep.mubr.msk.f32.mxu0 %vm5326_vm0, %v6619_v6 }
0x3c91   :  { %4911 = vmatprep.subr.bf16.mxu0 %v6653_v29 }
0x3c94   :  { %4913 = vmatpush3.bf16.msra.mxu0 %v5394_v7 }
0x3c95   :  { %4914 = vmatprep.subr.bf16.mxu0 %v6653_v29 }
0x3c98   :  { %4916 = vmatpush3.bf16.msra.mxu0 %v5406_v10 }
0x3c99   :  { %4926 = vmatprep.subr.bf16.mxu0 %v6653_v29 }
0x3d62   :  { %v2725_v35 = vpop.f32.mrb[22].mxu0 }
0x3d63   :  { %v2726_v33 = vadd.f32 %v5832_v52, %v2725_v35  ;;  %v4556_v37 = vpop.f32.mrb[23].mxu0  ;;  %v2641_v35 = vsel %vm2639_vm12, %v2627_v3, %v2522_v46  ;;  %v3961_v3 = vld [vmem:[%s6602_s1 + $0xb8] sm:$0xff] }
0x3d65   :  { %5171 = vtanh.f32 %v2726_v33  ;;  %v3960_v8 = vmul.f32 -1.442695, %v2726_v33 }
0x3d67   :  { %5173 = vpow2.f32 %v3960_v8 }
0x3d6f   :  { %v5172_v20 = vpop.eup %5171 }
0x3d70   :  { %2738 = vrot.lane.b32.xlu1 %v5172_v20, %s5329_s14 }
0x3d71   :  { %v5174_v2 = vpop.eup %5173 }
0x3d72   :  { %v2732_v32 = vadd.f32 1.0, %v5174_v2  ;;  %v6656_v2 = vmov 0.0  }
0x3d74   :  { %2756 = vperm.xlu1 %4993, %v2754_v31   ;;  %5175 = vrcp.f32 %v2732_v32 }
0x3d7e   :  { %v5176_v0 = vpop.eup %5175 }
0x3d7f   :  { %v2736_v37 = vmul.f32 %v5176_v0, %v2641_v35 }
0x3de2   :  { %v2739_v28 = vpop.permute.xlu1 %2738 }
0x3de3   :  { %v2741_v6 = vmul.f32 %v5176_v0, %v2739_v28 }
0x3de5   :  { %2743 = vrot.lane.b32.xlu0 %v2741_v6, %s5329_s14 }
0x3df3   :  { %v6112_v33 = vpop.permute.xlu1 %2756 }
0x3df4   :  { %6654 = vst [vmem:[#allocation18_spill] sm:$0xff] %v6112_v33  ;;  %vm6627_vm7 = vcmp.eq.s32.totalorder %v6112_v33, 1 }
0x3e57   :  { %v2744_v26 = vpop.permute.xlu0 %2743 }
0x3e58   :  { %v2746_v30 = vadd.f32 %v2744_v26, %v2736_v37  ;;  %v2873_v37 = vsel %vm2872_vm10, 1, %v5328_v14 }
0x3e5a   :  { %5177 = vtanh.f32 %v2746_v30 }
0x3e64   :  { %v5178_v20 = vpop.eup %5177 }
0x3e65   :  { %2749 = vrot.lane.b32.xlu0 %v5178_v20, %s5329_s14 }
0x3ed7   :  { %v2750_v31 = vpop.permute.xlu0 %2749 }
0x3ed8   :  { %v6114_v8 = vmul.f32 %v5176_v0, %v2750_v31 }
0x3eda   :  { %6655 = vst [vmem:[#allocation19_spill] sm:$0xff] %v6114_v8  ;;  %v2759_v6 = vsel %vm6627_vm7, %v6114_v8, %v2640_v22 }
0x3edb   :  { %2771 = vrot.lane.b32.xlu1 %v2759_v6, %s5330_s15 }
0x3f4d   :  { %v2772_v26 = vpop.permute.xlu1 %2771 }
0x3f4e   :  { %v2774_v46 = vsel %vm31_vm1, %v3961_v3, %v2772_v26 }
0x3f4f   :  { %4570 = vmatmul.mubr.msk.f32.vlgmr.msra.gmra.mrb[22].mxu1 %vm39_vm2, %v2774_v46 }
0x3f50   :  { %4919 = vmatpush3.bf16.msra.mxu1 %v5383_v4  ;;  %4599 = vmatprep.mubr.msk.f32.mxu1 %vm5326_vm0, %v6656_v2 }
0x3f51   :  { %4920 = vmatprep.subr.bf16.mxu1 %v6653_v29 }
0x3f54   :  { %4922 = vmatpush3.bf16.msra.mxu1 %v5394_v7 }
0x3f55   :  { %4923 = vmatprep.subr.bf16.mxu1 %v6653_v29 }
0x3f58   :  { %4925 = vmatpush3.bf16.msra.mxu1 %v5406_v10 }
0x3f59   :  { %4935 = vmatprep.subr.bf16.mxu1 %v6653_v29 }
0x4022   :  { %v2844_v22 = vpop.f32.mrb[22].mxu1 }
0x4023   :  { %v2845_v32 = vadd.f32 %v5832_v52, %v2844_v22  ;;  %v4571_v0 = vpop.f32.mrb[23].mxu1  ;;  %v2760_v22 = vsel %vm6627_vm7, %v2746_v30, %v2641_v35  ;;  %vm2991_vm7 = vcmp.gt.s32.totalorder %v5798_v17, 24 }
0x4025   :  { %5179 = vtanh.f32 %v2845_v32  ;;  %v3963_v20 = vmul.f32 -1.442695, %v2845_v32 }
0x4027   :  { %5181 = vpow2.f32 %v3963_v20 }
0x402f   :  { %v5180_v28 = vpop.eup %5179 }
0x4030   :  { %2857 = vrot.lane.b32.xlu0 %v5180_v28, %s5329_s14 }
0x4031   :  { %v5182_v31 = vpop.eup %5181 }
0x4032   :  { %v2851_v3 = vadd.f32 1.0, %v5182_v31 }
0x4034   :  { %2875 = vperm.xlu0 %4994, %v2873_v37   ;;  %5183 = vrcp.f32 %v2851_v3 }
0x403e   :  { %v5184_v26 = vpop.eup %5183 }
0x403f   :  { %v2855_v0 = vmul.f32 %v5184_v26, %v2760_v22 }
0x40a2   :  { %v2858_v46 = vpop.permute.xlu0 %2857 }
0x40a3   :  { %v2860_v8 = vmul.f32 %v5184_v26, %v2858_v46  ;;  %v2992_v46 = vsel %vm2991_vm7, 1, %v5328_v14 }
0x40a5   :  { %2862 = vrot.lane.b32.xlu1 %v2860_v8, %s5329_s14 }
0x40b3   :  { %v6142_v32 = vpop.permute.xlu0 %2875 }
0x40b4   :  { %vm2877_vm10 = vcmp.eq.s32.totalorder %v6142_v32, 1 }
0x4117   :  { %v2863_v41 = vpop.permute.xlu1 %2862 }
0x4118   :  { %v2865_v55 = vadd.f32 %v2863_v41, %v2855_v0  ;;  %v3964_v41 = vld [vmem:[%s6602_s1 + $0xc0] sm:$0xff] }
0x411a   :  { %5185 = vtanh.f32 %v2865_v55 }
0x4124   :  { %v5186_v28 = vpop.eup %5185 }
0x4125   :  { %2868 = vrot.lane.b32.xlu1 %v5186_v28, %s5329_s14 }
0x4197   :  { %v2869_v37 = vpop.permute.xlu1 %2868 }
0x4198   :  { %v6144_v20 = vmul.f32 %v5184_v26, %v2869_v37 }
0x419a   :  { %v2878_v8 = vsel %vm2877_vm10, %v6144_v20, %v2759_v6  ;;  %v2880_v48 = vsel %vm2877_vm10, %v6144_v20, 0.0 }
0x419b   :  { %2890 = vrot.lane.b32.xlu0 %v2878_v8, %s5330_s15 }
0x420d   :  { %v2891_v30 = vpop.permute.xlu0 %2890 }
0x420e   :  { %v2893_v35 = vsel %vm31_vm1, %v3964_v41, %v2891_v30 }
0x420f   :  { %4585 = vmatmul.mubr.msk.f32.vlgmr.msra.gmra.mrb[24].mxu0 %vm39_vm2, %v2893_v35 }
0x4210   :  { %4928 = vmatpush3.bf16.msra.mxu0 %v5383_v4  ;;  %4614 = vmatprep.mubr.msk.f32.mxu0 %vm5326_vm0, %v6656_v2 }
0x4211   :  { %4929 = vmatprep.subr.bf16.mxu0 %v6653_v29 }
0x4214   :  { %4931 = vmatpush3.bf16.msra.mxu0 %v5394_v7 }
0x4215   :  { %4932 = vmatprep.subr.bf16.mxu0 %v6653_v29 }
0x4218   :  { %4934 = vmatpush3.bf16.msra.mxu0 %v5406_v10 }
0x4219   :  { %4944 = vmatprep.subr.bf16.mxu0 %v6653_v29 }
0x42e2   :  { %v2963_v6 = vpop.f32.mrb[24].mxu0 }
0x42e3   :  { %v2964_v31 = vadd.f32 %v5832_v52, %v2963_v6  ;;  %v4586_v3 = vpop.f32.mrb[25].mxu0  ;;  %v2879_v6 = vsel %vm2877_vm10, %v2865_v55, %v2760_v22  ;;  %v3967_v55 = vld [vmem:[%s6602_s1 + $0xc8] sm:$0xff] }
0x42e5   :  { %5187 = vtanh.f32 %v2964_v31  ;;  %v3966_v0 = vmul.f32 -1.442695, %v2964_v31 }
0x42e7   :  { %5189 = vpow2.f32 %v3966_v0 }
0x42ef   :  { %v5188_v26 = vpop.eup %5187 }
0x42f0   :  { %2976 = vrot.lane.b32.xlu1 %v5188_v26, %s5329_s14 }
0x42f1   :  { %v5190_v28 = vpop.eup %5189 }
0x42f2   :  { %v2970_v37 = vadd.f32 1.0, %v5190_v28 }
0x42f4   :  { %2994 = vperm.xlu1 %4993, %v2992_v46   ;;  %5191 = vrcp.f32 %v2970_v37 }
0x42fe   :  { %v5192_v41 = vpop.eup %5191 }
0x42ff   :  { %v2974_v17 = vmul.f32 %v5192_v41, %v2879_v6 }
0x4362   :  { %v2977_v30 = vpop.permute.xlu1 %2976 }
0x4363   :  { %v2979_v35 = vmul.f32 %v5192_v41, %v2977_v30 }
0x4365   :  { %2981 = vrot.lane.b32.xlu0 %v2979_v35, %s5329_s14  ;;  %v6198_v35 = vld [vmem:[%s6601_s0] sm:$0xff] }
0x4366   :  { %vm3110_vm6 = vcmp.gt.s32.totalorder %v6198_v35, 25 }
0x4373   :  { %v6172_v31 = vpop.permute.xlu1 %2994 }
0x4374   :  { %6657 = vst [vmem:[#allocation20_spill] sm:$0xff] %v6172_v31  ;;  %vm6632_vm7 = vcmp.eq.s32.totalorder %v6172_v31, 1 }
0x43d7   :  { %v2982_v3 = vpop.permute.xlu0 %2981 }
0x43d8   :  { %v2984_v33 = vadd.f32 %v2982_v3, %v2974_v17  ;;  %v3111_v3 = vsel %vm3110_vm6, 1, %v5328_v14 }
0x43da   :  { %5193 = vtanh.f32 %v2984_v33 }
0x43e4   :  { %v5194_v26 = vpop.eup %5193 }
0x43e5   :  { %2987 = vrot.lane.b32.xlu0 %v5194_v26, %s5329_s14 }
0x4457   :  { %v2988_v46 = vpop.permute.xlu0 %2987 }
0x4458   :  { %v6174_v0 = vmul.f32 %v5192_v41, %v2988_v46 }
0x445a   :  { %6658 = vst [vmem:[#allocation21_spill] sm:$0xff] %v6174_v0  ;;  %v2997_v28 = vsel %vm6632_vm7, %v6174_v0, %v2878_v8 }
0x445b   :  { %3009 = vrot.lane.b32.xlu1 %v2997_v28, %s5330_s15 }
0x44cd   :  { %v3010_v22 = vpop.permute.xlu1 %3009 }
0x44ce   :  { %v3012_v37 = vsel %vm31_vm1, %v3967_v55, %v3010_v22 }
0x44cf   :  { %4600 = vmatmul.mubr.msk.f32.vlgmr.msra.gmra.mrb[24].mxu1 %vm39_vm2, %v3012_v37 }
0x44d0   :  { %4937 = vmatpush3.bf16.msra.mxu1 %v5383_v4  ;;  %4629 = vmatprep.mubr.msk.f32.mxu1 %vm5326_vm0, %v6656_v2 }
0x44d1   :  { %4938 = vmatprep.subr.bf16.mxu1 %v6653_v29 }
0x44d4   :  { %4940 = vmatpush3.bf16.msra.mxu1 %v5394_v7 }
0x44d5   :  { %4941 = vmatprep.subr.bf16.mxu1 %v6653_v29 }
0x44d8   :  { %4943 = vmatpush3.bf16.msra.mxu1 %v5406_v10 }
0x44d9   :  { %4953 = vmatprep.subr.bf16.mxu1 %v6653_v29 }
0x45a2   :  { %v3082_v8 = vpop.f32.mrb[24].mxu1 }
0x45a3   :  { %v3083_v41 = vadd.f32 %v5832_v52, %v3082_v8  ;;  %v4601_v30 = vpop.f32.mrb[25].mxu1  ;;  %v2998_v8 = vsel %vm6632_vm7, %v2984_v33, %v2879_v6  ;;  %v3970_v33 = vld [vmem:[%s6602_s1 + $0xd0] sm:$0xff]  ;;  %vm3229_vm7 = vcmp.gt.s32.totalorder %v6198_v35, 26 }
0x45a5   :  { %5195 = vtanh.f32 %v3083_v41  ;;  %v3969_v26 = vmul.f32 -1.442695, %v3083_v41 }
0x45a7   :  { %5197 = vpow2.f32 %v3969_v26 }
0x45af   :  { %v5196_v17 = vpop.eup %5195 }
0x45b0   :  { %3095 = vrot.lane.b32.xlu0 %v5196_v17, %s5329_s14 }
0x45b1   :  { %v5198_v46 = vpop.eup %5197 }
0x45b2   :  { %v3089_v55 = vadd.f32 1.0, %v5198_v46 }
0x45b4   :  { %3113 = vperm.xlu0 %4994, %v3111_v3   ;;  %5199 = vrcp.f32 %v3089_v55  ;;  %v6232_v55 = vld [vmem:[%s6604_s3] ss:$0 sm:$0xff] }
0x45be   :  { %v5200_v52 = vpop.eup %5199 }
0x45bf   :  { %v3093_v30 = vmul.f32 %v5200_v52, %v2998_v8 }
0x4622   :  { %v3096_v22 = vpop.permute.xlu0 %3095 }
0x4623   :  { %v3098_v37 = vmul.f32 %v5200_v52, %v3096_v22 }
0x4625   :  { %3100 = vrot.lane.b32.xlu1 %v3098_v37, %s5329_s14 }
0x4633   :  { %v6207_v41 = vpop.permute.xlu0 %3113 }
0x4634   :  { %vm6636_vm6 = vcmp.eq.s32.totalorder %v6207_v41, 1 }
0x4697   :  { %v3101_v0 = vpop.permute.xlu1 %3100 }
0x4698   :  { %v3103_v49 = vadd.f32 %v3101_v0, %v3093_v30  ;;  %v3230_v30 = vsel %vm3229_vm7, 1, %v5328_v14 }
0x469a   :  { %5201 = vtanh.f32 %v3103_v49 }
0x46a4   :  { %v5202_v17 = vpop.eup %5201 }
0x46a5   :  { %3106 = vrot.lane.b32.xlu1 %v5202_v17, %s5329_s14 }
0x4717   :  { %v3107_v3 = vpop.permute.xlu1 %3106 }
0x4718   :  { %v6209_v26 = vmul.f32 %v5200_v52, %v3107_v3 }
0x471a   :  { %v3116_v46 = vsel %vm6636_vm6, %v6209_v26, %v2997_v28 }
0x471b   :  { %3128 = vrot.lane.b32.xlu0 %v3116_v46, %s5330_s15 }
0x478d   :  { %v3129_v6 = vpop.permute.xlu0 %3128 }
0x478e   :  { %v3131_v0 = vsel %vm31_vm1, %v3970_v33, %v3129_v6 }
0x478f   :  { %4615 = vmatmul.mubr.msk.f32.vlgmr.msra.gmra.mrb[26].mxu0 %vm39_vm2, %v3131_v0 }
0x4790   :  { %4946 = vmatpush3.bf16.msra.mxu0 %v5383_v4  ;;  %4644 = vmatprep.mubr.msk.f32.mxu0 %vm5326_vm0, %v6656_v2 }
0x4791   :  { %4947 = vmatprep.subr.bf16.mxu0 %v6653_v29 }
0x4794   :  { %4949 = vmatpush3.bf16.msra.mxu0 %v5394_v7 }
0x4795   :  { %4950 = vmatprep.subr.bf16.mxu0 %v6653_v29 }
0x4798   :  { %4952 = vmatpush3.bf16.msra.mxu0 %v5406_v10 }
0x4799   :  { %4962 = vmatprep.subr.bf16.mxu0 %v6653_v29 }
0x4862   :  { %v3201_v28 = vpop.f32.mrb[26].mxu0 }
0x4863   :  { %v3202_v52 = vadd.f32 %v6232_v55, %v3201_v28  ;;  %v4616_v22 = vpop.f32.mrb[27].mxu0  ;;  %v3117_v28 = vsel %vm6636_vm6, %v3103_v49, %v2998_v8  ;;  %v3973_v49 = vld [vmem:[%s6602_s1 + $0xd8] sm:$0xff]  ;;  %vm3348_vm6 = vcmp.gt.s32.totalorder %v6198_v35, 27 }
0x4865   :  { %5203 = vtanh.f32 %v3202_v52  ;;  %v3972_v17 = vmul.f32 -1.442695, %v3202_v52 }
0x4867   :  { %5205 = vpow2.f32 %v3972_v17 }
0x486f   :  { %v5204_v37 = vpop.eup %5203 }
0x4870   :  { %3214 = vrot.lane.b32.xlu1 %v5204_v37, %s5329_s14 }
0x4871   :  { %v5206_v3 = vpop.eup %5205 }
0x4872   :  { %v3208_v33 = vadd.f32 1.0, %v5206_v3 }
0x4874   :  { %3232 = vperm.xlu1 %4993, %v3230_v30   ;;  %5207 = vrcp.f32 %v3208_v33 }
0x487e   :  { %v5208_v6 = vpop.eup %5207 }
0x487f   :  { %v3212_v22 = vmul.f32 %v5208_v6, %v3117_v28 }
0x48e2   :  { %v3215_v0 = vpop.permute.xlu1 %3214 }
0x48e3   :  { %v3217_v31 = vmul.f32 %v5208_v6, %v3215_v0  ;;  %v3349_v0 = vsel %vm3348_vm6, 1, %v5328_v14 }
0x48e5   :  { %3219 = vrot.lane.b32.xlu0 %v3217_v31, %s5329_s14 }
0x48f3   :  { %v6242_v52 = vpop.permute.xlu1 %3232 }
0x48f4   :  { %6659 = vst [vmem:[#allocation22_spill] sm:$0xff] %v6242_v52  ;;  %vm6639_vm7 = vcmp.eq.s32.totalorder %v6242_v52, 1 }
0x4957   :  { %v3220_v57 = vpop.permute.xlu0 %3219 }
0x4958   :  { %v3222_v63 = vadd.f32 %v3220_v57, %v3212_v22 }
0x495a   :  { %5209 = vtanh.f32 %v3222_v63 }
0x4964   :  { %v5210_v37 = vpop.eup %5209 }
0x4965   :  { %3225 = vrot.lane.b32.xlu0 %v5210_v37, %s5329_s14 }
0x49d7   :  { %v3226_v30 = vpop.permute.xlu0 %3225 }
0x49d8   :  { %v6244_v17 = vmul.f32 %v5208_v6, %v3226_v30 }
0x49da   :  { %6660 = vst [vmem:[#allocation23_spill] sm:$0xff] %v6244_v17  ;;  %v3235_v31 = vsel %vm6639_vm7, %v6244_v17, %v3116_v46 }
0x49db   :  { %3247 = vrot.lane.b32.xlu1 %v3235_v31, %s5330_s15 }
0x4a4d   :  { %v3248_v57 = vpop.permute.xlu1 %3247 }
0x4a4e   :  { %v3250_v8 = vsel %vm31_vm1, %v3973_v49, %v3248_v57 }
0x4a4f   :  { %4630 = vmatmul.mubr.msk.f32.vlgmr.msra.gmra.mrb[26].mxu1 %vm39_vm2, %v3250_v8 }
0x4a50   :  { %4955 = vmatpush3.bf16.msra.mxu1 %v5383_v4  ;;  %4659 = vmatprep.mubr.msk.f32.mxu1 %vm5326_vm0, %v6656_v2 }
0x4a51   :  { %4956 = vmatprep.subr.bf16.mxu1 %v6653_v29 }
0x4a54   :  { %4958 = vmatpush3.bf16.msra.mxu1 %v5394_v7 }
0x4a55   :  { %4959 = vmatprep.subr.bf16.mxu1 %v6653_v29 }
0x4a58   :  { %4961 = vmatpush3.bf16.msra.mxu1 %v5406_v10 }
0x4a59   :  { %4971 = vmatprep.subr.bf16.mxu1 %v6653_v29 }
0x4b22   :  { %v3320_v46 = vpop.f32.mrb[26].mxu1 }
0x4b23   :  { %v3321_v3 = vadd.f32 %v6232_v55, %v3320_v46  ;;  %v4631_v33 = vpop.f32.mrb[27].mxu1  ;;  %v3236_v46 = vsel %vm6639_vm7, %v3222_v63, %v3117_v28  ;;  %v3976_v63 = vld [vmem:[%s6602_s1 + $0xe0] sm:$0xff]  ;;  %vm3467_vm7 = vcmp.gt.s32.totalorder %v6198_v35, 28 }
0x4b25   :  { %5211 = vtanh.f32 %v3321_v3  ;;  %v3975_v22 = vmul.f32 -1.442695, %v3321_v3 }
0x4b27   :  { %5213 = vpow2.f32 %v3975_v22 }
0x4b2f   :  { %v5212_v6 = vpop.eup %5211 }
0x4b30   :  { %3333 = vrot.lane.b32.xlu0 %v5212_v6, %s5329_s14 }
0x4b31   :  { %v5214_v37 = vpop.eup %5213 }
0x4b32   :  { %v3327_v30 = vadd.f32 1.0, %v5214_v37 }
0x4b34   :  { %3351 = vperm.xlu0 %4994, %v3349_v0   ;;  %5215 = vrcp.f32 %v3327_v30 }
0x4b3e   :  { %v5216_v49 = vpop.eup %5215 }
0x4b3f   :  { %v3331_v33 = vmul.f32 %v5216_v49, %v3236_v46 }
0x4ba2   :  { %v3334_v57 = vpop.permute.xlu0 %3333 }
0x4ba3   :  { %v3336_v8 = vmul.f32 %v5216_v49, %v3334_v57 }
0x4ba5   :  { %3338 = vrot.lane.b32.xlu1 %v3336_v8, %s5329_s14  ;;  %v3468_v8 = vsel %vm3467_vm7, 1, %v5328_v14 }
0x4bb3   :  { %v6272_v3 = vpop.permute.xlu0 %3351 }
0x4bb4   :  { %vm6642_vm6 = vcmp.eq.s32.totalorder %v6272_v3, 1 }
0x4c17   :  { %v3339_v17 = vpop.permute.xlu1 %3338 }
0x4c18   :  { %v3341_v1 = vadd.f32 %v3339_v17, %v3331_v33 }
0x4c1a   :  { %5217 = vtanh.f32 %v3341_v1 }
0x4c24   :  { %v5218_v6 = vpop.eup %5217 }
0x4c25   :  { %3344 = vrot.lane.b32.xlu1 %v5218_v6, %s5329_s14 }
0x4c97   :  { %v3345_v0 = vpop.permute.xlu1 %3344 }
0x4c98   :  { %v6274_v22 = vmul.f32 %v5216_v49, %v3345_v0 }
0x4c9a   :  { %v3354_v37 = vsel %vm6642_vm6, %v6274_v22, %v3235_v31 }
0x4c9b   :  { %3366 = vrot.lane.b32.xlu0 %v3354_v37, %s5330_s15 }
0x4d0d   :  { %v3367_v28 = vpop.permute.xlu0 %3366 }
0x4d0e   :  { %v3369_v17 = vsel %vm31_vm1, %v3976_v63, %v3367_v28 }
0x4d0f   :  { %4645 = vmatmul.mubr.msk.f32.vlgmr.msra.gmra.mrb[28].mxu0 %vm39_vm2, %v3369_v17 }
0x4d10   :  { %4964 = vmatpush3.bf16.msra.mxu0 %v5383_v4  ;;  %4674 = vmatprep.mubr.msk.f32.mxu0 %vm5326_vm0, %v6656_v2 }
0x4d11   :  { %4965 = vmatprep.subr.bf16.mxu0 %v6653_v29 }
0x4d14   :  { %4967 = vmatpush3.bf16.msra.mxu0 %v5394_v7 }
0x4d15   :  { %4968 = vmatprep.subr.bf16.mxu0 %v6653_v29 }
0x4d18   :  { %4970 = vmatpush3.bf16.msra.mxu0 %v5406_v10 }
0x4de2   :  { %v3439_v31 = vpop.f32.mrb[28].mxu0 }
0x4de3   :  { %v3440_v30 = vadd.f32 %v6232_v55, %v3439_v31  ;;  %v4646_v49 = vpop.f32.mrb[29].mxu0  ;;  %v3355_v31 = vsel %vm6642_vm6, %v3341_v1, %v3236_v46  ;;  %v3979_v1 = vld [vmem:[%s6602_s1 + $0xe8] sm:$0xff]  ;;  %vm3586_vm6 = vcmp.gt.s32.totalorder %v6198_v35, 29 }
0x4de5   :  { %5219 = vtanh.f32 %v3440_v30  ;;  %v3978_v33 = vmul.f32 -1.442695, %v3440_v30 }
0x4de7   :  { %5221 = vpow2.f32 %v3978_v33 }
0x4def   :  { %v5220_v57 = vpop.eup %5219 }
0x4df0   :  { %3452 = vrot.lane.b32.xlu1 %v5220_v57, %s5329_s14 }
0x4df1   :  { %v5222_v6 = vpop.eup %5221 }
0x4df2   :  { %v3446_v0 = vadd.f32 1.0, %v5222_v6 }
0x4df4   :  { %3470 = vperm.xlu1 %4993, %v3468_v8   ;;  %5223 = vrcp.f32 %v3446_v0 }
0x4dfe   :  { %v5224_v63 = vpop.eup %5223 }
0x4dff   :  { %v3450_v49 = vmul.f32 %v5224_v63, %v3355_v31 }
0x4e62   :  { %v3453_v28 = vpop.permute.xlu1 %3452 }
0x4e63   :  { %v3455_v17 = vmul.f32 %v5224_v63, %v3453_v28 }
0x4e65   :  { %3457 = vrot.lane.b32.xlu0 %v3455_v17, %s5329_s14 }
0x4e73   :  { %v6301_v30 = vpop.permute.xlu1 %3470 }
0x4e74   :  { %vm6643_vm7 = vcmp.eq.s32.totalorder %v6301_v30, 1 }
0x4ed7   :  { %v3458_v52 = vpop.permute.xlu0 %3457 }
0x4ed8   :  { %v3460_v36 = vadd.f32 %v3458_v52, %v3450_v49 }
0x4eda   :  { %5225 = vtanh.f32 %v3460_v36 }
0x4ee4   :  { %v5226_v57 = vpop.eup %5225 }
0x4ee5   :  { %3463 = vrot.lane.b32.xlu0 %v5226_v57, %s5329_s14  ;;  %v3474_v57 = vsel %vm6643_vm7, %v3460_v36, %v3355_v31  ;;  %v3982_v36 = vld [vmem:[%s6602_s1 + $0xf0] sm:$0xff] }
0x4f57   :  { %v3464_v8 = vpop.permute.xlu0 %3463 }
0x4f58   :  { %v6303_v33 = vmul.f32 %v5224_v63, %v3464_v8 }
0x4f5a   :  { %v3473_v6 = vsel %vm6643_vm7, %v6303_v33, %v3354_v37  ;;  %vm3824_vm7 = vcmp.gt.s32.totalorder %v6198_v35, 31 }
0x4f5b   :  { %3485 = vrot.lane.b32.xlu1 %v3473_v6, %s5330_s15 }
0x4fcd   :  { %v3486_v52 = vpop.permute.xlu1 %3485 }
0x4fce   :  { %v3488_v46 = vsel %vm31_vm1, %v3979_v1, %v3486_v52 }
0x4fcf   :  { %4660 = vmatmul.mubr.msk.f32.vlgmr.msra.gmra.mrb[28].mxu1 %vm39_vm2, %v3488_v46 }
0x4fd0   :  { %4973 = vmatpush3.bf16.msra.mxu1 %v5383_v4  ;;  %4689 = vmatprep.mubr.msk.f32.mxu1 %vm5326_vm0, %v6656_v2  ;;  %v3587_v4 = vsel %vm3586_vm6, 1, %v5328_v14  ;;  %vm3705_vm6 = vcmp.gt.s32.totalorder %v6198_v35, 30  ;;  %v738_v35 = vsel %vm735_vm14, %v5594_v42, 0.0  ;;  %v2166_v42 = vsel %vm2163_vm9, %v5964_v51, 0.0 }
0x4fd1   :  { %4974 = vmatprep.subr.bf16.mxu1 %v6653_v29  ;;  %vm149_vm14 = vcmask 261120   ;;  %vm6668_vm9 = vcmp.eq.s32.totalorder %v5742_v25, 1  ;;  %v6677_v25 = vld [vmem:[#allocation15_spill] sm:$0xff] }
0x4fd4   :  { %4976 = vmatpush3.bf16.msra.mxu1 %v5394_v7 }
0x4fd5   :  { %4977 = vmatprep.subr.bf16.mxu1 %v6653_v29 }
0x4fd8   :  { %4979 = vmatpush3.bf16.msra.mxu1 %v5406_v10 }
0x50a2   :  { %v3558_v37 = vpop.f32.mrb[28].mxu1 }
0x50a3   :  { %v3559_v0 = vadd.f32 %v6232_v55, %v3558_v37  ;;  %v4661_v63 = vpop.f32.mrb[29].mxu1 }
0x50a5   :  { %5227 = vtanh.f32 %v3559_v0  ;;  %v3981_v2 = vmul.f32 -1.442695, %v3559_v0 }
0x50a7   :  { %5229 = vpow2.f32 %v3981_v2 }
0x50af   :  { %v5228_v28 = vpop.eup %5227 }
0x50b0   :  { %3571 = vrot.lane.b32.xlu0 %v5228_v28, %s5329_s14 }
0x50b1   :  { %v5230_v7 = vpop.eup %5229 }
0x50b2   :  { %v3565_v17 = vadd.f32 1.0, %v5230_v7 }
0x50b4   :  { %3589 = vperm.xlu0 %4994, %v3587_v4   ;;  %5231 = vrcp.f32 %v3565_v17 }
0x50be   :  { %v5232_v29 = vpop.eup %5231 }
0x50bf   :  { %v3569_v8 = vmul.f32 %v5232_v29, %v3474_v57 }
0x5122   :  { %v3572_v10 = vpop.permute.xlu0 %3571 }
0x5123   :  { %v3574_v49 = vmul.f32 %v5232_v29, %v3572_v10 }
0x5125   :  { %3576 = vrot.lane.b32.xlu1 %v3574_v49, %s5329_s14 }
0x5133   :  { %v6330_v37 = vpop.permute.xlu0 %3589 }
0x5134   :  { %vm3591_vm0 = vcmp.eq.s32.totalorder %v6330_v37, 1 }
0x5197   :  { %v3577_v1 = vpop.permute.xlu1 %3576 }
0x5198   :  { %v3579_v52 = vadd.f32 %v3577_v1, %v3569_v8 }
0x519a   :  { %5233 = vtanh.f32 %v3579_v52 }
0x51a4   :  { %v5234_v46 = vpop.eup %5233 }
0x51a5   :  { %3582 = vrot.lane.b32.xlu1 %v5234_v46, %s5329_s14 }
0x5217   :  { %v3583_v0 = vpop.permute.xlu1 %3582 }
0x5218   :  { %v6332_v63 = vmul.f32 %v5232_v29, %v3583_v0 }
0x521a   :  { %v3592_v28 = vsel %vm3591_vm0, %v6332_v63, %v3473_v6  ;;  %v3706_v6 = vsel %vm3705_vm6, 1, %v5328_v14  ;;  %v3594_v60 = vsel %vm3591_vm0, %v6332_v63, 0.0 }
0x521b   :  { %3604 = vrot.lane.b32.xlu0 %v3592_v28, %s5330_s15 }
0x528d   :  { %v3605_v31 = vpop.permute.xlu0 %3604 }
0x528e   :  { %v3607_v4 = vsel %vm31_vm1, %v3982_v36, %v3605_v31  ;;  %v6351_v36 = vsel %vm3591_vm0, %v3579_v52, %v3474_v57  ;;  %v3985_v52 = vld [vmem:[%s6602_s1 + $0xf8] sm:$0xff]  ;;  %s5332_s1 = smov 96  }
0x528f   :  { %4675 = vmatmul.mubr.msk.f32.vlgmr.msra.gmra.mrb[30].mxu0 %vm39_vm2, %v3607_v4 }
0x5362   :  { %v3677_v2 = vpop.f32.mrb[30].mxu0 }
0x5363   :  { %v3678_v7 = vadd.f32 %v6232_v55, %v3677_v2  ;;  %v4676_v17 = vpop.f32.mrb[31].mxu0 }
0x5365   :  { %5235 = vtanh.f32 %v3678_v7  ;;  %v3984_v10 = vmul.f32 -1.442695, %v3678_v7 }
0x5367   :  { %5237 = vpow2.f32 %v3984_v10 }
0x536f   :  { %v5236_v29 = vpop.eup %5235 }
0x5370   :  { %3690 = vrot.lane.b32.xlu1 %v5236_v29, %s5329_s14 }
0x5371   :  { %v5238_v49 = vpop.eup %5237 }
0x5372   :  { %v3684_v8 = vadd.f32 1.0, %v5238_v49 }
0x5374   :  { %3708 = vperm.xlu1 %4993, %v3706_v6   ;;  %5239 = vrcp.f32 %v3684_v8 }
0x537e   :  { %v5240_v1 = vpop.eup %5239 }
0x537f   :  { %v3688_v31 = vmul.f32 %v5240_v1, %v6351_v36 }
0x53e2   :  { %v3691_v46 = vpop.permute.xlu1 %3690 }
0x53e3   :  { %v3693_v0 = vmul.f32 %v5240_v1, %v3691_v46 }
0x53e5   :  { %3695 = vrot.lane.b32.xlu0 %v3693_v0, %s5329_s14  ;;  %v3825_v0 = vsel %vm3824_vm7, 1, %v5328_v14  ;;  %v976_v14 = vsel %vm973_vm5, %v5654_v43, 0.0  ;;  %v2642_v43 = vsel %vm2639_vm12, %v6084_v44, 0.0 }
0x53f3   :  { %v6358_v17 = vpop.permute.xlu1 %3708 }
0x53f4   :  { %vm3710_vm6 = vcmp.eq.s32.totalorder %v6358_v17, 1 }
0x5457   :  { %v3696_v4 = vpop.permute.xlu0 %3695 }
0x5458   :  { %v6354_v2 = vadd.f32 %v3696_v4, %v3688_v31  ;;  %v381_v31 = vsel %vm378_vm8, %v5504_v23, 0.0  ;;  %v1690_v23 = vsel %vm1687_vm15, %v5844_v16, 0.0  ;;  %vm6663_vm8 = vcmp.eq.s32.totalorder %v5471_v54, 1 }
0x5459   :  { %v262_v61 = vsel %vm6663_vm8, %v5473_v56, 0.0  ;;  %vm6666_vm15 = vcmp.eq.s32.totalorder %v5622_v5, 1  ;;  %v6672_v5 = vld [vmem:[#allocation10_spill] sm:$0xff] }
0x545a   :  { %5241 = vtanh.f32 %v6354_v2  ;;  %vm6673_vm12 = vcmp.eq.s32.totalorder %v6672_v5, 1 }
0x5464   :  { %v5242_v7 = vpop.eup %5241 }
0x5465   :  { %3701 = vrot.lane.b32.xlu0 %v5242_v7, %s5329_s14 }
0x54d7   :  { %v3702_v29 = vpop.permute.xlu0 %3701 }
0x54d8   :  { %v6360_v6 = vmul.f32 %v5240_v1, %v3702_v29  ;;  %v3712_v29 = vsel %vm3710_vm6, %v6354_v2, %v6351_v36  ;;  %v619_v2 = vsel %vm6665_vm11, %v5564_v15, 0.0  ;;  %v6671_v15 = vld [vmem:[#allocation11_spill] sm:$0xff] }
0x54da   :  { %v6366_v57 = vsel %vm3710_vm6, %v6360_v6, %v3592_v28 }
0x54db   :  { %3723 = vrot.lane.b32.xlu1 %v6366_v57, %s5330_s15  ;;  %s5331_s15 = smov 64  }
0x554d   :  { %v3724_v10 = vpop.permute.xlu1 %3723 }
0x554e   :  { %v3726_v49 = vsel %vm31_vm1, %v3985_v52, %v3724_v10  ;;  %vm6661_vm1 = vcmp.eq.s32.totalorder %v6207_v41, 1 }
0x554f   :  { %4690 = vmatmul.mubr.msk.f32.vlgmr.msra.gmra.mrb[30].mxu1 %vm39_vm2, %v3726_v49  ;;  %vm6662_vm2 = vcmp.eq.s32.totalorder %v6272_v3, 1 }
0x5550   :  { %v3356_v58 = vsel %vm6662_vm2, %v6274_v22, 0.0 }
0x5622   :  { %v3796_v8 = vpop.f32.mrb[30].mxu1 }
0x5623   :  { %v3797_v1 = vadd.f32 %v6232_v55, %v3796_v8  ;;  %v4691_v46 = vpop.f32.mrb[31].mxu1 }
0x5625   :  { %5243 = vtanh.f32 %v3797_v1  ;;  %v3987_v24 = vmul.f32 -1.442695, %v3797_v1 }
0x5627   :  { %5245 = vpow2.f32 %v3987_v24  ;;  %v3713_v24 = vsel %vm3710_vm6, %v6360_v6, 0.0 }
0x562f   :  { %v5244_v28 = vpop.eup %5243 }
0x5630   :  { %3809 = vrot.lane.b32.xlu0 %v5244_v28, %s5329_s14  ;;  %v857_v28 = vsel %vm6666_vm15, %v5624_v9, 0.0  ;;  %v1809_v9 = vsel %vm6673_vm12, %v6671_v15, 0.0 }
0x5631   :  { %v5246_v16 = vpop.eup %5245 }
0x5632   :  { %v3803_v53 = vadd.f32 1.0, %v5246_v16 }
0x5634   :  { %3827 = vperm.xlu0 %4994, %v3825_v0   ;;  %5247 = vrcp.f32 %v3803_v53  ;;  %v1095_v0 = vsel %vm6667_vm4, %v5684_v18, 0.0  ;;  %v6675_v18 = vld [vmem:[#allocation12_spill] sm:$0xff] }
0x5635   :  { %vm6676_vm10 = vcmp.eq.s32.totalorder %v6675_v18, 1 }
0x5638   :  { %146 = vrot.lane.b32.xlu0 %v5447_v34, %s5331_s15  ;;  %v1214_v34 = vsel %vm1211_vm13, %v5714_v50, 0.0  ;;  %v3118_v50 = vsel %vm6661_vm1, %v6209_v26, 0.0  ;;  %vm6664_vm13 = vcmp.eq.s32.totalorder %v5532_v45, 1  ;;  %v1333_v45 = vsel %vm6668_vm9, %v5744_v27, 0.0  ;;  %v6678_v27 = vld [vmem:[#allocation14_spill] sm:$0xff] }
0x5639   :  { %v500_v36 = vsel %vm6664_vm13, %v5534_v47, 0.0  ;;  %v6669_v47 = vld [vmem:[#allocation9_spill] sm:$0xff]  ;;  %vm6679_vm7 = vcmp.eq.s32.totalorder %v6678_v27, 1  ;;  %vm6692_vm13 = vcmp.eq.s32.totalorder %v6301_v30, 1 }
0x563a   :  { %vm6670_vm3 = vcmp.eq.s32.totalorder %v6669_v47, 1 }
0x563b   :  { %v1571_v11 = vsel %vm6670_vm3, %v5809_v38, 0.0  ;;  %v6680_v38 = vld [vmem:[#allocation17_spill] sm:$0xff] }
0x563c   :  { %383 = vrot.lane.b32.xlu0 %v381_v31, %s5331_s15  ;;  %v2047_v31 = vsel %vm6676_vm10, %v6674_v12, 0.0 }
0x563e   :  { %v6437_v59 = vpop.eup %5247 }
0x563f   :  { %v3807_v52 = vmul.f32 %v6437_v59, %v3712_v29 }
0x5640   :  { %740 = vrot.lane.b32.xlu0 %v738_v35, %s5331_s15  ;;  %v2285_v35 = vsel %vm6679_vm7, %v6677_v25, 0.0 }
0x5644   :  { %978 = vrot.lane.b32.xlu0 %v976_v14, %s5331_s15  ;;  %v6681_v14 = vld [vmem:[#allocation16_spill] sm:$0xff] }
0x5645   :  { %vm6682_vm0 = vcmp.eq.s32.totalorder %v6681_v14, 1 }
0x5648   :  { %1216 = vrot.lane.b32.xlu0 %v1214_v34, %s5331_s15  ;;  %v2523_v34 = vsel %vm6682_vm0, %v6680_v38, 0.0 }
0x564c   :  { %1454 = vrot.lane.b32.xlu0 %v1452_v21, %s5331_s15  ;;  %v6683_v21 = vld [vmem:[#allocation19_spill] sm:$0xff] }
0x5650   :  { %1692 = vrot.lane.b32.xlu0 %v1690_v23, %s5331_s15  ;;  %v6684_v23 = vld [vmem:[#allocation18_spill] sm:$0xff] }
0x5651   :  { %vm6685_vm1 = vcmp.eq.s32.totalorder %v6684_v23, 1 }
0x5654   :  { %1930 = vrot.lane.b32.xlu0 %v1928_v40, %s5331_s15  ;;  %v2761_v40 = vsel %vm6685_vm1, %v6683_v21, 0.0 }
0x5658   :  { %2168 = vrot.lane.b32.xlu0 %v2166_v42, %s5331_s15  ;;  %v6686_v42 = vld [vmem:[#allocation21_spill] sm:$0xff] }
0x565c   :  { %2406 = vrot.lane.b32.xlu0 %v2404_v39, %s5331_s15  ;;  %v6687_v39 = vld [vmem:[#allocation20_spill] sm:$0xff] }
0x565d   :  { %vm6688_vm2 = vcmp.eq.s32.totalorder %v6687_v39, 1 }
0x5660   :  { %2644 = vrot.lane.b32.xlu0 %v2642_v43, %s5331_s15  ;;  %v2999_v43 = vsel %vm6688_vm2, %v6686_v42, 0.0 }
0x5664   :  { %2882 = vrot.lane.b32.xlu0 %v2880_v48, %s5331_s15  ;;  %v6689_v48 = vld [vmem:[#allocation23_spill] sm:$0xff] }
0x5668   :  { %3120 = vrot.lane.b32.xlu0 %v3118_v50, %s5331_s15  ;;  %v6690_v50 = vld [vmem:[#allocation22_spill] sm:$0xff] }
0x5669   :  { %vm6691_vm8 = vcmp.eq.s32.totalorder %v6690_v50, 1 }
0x566c   :  { %3358 = vrot.lane.b32.xlu0 %v3356_v58, %s5331_s15  ;;  %v3237_v58 = vsel %vm6691_vm8, %v6689_v48, 0.0 }
0x5670   :  { %3596 = vrot.lane.b32.xlu0 %v3594_v60, %s5331_s15  ;;  %v3475_v60 = vsel %vm6692_vm13, %v6303_v33, 0.0 }
0x56a2   :  { %v3810_v13 = vpop.permute.xlu0 %3809 }
0x56a3   :  { %v3812_v51 = vmul.f32 %v6437_v59, %v3810_v13 }
0x56a5   :  { %3814 = vrot.lane.b32.xlu1 %v3812_v51, %s5329_s14 }
0x56a9   :  { %264 = vrot.lane.b32.xlu1 %v262_v61, %s5331_s15 }
0x56b3   :  { %v6445_v19 = vpop.permute.xlu0 %3827 }
0x56b4   :  { %vm3829_vm5 = vcmp.eq.s32.totalorder %v6445_v19, 1 }
0x56b7   :  { %v147_v62 = vpop.permute.xlu0 %146 }
0x56b8   :  { %150 = vst.msk [vmem:[#allocation2] sm:$0xff] %vm149_vm14, %v147_v62 }
0x56bb   :  { %v384_v44 = vpop.permute.xlu0 %383 }
0x56bc   :  { %387 = vst.msk [vmem:[#allocation2 + $0x10] sm:$0xff] %vm149_vm14, %v384_v44 }
0x56bf   :  { %v741_v32 = vpop.permute.xlu0 %740 }
0x56c0   :  { %744 = vst.msk [vmem:[#allocation2 + $0x28] sm:$0xff] %vm149_vm14, %v741_v32 }
0x56c3   :  { %v979_v20 = vpop.permute.xlu0 %978 }
0x56c4   :  { %982 = vst.msk [vmem:[#allocation2 + $0x38] sm:$0xff] %vm149_vm14, %v979_v20 }
0x56c7   :  { %v1217_v41 = vpop.permute.xlu0 %1216 }
0x56c8   :  { %1220 = vst.msk [vmem:[#allocation2 + $0x48] sm:$0xff] %vm149_vm14, %v1217_v41 }
0x56cb   :  { %v1455_v54 = vpop.permute.xlu0 %1454 }
0x56cc   :  { %1458 = vst.msk [vmem:[#allocation2 + $0x58] sm:$0xff] %vm149_vm14, %v1455_v54 }
0x56cf   :  { %v1693_v56 = vpop.permute.xlu0 %1692 }
0x56d0   :  { %1696 = vst.msk [vmem:[#allocation2 + $0x68] sm:$0xff] %vm149_vm14, %v1693_v56 }
0x56d3   :  { %v1931_v26 = vpop.permute.xlu0 %1930 }
0x56d4   :  { %1934 = vst.msk [vmem:[#allocation2 + $0x78] sm:$0xff] %vm149_vm14, %v1931_v26 }
0x56d7   :  { %v2169_v55 = vpop.permute.xlu0 %2168 }
0x56d8   :  { %2172 = vst.msk [vmem:[#allocation2 + $0x88] sm:$0xff] %vm149_vm14, %v2169_v55 }
0x56db   :  { %v2407_v3 = vpop.permute.xlu0 %2406 }
0x56dc   :  { %2410 = vst.msk [vmem:[#allocation2 + $0x98] sm:$0xff] %vm149_vm14, %v2407_v3 }
0x56df   :  { %v2645_v22 = vpop.permute.xlu0 %2644 }
0x56e0   :  { %2648 = vst.msk [vmem:[#allocation2 + $0xa8] sm:$0xff] %vm149_vm14, %v2645_v22 }
0x56e3   :  { %v2883_v37 = vpop.permute.xlu0 %2882 }
0x56e4   :  { %2886 = vst.msk [vmem:[#allocation2 + $0xb8] sm:$0xff] %vm149_vm14, %v2883_v37 }
0x56e7   :  { %v3121_v63 = vpop.permute.xlu0 %3120 }
0x56e8   :  { %3124 = vst.msk [vmem:[#allocation2 + $0xc8] sm:$0xff] %vm149_vm14, %v3121_v63 }
0x56eb   :  { %v3359_v4 = vpop.permute.xlu0 %3358 }
0x56ec   :  { %3362 = vst.msk [vmem:[#allocation2 + $0xd8] sm:$0xff] %vm149_vm14, %v3359_v4 }
0x56ef   :  { %v3597_v7 = vpop.permute.xlu0 %3596 }
0x56f0   :  { %3600 = vst.msk [vmem:[#allocation2 + $0xe8] sm:$0xff] %vm149_vm14, %v3597_v7 }
0x5717   :  { %v3815_v10 = vpop.permute.xlu1 %3814 }
0x5718   :  { %v3817_v49 = vadd.f32 %v3815_v10, %v3807_v52 }
0x571a   :  { %5249 = vtanh.f32 %v3817_v49  ;;  %v3831_v8 = vsel %vm3829_vm5, %v3817_v49, %v3712_v29 }
0x571b   :  { %v265_v1 = vpop.permute.xlu1 %264 }
0x571c   :  { %268 = vst.msk [vmem:[#allocation2 + $0x8] sm:$0xff] %vm149_vm14, %v265_v1 }
0x5724   :  { %v5250_v46 = vpop.eup %5249 }
0x5725   :  { %3820 = vrot.lane.b32.xlu1 %v5250_v46, %s5329_s14  ;;  %s5333_s14 = smov [#allocation4]  }
0x5726   :  { %s3867_s13 = sshll.u32 %s5333_s14, 4  ;;  %s3868_s13 = int_to_ptr.vmem [resolvable:$true] %s3867_s13 }
0x5727   :  { %s5255_s20 = scalar_lea.vmem %s3868_s13, 128  ;;  %p5260_p1 = scmp.lt.s32.totalorder %s3868_s13, %s3868_s13 }
0x5728   :  { %p5256_p0 = scmp.ne.s32.totalorder %s3868_s13, %s5255_s20  ;;  %p5261_p2 = scmp.lt.s32.totalorder %s5255_s20, %s5255_s20 }
0x5729   :  { %502 = vrot.lane.b32.xlu1 %v500_v36, %s5331_s15 }
0x572a   :  { %p5262_p3 = por %p5261_p2, %p5260_p1 }
0x572c   :  { %p5263_p4 = pnand %p5262_p3, %p5256_p0 }
0x572d   :  { %621 = vrot.lane.b32.xlu1 %v619_v2, %s5331_s15 }
0x5731   :  { %859 = vrot.lane.b32.xlu1 %v857_v28, %s5331_s15 }
0x5735   :  { %1097 = vrot.lane.b32.xlu1 %v1095_v0, %s5331_s15 }
0x5739   :  { %1335 = vrot.lane.b32.xlu1 %v1333_v45, %s5331_s15 }
0x573d   :  { %1573 = vrot.lane.b32.xlu1 %v1571_v11, %s5331_s15 }
0x5741   :  { %1811 = vrot.lane.b32.xlu1 %v1809_v9, %s5331_s15 }
0x5745   :  { %2049 = vrot.lane.b32.xlu1 %v2047_v31, %s5331_s15 }
0x5749   :  { %2287 = vrot.lane.b32.xlu1 %v2285_v35, %s5331_s15 }
0x574d   :  { %2525 = vrot.lane.b32.xlu1 %v2523_v34, %s5331_s15 }
0x5751   :  { %2763 = vrot.lane.b32.xlu1 %v2761_v40, %s5331_s15 }
0x5755   :  { %3001 = vrot.lane.b32.xlu1 %v2999_v43, %s5331_s15 }
0x5759   :  { %3239 = vrot.lane.b32.xlu1 %v3237_v58, %s5331_s15 }
0x575d   :  { %3477 = vrot.lane.b32.xlu1 %v3475_v60, %s5331_s15 }
0x5761   :  { %3715 = vrot.lane.b32.xlu1 %v3713_v24, %s5331_s15 }
0x5765   :  { %3845 = vrot.lane.b32.xlu1 %v3831_v8, %s5332_s1 }
0x5797   :  { %v3821_v16 = vpop.permute.xlu1 %3820 }
0x5798   :  { %v3823_v53 = vmul.f32 %v6437_v59, %v3821_v16 }
0x579a   :  { %v3830_v13 = vsel %vm3829_vm5, %v3823_v53, %v6366_v57  ;;  %v3832_v33 = vsel %vm3829_vm5, %v3823_v53, 0.0 }
0x579b   :  { %3840 = vrot.lane.b32.xlu0 %v3830_v13, %s5331_s15  ;;  %v503_v30 = vpop.permute.xlu1 %502 }
0x579c   :  { %506 = vst.msk [vmem:[#allocation2 + $0x18] sm:$0xff] %vm149_vm14, %v503_v30 }
0x579f   :  { %3834 = vrot.lane.b32.xlu0 %v3832_v33, %s5331_s15  ;;  %v622_v17 = vpop.permute.xlu1 %621 }
0x57a0   :  { %625 = vst.msk [vmem:[#allocation2 + $0x20] sm:$0xff] %vm149_vm14, %v622_v17 }
0x57a3   :  { %v860_v6 = vpop.permute.xlu1 %859 }
0x57a4   :  { %863 = vst.msk [vmem:[#allocation2 + $0x30] sm:$0xff] %vm149_vm14, %v860_v6 }
0x57a7   :  { %v1098_v59 = vpop.permute.xlu1 %1097 }
0x57a8   :  { %1101 = vst.msk [vmem:[#allocation2 + $0x40] sm:$0xff] %vm149_vm14, %v1098_v59 }
0x57ab   :  { %v1336_v57 = vpop.permute.xlu1 %1335 }
0x57ac   :  { %1339 = vst.msk [vmem:[#allocation2 + $0x50] sm:$0xff] %vm149_vm14, %v1336_v57 }
0x57af   :  { %v1574_v51 = vpop.permute.xlu1 %1573 }
0x57b0   :  { %1577 = vst.msk [vmem:[#allocation2 + $0x60] sm:$0xff] %vm149_vm14, %v1574_v51 }
0x57b3   :  { %v1812_v61 = vpop.permute.xlu1 %1811 }
0x57b4   :  { %1815 = vst.msk [vmem:[#allocation2 + $0x70] sm:$0xff] %vm149_vm14, %v1812_v61 }
0x57b7   :  { %v2050_v19 = vpop.permute.xlu1 %2049 }
0x57b8   :  { %2053 = vst.msk [vmem:[#allocation2 + $0x80] sm:$0xff] %vm149_vm14, %v2050_v19 }
0x57bb   :  { %v2288_v62 = vpop.permute.xlu1 %2287 }
0x57bc   :  { %2291 = vst.msk [vmem:[#allocation2 + $0x90] sm:$0xff] %vm149_vm14, %v2288_v62 }
0x57bf   :  { %v2526_v44 = vpop.permute.xlu1 %2525 }
0x57c0   :  { %2529 = vst.msk [vmem:[#allocation2 + $0xa0] sm:$0xff] %vm149_vm14, %v2526_v44 }
0x57c3   :  { %v2764_v32 = vpop.permute.xlu1 %2763 }
0x57c4   :  { %2767 = vst.msk [vmem:[#allocation2 + $0xb0] sm:$0xff] %vm149_vm14, %v2764_v32 }
0x57c7   :  { %v3002_v20 = vpop.permute.xlu1 %3001 }
0x57c8   :  { %3005 = vst.msk [vmem:[#allocation2 + $0xc0] sm:$0xff] %vm149_vm14, %v3002_v20 }
0x57cb   :  { %v3240_v41 = vpop.permute.xlu1 %3239 }
0x57cc   :  { %3243 = vst.msk [vmem:[#allocation2 + $0xd0] sm:$0xff] %vm149_vm14, %v3240_v41 }
0x57cf   :  { %v3478_v54 = vpop.permute.xlu1 %3477 }
0x57d0   :  { %3481 = vst.msk [vmem:[#allocation2 + $0xe0] sm:$0xff] %vm149_vm14, %v3478_v54 }
0x57d3   :  { %v3716_v56 = vpop.permute.xlu1 %3715 }
0x57d4   :  { %3719 = vst.msk [vmem:[#allocation2 + $0xf0] sm:$0xff] %vm149_vm14, %v3716_v56 }
0x57d7   :  { %v3846_v26 = vpop.permute.xlu1 %3845 }
0x57d8   :  { %3848 = vst.msk [vmem:[#allocation6] sm:$0xff] %vm149_vm14, %v3846_v26 }
0x580d   :  { %v3841_v55 = vpop.permute.xlu0 %3840 }
0x580e   :  { %3843 = vst.msk [vmem:[#allocation4] sm:$0xff] %vm149_vm14, %v3841_v55 }
0x580f   :  { %5266 = shalt.err (!%p5263_p4)
}
0x5810   :  { %s5267_s23 = scalar_lea.hbm %s6606_s5, 128 }
0x5811   :  { %p5268_p5 = scmp.ne.s32.totalorder %s6606_s5, %s5267_s23  ;;  %p5271_p6 = scmp.lt.u32.totalorder %s5267_s23, %s6606_s5 }
0x5813   :  { %p5273_p7 = pnand %p5271_p6, %p5268_p5 }
0x5815   :  { %5276 = shalt.err (!%p5273_p7)
}
0x5816   :  { %3870 = dma.vmem_to_hbm [thread:$0]  %s3868_s13, 128, %s6606_s5, [#allocation5]  }
0x5817   :  { %s5277_s3 = scalar_lea.vmem %s3878_s19, 128  ;;  %p5282_p9 = scmp.lt.s32.totalorder %s3878_s19, %s3878_s19 }
0x5818   :  { %p5278_p8 = scmp.ne.s32.totalorder %s3878_s19, %s5277_s3  ;;  %p5283_p10 = scmp.lt.s32.totalorder %s5277_s3, %s5277_s3 }
0x581a   :  { %p5284_p11 = por %p5283_p10, %p5282_p9 }
0x581c   :  { %p5285_p12 = pnand %p5284_p11, %p5278_p8 }
0x581e   :  { %5288 = shalt.err (!%p5285_p12)
}
0x581f   :  { %s5289_s7 = scalar_lea.hbm %s6607_s6, 128 }
0x5820   :  { %p5290_p13 = scmp.ne.s32.totalorder %s6607_s6, %s5289_s7  ;;  %p5293_p0 = scmp.lt.u32.totalorder %s5289_s7, %s6607_s6 }
0x5822   :  { %p5295_p1 = pnand %p5293_p0, %p5290_p13 }
0x5824   :  { %5298 = shalt.err (!%p5295_p1)
}
0x5825   :  { %3880 = dma.vmem_to_hbm [thread:$0]  %s3878_s19, 128, %s6607_s6, [#allocation5]   ;;  %v3835_v3 = vpop.permute.xlu0 %3834 }
0x5826   :  { %3838 = vst.msk [vmem:[#allocation2 + $0xf8] sm:$0xff] %vm149_vm14, %v3835_v3  ;;  %s5299_s12 = scalar_lea.vmem %s6556_s17, 4096  ;;  %p5304_p3 = scmp.lt.s32.totalorder %s6556_s17, %s6556_s17 }
0x5827   :  { %p5300_p2 = scmp.ne.s32.totalorder %s6556_s17, %s5299_s12  ;;  %p5305_p4 = scmp.lt.s32.totalorder %s5299_s12, %s5299_s12 }
0x5829   :  { %p5306_p5 = por %p5305_p4, %p5304_p3 }
0x582b   :  { %p5307_p6 = pnand %p5306_p5, %p5300_p2 }
0x582d   :  { %5310 = shalt.err (!%p5307_p6)
}
0x582e   :  { %s5311_s14 = scalar_lea.hbm %s6605_s4, 4096 }
0x582f   :  { %p5312_p7 = scmp.ne.s32.totalorder %s6605_s4, %s5311_s14  ;;  %p5315_p8 = scmp.lt.u32.totalorder %s5311_s14, %s6605_s4 }
0x5831   :  { %p5317_p9 = pnand %p5315_p8, %p5312_p7 }
0x5833   :  { %5320 = shalt.err (!%p5317_p9)
}
0x5834   :  { %s5336_s19 = smov 128   ;;  %s5337_s20 = smov 8  }
0x5835   :  { %3860 = dma.vmem_to_hbm [thread:$0]  %s6556_s17, 4096, %s6605_s4, [#allocation3], %s5336_s19, %s5336_s19, %s5337_s20  }
0x5836   :  { %5321 = dma.done.wait [#allocation3], 4096  }
0x5837   :  { %5322 = vsyncadd [#allocation3], 4294963200 }
0x5838   :  { %5323 = dma.done.wait [#allocation5], 256  }
0x5839   :  { %5324 = vsyncadd [#allocation5], 4294967040 }
0x583a   :  { %3890 = vsyncpa [#allocation3], 1 }
0x583b   :  { %3891 = vsyncpa [#allocation5], 1 }

</bundles_post_ra>
